<compile_context>
chip_gen: v7x
topology: tpu7x:2x2x1
jax: 0.10.0
libtpu: 0.0.40
codegen_flags: <defaults>
</compile_context>

<pallas_src>
import functools

import jax
import jax.numpy as jnp
from jax.experimental import pallas as pl
from jax.experimental.pallas import tpu as pltpu


IMAGENET_MEAN = (0.485, 0.456, 0.406)
IMAGENET_STD = (0.229, 0.224, 0.225)


# ------------------------------- fused kernel -------------------------------

def _fused_predictor_kernel(xp_ref, w_ref, b_ref, wh_ref, bh_ref, o_ref,
                            pool_ref, *, th, h, w, cin, cout):
    """(folded)normalize -> conv3x3 'same' -> ReLU -> global-avg-pool
    -> linear -> sigmoid -> -log(x)/7, in a single pass over row tiles."""
    i = pl.program_id(0)
    n_tiles = pl.num_programs(0)

    @pl.when(i == 0)
    def _init():
        pool_ref[...] = jnp.zeros_like(pool_ref)

    # Top row (in the 1-pixel mean-padded image) of this tile's halo window.
    r0 = pl.multiple_of(i * th, th)

    # Per-output-channel conv accumulators, seeded with the folded bias.
    accs = [jnp.full((th, w), b_ref[co], dtype=jnp.float32)
            for co in range(cout)]

    for ci in range(cin):
        # (th+2, w+2) halo window for this input channel (aligned dyn. start).
        rows = xp_ref[ci, pl.ds(r0, th + 2), :]
        for dh in range(3):
            for dw in range(3):
                tap = rows[dh:dh + th, dw:dw + w]          # shifted (th, w)
                k = (dh * 3 + dw) * cin + ci
                for co in range(cout):
                    accs[co] = accs[co] + w_ref[k, co] * tap

    # ReLU + accumulate global-average-pool partial sums (pure VPU adds).
    for co in range(cout):
        pool_ref[co] = pool_ref[co] + jnp.maximum(accs[co], 0.0)

    @pl.when(i == n_tiles - 1)
    def _finalize():
        s = jnp.sum(pool_ref[...], axis=2)                 # (cout, th)
        s = jnp.sum(s, axis=1, keepdims=True)              # (cout, 1)
        pooled = s * (1.0 / (h * w))                       # global avg pool
        logit = (jnp.sum(pooled * wh_ref[...], axis=0, keepdims=True)
                 + bh_ref[...])                            # (1, 1)
        # -log(sigmoid(logit)) / 7 == softplus(-logit) / 7 (stable form).
        z = -logit
        softplus = jnp.maximum(z, 0.0) + jnp.log(1.0 + jnp.exp(-jnp.abs(z)))
        o_ref[...] = softplus * (1.0 / 7.0)


# --------------------------------- wrapper ----------------------------------

@jax.jit
def predictor_forward(img_hwc, w_conv, b_conv, w_head, b_head):
    """Full Predictor.forward as one fused Pallas kernel.

    img_hwc : (H, W, 3) float32 in [0, 1]  (ToTensor output, pre-resized)
    w_conv  : (Cout, Cin, 3, 3), b_conv: (Cout,)   -- PyTorch Conv2d layout
    w_head  : (Cout, 1), b_head: (1, 1)
    Returns (1, 1) float32.
    """
    h, w, cin = img_hwc.shape
    cout = w_conv.shape[0]
    mean = jnp.asarray(IMAGENET_MEAN, jnp.float32)
    std = jnp.asarray(IMAGENET_STD, jnp.float32)

    # Fold Normalize into the conv: conv(W, (x-mean)/std) == conv(W/std, x) +
    # (b - sum(W*mean/std)), provided the raw border is padded with the
    # per-channel mean (== zero-padding the normalized tensor).
    w_scaled = w_conv / std.reshape(1, cin, 1, 1)                  # (Cout,Cin,3,3)
    b_folded = b_conv - jnp.sum(w_scaled * mean.reshape(1, cin, 1, 1),
                                axis=(1, 2, 3))                    # (Cout,)
    # Tap-major (kh, kw, ci) x Cout layout matching the kernel's MAC ordering.
    w_taps = jnp.transpose(w_scaled, (2, 3, 1, 0)).reshape(9 * cin, cout)

    # Mean-padded RAW image in (C, H+2, W+2) layout (pixels on lanes).
    x_chw = jnp.transpose(img_hwc, (2, 0, 1))
    xp = jnp.broadcast_to(mean.reshape(cin, 1, 1), (cin, h + 2, w + 2))
    xp = jax.lax.dynamic_update_slice(xp, x_chw, (0, 1, 1))

    th = 8 if h % 8 == 0 else h            # sublane-aligned row-tile height
    n_tiles = h // th

    kernel = functools.partial(_fused_predictor_kernel,
                               th=th, h=h, w=w, cin=cin, cout=cout)

    grid_spec = pltpu.PrefetchScalarGridSpec(
        num_scalar_prefetch=0,
        grid=(n_tiles,),
        in_specs=[
            # Whole padded image: constant index map -> DMA'd into VMEM once;
            # each grid step slices its (th+2)-row halo window with pl.ds.
            pl.BlockSpec((cin, h + 2, w + 2), lambda i: (0, 0, 0)),
            # Folded conv weights / bias as SMEM scalars (VPU MAC operands).
            pl.BlockSpec(memory_space=pltpu.MemorySpace.SMEM),
            pl.BlockSpec(memory_space=pltpu.MemorySpace.SMEM),
            pl.BlockSpec((cout, 1), lambda i: (0, 0)),     # head weight
            pl.BlockSpec((1, 1), lambda i: (0, 0)),        # head bias
        ],
        out_specs=pl.BlockSpec((1, 1), lambda i: (0, 0)),
        # Running ReLU'd-activation sum; reduced + head applied at finalize.
        scratch_shapes=[pltpu.VMEM((cout, th, w), jnp.float32)],
    )

    return pl.pallas_call(
        kernel,
        out_shape=jax.ShapeDtypeStruct((1, 1), jnp.float32),
        grid_spec=grid_spec,
        compiler_params=pltpu.CompilerParams(
            dimension_semantics=("arbitrary",)),
    )(xp, w_taps, b_folded, w_head, b_head)


# ----------------------------------- main ------------------------------------

if __name__ == "__main__":
    key = jax.random.PRNGKey(0)
    k_img, k_wc, k_bc, k_wh, k_bh = jax.random.split(key, 5)

    H = W = 16
    Cin, Cout = 3, 8

    # "PIL image" already ToTensor'd / resized / cropped: HWC float in [0, 1].
    img = jax.random.uniform(k_img, (H, W, Cin), dtype=jnp.float32)

    # Deterministic synthetic weights (stand-in for the S3 checkpoint).
    w_conv = 0.1 * jax.random.normal(k_wc, (Cout, Cin, 3, 3), dtype=jnp.float32)
    b_conv = 0.1 * jax.random.normal(k_bc, (Cout,), dtype=jnp.float32)
    w_head = 0.1 * jax.random.normal(k_wh, (Cout, 1), dtype=jnp.float32)
    b_head = 0.1 * jax.random.normal(k_bh, (1, 1), dtype=jnp.float32)

    out = predictor_forward(img, w_conv, b_conv, w_head, b_head)
    out = jax.block_until_ready(out)
    assert out.shape == (1, 1) and out.dtype == jnp.float32
    assert bool(jnp.isfinite(out).all())
    print("KERNEL_OK")
</pallas_src>

<mosaic_0001>
module attributes {stable_mosaic.version = 11 : i64} {
  func.func @_fused_predictor_kernel(%arg0: i32, %arg1: memref<3x18x18xf32, #tpu.memory_space<vmem>>, %arg2: memref<27x8xf32, #tpu.memory_space<smem>>, %arg3: memref<8xf32, #tpu.memory_space<smem>>, %arg4: memref<8x1xf32, #tpu.memory_space<vmem>>, %arg5: memref<1x1xf32, #tpu.memory_space<vmem>>, %arg6: memref<1x1xf32, #tpu.memory_space<vmem>>, %arg7: memref<8x8x16xf32, #tpu.memory_space<vmem>>) attributes {dimension_semantics = [#tpu.dimension_semantics<arbitrary>], iteration_bounds = array<i64: 2>, scalar_prefetch = 0 : i64, scratch_operands = 1 : i64, tpu.core_type = #tpu.core_type<tc>, window_params = [{pipeline_mode = #tpu.pipeline_mode<synchronous>, transform_indices = @transform_0, window_bounds = array<i64: 3, 18, 18>}, {transform_indices = @transform_1, window_bounds = array<i64: 27, 8>}, {transform_indices = @transform_2, window_bounds = array<i64: 8>}, {pipeline_mode = #tpu.pipeline_mode<synchronous>, transform_indices = @transform_3, window_bounds = array<i64: 8, 1>}, {pipeline_mode = #tpu.pipeline_mode<synchronous>, transform_indices = @transform_4, window_bounds = array<i64: 1, 1>}, {pipeline_mode = #tpu.pipeline_mode<synchronous>, transform_indices = @transform_5, window_bounds = array<i64: 1, 1>}]} {
    %c0_i32 = arith.constant 0 : i32
    %0 = arith.cmpi eq, %arg0, %c0_i32 : i32
    %1 = arith.extui %0 : i1 to i32
    %c0_i32_0 = arith.constant 0 : i32
    %2 = arith.cmpi ne, %1, %c0_i32_0 : i32
    scf.if %2 {
      %cst_476 = arith.constant 0.000000e+00 : f32
      %988 = vector.broadcast %cst_476 : f32 to vector<8x8x16xf32>
      %c0_477 = arith.constant 0 : index
      %c0_478 = arith.constant 0 : index
      %c0_479 = arith.constant 0 : index
      %989 = vector.load %arg7[%c0_477, %c0_478, %c0_479] : memref<8x8x16xf32, #tpu.memory_space<vmem>>, vector<8x8x16xf32>
      tpu.vector_store %arg7[%c0_477, %c0_478, %c0_479], %988 {strides = array<i32>} : memref<8x8x16xf32, #tpu.memory_space<vmem>>, vector<8x8x16xf32>,
    } else {
    }
    %c8_i32 = arith.constant 8 : i32
    %3 = arith.muli %arg0, %c8_i32 : i32
    %4 = tpu.assume_multiple %3, 8 : i32
    %c0 = arith.constant 0 : index
    %5 = memref.load %arg3[%c0] : memref<8xf32, #tpu.memory_space<smem>>
    %6 = vector.broadcast %5 : f32 to vector<8x16xf32>
    %c1 = arith.constant 1 : index
    %7 = memref.load %arg3[%c1] : memref<8xf32, #tpu.memory_space<smem>>
    %8 = vector.broadcast %7 : f32 to vector<8x16xf32>
    %c2 = arith.constant 2 : index
    %9 = memref.load %arg3[%c2] : memref<8xf32, #tpu.memory_space<smem>>
    %10 = vector.broadcast %9 : f32 to vector<8x16xf32>
    %c3 = arith.constant 3 : index
    %11 = memref.load %arg3[%c3] : memref<8xf32, #tpu.memory_space<smem>>
    %12 = vector.broadcast %11 : f32 to vector<8x16xf32>
    %c4 = arith.constant 4 : index
    %13 = memref.load %arg3[%c4] : memref<8xf32, #tpu.memory_space<smem>>
    %14 = vector.broadcast %13 : f32 to vector<8x16xf32>
    %c5 = arith.constant 5 : index
    %15 = memref.load %arg3[%c5] : memref<8xf32, #tpu.memory_space<smem>>
    %16 = vector.broadcast %15 : f32 to vector<8x16xf32>
    %c6 = arith.constant 6 : index
    %17 = memref.load %arg3[%c6] : memref<8xf32, #tpu.memory_space<smem>>
    %18 = vector.broadcast %17 : f32 to vector<8x16xf32>
    %c7 = arith.constant 7 : index
    %19 = memref.load %arg3[%c7] : memref<8xf32, #tpu.memory_space<smem>>
    %20 = vector.broadcast %19 : f32 to vector<8x16xf32>
    %c0_1 = arith.constant 0 : index
    %21 = arith.index_cast %4 : i32 to index
    %c0_2 = arith.constant 0 : index
    %22 = vector.load %arg1[%c0_1, %21, %c0_2] : memref<3x18x18xf32, #tpu.memory_space<vmem>>, vector<1x10x18xf32>
    %23 = vector.shape_cast %22 : vector<1x10x18xf32> to vector<10x18xf32>
    %24 = vector.extract_strided_slice %23 {offsets = [0, 0], sizes = [8, 16], strides = [1, 1]} : vector<10x18xf32> to vector<8x16xf32>
    %c0_3 = arith.constant 0 : index
    %c0_4 = arith.constant 0 : index
    %25 = memref.load %arg2[%c0_3, %c0_4] : memref<27x8xf32, #tpu.memory_space<smem>>
    %26 = vector.broadcast %25 : f32 to vector<8x16xf32>
    %27 = arith.mulf %26, %24 : vector<8x16xf32>
    %28 = arith.addf %6, %27 : vector<8x16xf32>
    %c0_5 = arith.constant 0 : index
    %c1_6 = arith.constant 1 : index
    %29 = memref.load %arg2[%c0_5, %c1_6] : memref<27x8xf32, #tpu.memory_space<smem>>
    %30 = vector.broadcast %29 : f32 to vector<8x16xf32>
    %31 = arith.mulf %30, %24 : vector<8x16xf32>
    %32 = arith.addf %8, %31 : vector<8x16xf32>
    %c0_7 = arith.constant 0 : index
    %c2_8 = arith.constant 2 : index
    %33 = memref.load %arg2[%c0_7, %c2_8] : memref<27x8xf32, #tpu.memory_space<smem>>
    %34 = vector.broadcast %33 : f32 to vector<8x16xf32>
    %35 = arith.mulf %34, %24 : vector<8x16xf32>
    %36 = arith.addf %10, %35 : vector<8x16xf32>
    %c0_9 = arith.constant 0 : index
    %c3_10 = arith.constant 3 : index
    %37 = memref.load %arg2[%c0_9, %c3_10] : memref<27x8xf32, #tpu.memory_space<smem>>
    %38 = vector.broadcast %37 : f32 to vector<8x16xf32>
    %39 = arith.mulf %38, %24 : vector<8x16xf32>
    %40 = arith.addf %12, %39 : vector<8x16xf32>
    %c0_11 = arith.constant 0 : index
    %c4_12 = arith.constant 4 : index
    %41 = memref.load %arg2[%c0_11, %c4_12] : memref<27x8xf32, #tpu.memory_space<smem>>
    %42 = vector.broadcast %41 : f32 to vector<8x16xf32>
    %43 = arith.mulf %42, %24 : vector<8x16xf32>
    %44 = arith.addf %14, %43 : vector<8x16xf32>
    %c0_13 = arith.constant 0 : index
    %c5_14 = arith.constant 5 : index
    %45 = memref.load %arg2[%c0_13, %c5_14] : memref<27x8xf32, #tpu.memory_space<smem>>
    %46 = vector.broadcast %45 : f32 to vector<8x16xf32>
    %47 = arith.mulf %46, %24 : vector<8x16xf32>
    %48 = arith.addf %16, %47 : vector<8x16xf32>
    %c0_15 = arith.constant 0 : index
    %c6_16 = arith.constant 6 : index
    %49 = memref.load %arg2[%c0_15, %c6_16] : memref<27x8xf32, #tpu.memory_space<smem>>
    %50 = vector.broadcast %49 : f32 to vector<8x16xf32>
    %51 = arith.mulf %50, %24 : vector<8x16xf32>
    %52 = arith.addf %18, %51 : vector<8x16xf32>
    %c0_17 = arith.constant 0 : index
    %c7_18 = arith.constant 7 : index
    %53 = memref.load %arg2[%c0_17, %c7_18] : memref<27x8xf32, #tpu.memory_space<smem>>
    %54 = vector.broadcast %53 : f32 to vector<8x16xf32>
    %55 = arith.mulf %54, %24 : vector<8x16xf32>
    %56 = arith.addf %20, %55 : vector<8x16xf32>
    %57 = vector.extract_strided_slice %23 {offsets = [0, 1], sizes = [8, 16], strides = [1, 1]} : vector<10x18xf32> to vector<8x16xf32>
    %c3_19 = arith.constant 3 : index
    %c0_20 = arith.constant 0 : index
    %58 = memref.load %arg2[%c3_19, %c0_20] : memref<27x8xf32, #tpu.memory_space<smem>>
    %59 = vector.broadcast %58 : f32 to vector<8x16xf32>
    %60 = arith.mulf %59, %57 : vector<8x16xf32>
    %61 = arith.addf %28, %60 : vector<8x16xf32>
    %c3_21 = arith.constant 3 : index
    %c1_22 = arith.constant 1 : index
    %62 = memref.load %arg2[%c3_21, %c1_22] : memref<27x8xf32, #tpu.memory_space<smem>>
    %63 = vector.broadcast %62 : f32 to vector<8x16xf32>
    %64 = arith.mulf %63, %57 : vector<8x16xf32>
    %65 = arith.addf %32, %64 : vector<8x16xf32>
    %c3_23 = arith.constant 3 : index
    %c2_24 = arith.constant 2 : index
    %66 = memref.load %arg2[%c3_23, %c2_24] : memref<27x8xf32, #tpu.memory_space<smem>>
    %67 = vector.broadcast %66 : f32 to vector<8x16xf32>
    %68 = arith.mulf %67, %57 : vector<8x16xf32>
    %69 = arith.addf %36, %68 : vector<8x16xf32>
    %c3_25 = arith.constant 3 : index
    %c3_26 = arith.constant 3 : index
    %70 = memref.load %arg2[%c3_25, %c3_26] : memref<27x8xf32, #tpu.memory_space<smem>>
    %71 = vector.broadcast %70 : f32 to vector<8x16xf32>
    %72 = arith.mulf %71, %57 : vector<8x16xf32>
    %73 = arith.addf %40, %72 : vector<8x16xf32>
    %c3_27 = arith.constant 3 : index
    %c4_28 = arith.constant 4 : index
    %74 = memref.load %arg2[%c3_27, %c4_28] : memref<27x8xf32, #tpu.memory_space<smem>>
    %75 = vector.broadcast %74 : f32 to vector<8x16xf32>
    %76 = arith.mulf %75, %57 : vector<8x16xf32>
    %77 = arith.addf %44, %76 : vector<8x16xf32>
    %c3_29 = arith.constant 3 : index
    %c5_30 = arith.constant 5 : index
    %78 = memref.load %arg2[%c3_29, %c5_30] : memref<27x8xf32, #tpu.memory_space<smem>>
    %79 = vector.broadcast %78 : f32 to vector<8x16xf32>
    %80 = arith.mulf %79, %57 : vector<8x16xf32>
    %81 = arith.addf %48, %80 : vector<8x16xf32>
    %c3_31 = arith.constant 3 : index
    %c6_32 = arith.constant 6 : index
    %82 = memref.load %arg2[%c3_31, %c6_32] : memref<27x8xf32, #tpu.memory_space<smem>>
    %83 = vector.broadcast %82 : f32 to vector<8x16xf32>
    %84 = arith.mulf %83, %57 : vector<8x16xf32>
    %85 = arith.addf %52, %84 : vector<8x16xf32>
    %c3_33 = arith.constant 3 : index
    %c7_34 = arith.constant 7 : index
    %86 = memref.load %arg2[%c3_33, %c7_34] : memref<27x8xf32, #tpu.memory_space<smem>>
    %87 = vector.broadcast %86 : f32 to vector<8x16xf32>
    %88 = arith.mulf %87, %57 : vector<8x16xf32>
    %89 = arith.addf %56, %88 : vector<8x16xf32>
    %90 = vector.extract_strided_slice %23 {offsets = [0, 2], sizes = [8, 16], strides = [1, 1]} : vector<10x18xf32> to vector<8x16xf32>
    %c6_35 = arith.constant 6 : index
    %c0_36 = arith.constant 0 : index
    %91 = memref.load %arg2[%c6_35, %c0_36] : memref<27x8xf32, #tpu.memory_space<smem>>
    %92 = vector.broadcast %91 : f32 to vector<8x16xf32>
    %93 = arith.mulf %92, %90 : vector<8x16xf32>
    %94 = arith.addf %61, %93 : vector<8x16xf32>
    %c6_37 = arith.constant 6 : index
    %c1_38 = arith.constant 1 : index
    %95 = memref.load %arg2[%c6_37, %c1_38] : memref<27x8xf32, #tpu.memory_space<smem>>
    %96 = vector.broadcast %95 : f32 to vector<8x16xf32>
    %97 = arith.mulf %96, %90 : vector<8x16xf32>
    %98 = arith.addf %65, %97 : vector<8x16xf32>
    %c6_39 = arith.constant 6 : index
    %c2_40 = arith.constant 2 : index
    %99 = memref.load %arg2[%c6_39, %c2_40] : memref<27x8xf32, #tpu.memory_space<smem>>
    %100 = vector.broadcast %99 : f32 to vector<8x16xf32>
    %101 = arith.mulf %100, %90 : vector<8x16xf32>
    %102 = arith.addf %69, %101 : vector<8x16xf32>
    %c6_41 = arith.constant 6 : index
    %c3_42 = arith.constant 3 : index
    %103 = memref.load %arg2[%c6_41, %c3_42] : memref<27x8xf32, #tpu.memory_space<smem>>
    %104 = vector.broadcast %103 : f32 to vector<8x16xf32>
    %105 = arith.mulf %104, %90 : vector<8x16xf32>
    %106 = arith.addf %73, %105 : vector<8x16xf32>
    %c6_43 = arith.constant 6 : index
    %c4_44 = arith.constant 4 : index
    %107 = memref.load %arg2[%c6_43, %c4_44] : memref<27x8xf32, #tpu.memory_space<smem>>
    %108 = vector.broadcast %107 : f32 to vector<8x16xf32>
    %109 = arith.mulf %108, %90 : vector<8x16xf32>
    %110 = arith.addf %77, %109 : vector<8x16xf32>
    %c6_45 = arith.constant 6 : index
    %c5_46 = arith.constant 5 : index
    %111 = memref.load %arg2[%c6_45, %c5_46] : memref<27x8xf32, #tpu.memory_space<smem>>
    %112 = vector.broadcast %111 : f32 to vector<8x16xf32>
    %113 = arith.mulf %112, %90 : vector<8x16xf32>
    %114 = arith.addf %81, %113 : vector<8x16xf32>
    %c6_47 = arith.constant 6 : index
    %c6_48 = arith.constant 6 : index
    %115 = memref.load %arg2[%c6_47, %c6_48] : memref<27x8xf32, #tpu.memory_space<smem>>
    %116 = vector.broadcast %115 : f32 to vector<8x16xf32>
    %117 = arith.mulf %116, %90 : vector<8x16xf32>
    %118 = arith.addf %85, %117 : vector<8x16xf32>
    %c6_49 = arith.constant 6 : index
    %c7_50 = arith.constant 7 : index
    %119 = memref.load %arg2[%c6_49, %c7_50] : memref<27x8xf32, #tpu.memory_space<smem>>
    %120 = vector.broadcast %119 : f32 to vector<8x16xf32>
    %121 = arith.mulf %120, %90 : vector<8x16xf32>
    %122 = arith.addf %89, %121 : vector<8x16xf32>
    %123 = vector.extract_strided_slice %23 {offsets = [1, 0], sizes = [8, 16], strides = [1, 1]} : vector<10x18xf32> to vector<8x16xf32>
    %c9 = arith.constant 9 : index
    %c0_51 = arith.constant 0 : index
    %124 = memref.load %arg2[%c9, %c0_51] : memref<27x8xf32, #tpu.memory_space<smem>>
    %125 = vector.broadcast %124 : f32 to vector<8x16xf32>
    %126 = arith.mulf %125, %123 : vector<8x16xf32>
    %127 = arith.addf %94, %126 : vector<8x16xf32>
    %c9_52 = arith.constant 9 : index
    %c1_53 = arith.constant 1 : index
    %128 = memref.load %arg2[%c9_52, %c1_53] : memref<27x8xf32, #tpu.memory_space<smem>>
    %129 = vector.broadcast %128 : f32 to vector<8x16xf32>
    %130 = arith.mulf %129, %123 : vector<8x16xf32>
    %131 = arith.addf %98, %130 : vector<8x16xf32>
    %c9_54 = arith.constant 9 : index
    %c2_55 = arith.constant 2 : index
    %132 = memref.load %arg2[%c9_54, %c2_55] : memref<27x8xf32, #tpu.memory_space<smem>>
    %133 = vector.broadcast %132 : f32 to vector<8x16xf32>
    %134 = arith.mulf %133, %123 : vector<8x16xf32>
    %135 = arith.addf %102, %134 : vector<8x16xf32>
    %c9_56 = arith.constant 9 : index
    %c3_57 = arith.constant 3 : index
    %136 = memref.load %arg2[%c9_56, %c3_57] : memref<27x8xf32, #tpu.memory_space<smem>>
    %137 = vector.broadcast %136 : f32 to vector<8x16xf32>
    %138 = arith.mulf %137, %123 : vector<8x16xf32>
    %139 = arith.addf %106, %138 : vector<8x16xf32>
    %c9_58 = arith.constant 9 : index
    %c4_59 = arith.constant 4 : index
    %140 = memref.load %arg2[%c9_58, %c4_59] : memref<27x8xf32, #tpu.memory_space<smem>>
    %141 = vector.broadcast %140 : f32 to vector<8x16xf32>
    %142 = arith.mulf %141, %123 : vector<8x16xf32>
    %143 = arith.addf %110, %142 : vector<8x16xf32>
    %c9_60 = arith.constant 9 : index
    %c5_61 = arith.constant 5 : index
    %144 = memref.load %arg2[%c9_60, %c5_61] : memref<27x8xf32, #tpu.memory_space<smem>>
    %145 = vector.broadcast %144 : f32 to vector<8x16xf32>
    %146 = arith.mulf %145, %123 : vector<8x16xf32>
    %147 = arith.addf %114, %146 : vector<8x16xf32>
    %c9_62 = arith.constant 9 : index
    %c6_63 = arith.constant 6 : index
    %148 = memref.load %arg2[%c9_62, %c6_63] : memref<27x8xf32, #tpu.memory_space<smem>>
    %149 = vector.broadcast %148 : f32 to vector<8x16xf32>
    %150 = arith.mulf %149, %123 : vector<8x16xf32>
    %151 = arith.addf %118, %150 : vector<8x16xf32>
    %c9_64 = arith.constant 9 : index
    %c7_65 = arith.constant 7 : index
    %152 = memref.load %arg2[%c9_64, %c7_65] : memref<27x8xf32, #tpu.memory_space<smem>>
    %153 = vector.broadcast %152 : f32 to vector<8x16xf32>
    %154 = arith.mulf %153, %123 : vector<8x16xf32>
    %155 = arith.addf %122, %154 : vector<8x16xf32>
    %156 = vector.extract_strided_slice %23 {offsets = [1, 1], sizes = [8, 16], strides = [1, 1]} : vector<10x18xf32> to vector<8x16xf32>
    %c12 = arith.constant 12 : index
    %c0_66 = arith.constant 0 : index
    %157 = memref.load %arg2[%c12, %c0_66] : memref<27x8xf32, #tpu.memory_space<smem>>
    %158 = vector.broadcast %157 : f32 to vector<8x16xf32>
    %159 = arith.mulf %158, %156 : vector<8x16xf32>
    %160 = arith.addf %127, %159 : vector<8x16xf32>
    %c12_67 = arith.constant 12 : index
    %c1_68 = arith.constant 1 : index
    %161 = memref.load %arg2[%c12_67, %c1_68] : memref<27x8xf32, #tpu.memory_space<smem>>
    %162 = vector.broadcast %161 : f32 to vector<8x16xf32>
    %163 = arith.mulf %162, %156 : vector<8x16xf32>
    %164 = arith.addf %131, %163 : vector<8x16xf32>
    %c12_69 = arith.constant 12 : index
    %c2_70 = arith.constant 2 : index
    %165 = memref.load %arg2[%c12_69, %c2_70] : memref<27x8xf32, #tpu.memory_space<smem>>
    %166 = vector.broadcast %165 : f32 to vector<8x16xf32>
    %167 = arith.mulf %166, %156 : vector<8x16xf32>
    %168 = arith.addf %135, %167 : vector<8x16xf32>
    %c12_71 = arith.constant 12 : index
    %c3_72 = arith.constant 3 : index
    %169 = memref.load %arg2[%c12_71, %c3_72] : memref<27x8xf32, #tpu.memory_space<smem>>
    %170 = vector.broadcast %169 : f32 to vector<8x16xf32>
    %171 = arith.mulf %170, %156 : vector<8x16xf32>
    %172 = arith.addf %139, %171 : vector<8x16xf32>
    %c12_73 = arith.constant 12 : index
    %c4_74 = arith.constant 4 : index
    %173 = memref.load %arg2[%c12_73, %c4_74] : memref<27x8xf32, #tpu.memory_space<smem>>
    %174 = vector.broadcast %173 : f32 to vector<8x16xf32>
    %175 = arith.mulf %174, %156 : vector<8x16xf32>
    %176 = arith.addf %143, %175 : vector<8x16xf32>
    %c12_75 = arith.constant 12 : index
    %c5_76 = arith.constant 5 : index
    %177 = memref.load %arg2[%c12_75, %c5_76] : memref<27x8xf32, #tpu.memory_space<smem>>
    %178 = vector.broadcast %177 : f32 to vector<8x16xf32>
    %179 = arith.mulf %178, %156 : vector<8x16xf32>
    %180 = arith.addf %147, %179 : vector<8x16xf32>
    %c12_77 = arith.constant 12 : index
    %c6_78 = arith.constant 6 : index
    %181 = memref.load %arg2[%c12_77, %c6_78] : memref<27x8xf32, #tpu.memory_space<smem>>
    %182 = vector.broadcast %181 : f32 to vector<8x16xf32>
    %183 = arith.mulf %182, %156 : vector<8x16xf32>
    %184 = arith.addf %151, %183 : vector<8x16xf32>
    %c12_79 = arith.constant 12 : index
    %c7_80 = arith.constant 7 : index
    %185 = memref.load %arg2[%c12_79, %c7_80] : memref<27x8xf32, #tpu.memory_space<smem>>
    %186 = vector.broadcast %185 : f32 to vector<8x16xf32>
    %187 = arith.mulf %186, %156 : vector<8x16xf32>
    %188 = arith.addf %155, %187 : vector<8x16xf32>
    %189 = vector.extract_strided_slice %23 {offsets = [1, 2], sizes = [8, 16], strides = [1, 1]} : vector<10x18xf32> to vector<8x16xf32>
    %c15 = arith.constant 15 : index
    %c0_81 = arith.constant 0 : index
    %190 = memref.load %arg2[%c15, %c0_81] : memref<27x8xf32, #tpu.memory_space<smem>>
    %191 = vector.broadcast %190 : f32 to vector<8x16xf32>
    %192 = arith.mulf %191, %189 : vector<8x16xf32>
    %193 = arith.addf %160, %192 : vector<8x16xf32>
    %c15_82 = arith.constant 15 : index
    %c1_83 = arith.constant 1 : index
    %194 = memref.load %arg2[%c15_82, %c1_83] : memref<27x8xf32, #tpu.memory_space<smem>>
    %195 = vector.broadcast %194 : f32 to vector<8x16xf32>
    %196 = arith.mulf %195, %189 : vector<8x16xf32>
    %197 = arith.addf %164, %196 : vector<8x16xf32>
    %c15_84 = arith.constant 15 : index
    %c2_85 = arith.constant 2 : index
    %198 = memref.load %arg2[%c15_84, %c2_85] : memref<27x8xf32, #tpu.memory_space<smem>>
    %199 = vector.broadcast %198 : f32 to vector<8x16xf32>
    %200 = arith.mulf %199, %189 : vector<8x16xf32>
    %201 = arith.addf %168, %200 : vector<8x16xf32>
    %c15_86 = arith.constant 15 : index
    %c3_87 = arith.constant 3 : index
    %202 = memref.load %arg2[%c15_86, %c3_87] : memref<27x8xf32, #tpu.memory_space<smem>>
    %203 = vector.broadcast %202 : f32 to vector<8x16xf32>
    %204 = arith.mulf %203, %189 : vector<8x16xf32>
    %205 = arith.addf %172, %204 : vector<8x16xf32>
    %c15_88 = arith.constant 15 : index
    %c4_89 = arith.constant 4 : index
    %206 = memref.load %arg2[%c15_88, %c4_89] : memref<27x8xf32, #tpu.memory_space<smem>>
    %207 = vector.broadcast %206 : f32 to vector<8x16xf32>
    %208 = arith.mulf %207, %189 : vector<8x16xf32>
    %209 = arith.addf %176, %208 : vector<8x16xf32>
    %c15_90 = arith.constant 15 : index
    %c5_91 = arith.constant 5 : index
    %210 = memref.load %arg2[%c15_90, %c5_91] : memref<27x8xf32, #tpu.memory_space<smem>>
    %211 = vector.broadcast %210 : f32 to vector<8x16xf32>
    %212 = arith.mulf %211, %189 : vector<8x16xf32>
    %213 = arith.addf %180, %212 : vector<8x16xf32>
    %c15_92 = arith.constant 15 : index
    %c6_93 = arith.constant 6 : index
    %214 = memref.load %arg2[%c15_92, %c6_93] : memref<27x8xf32, #tpu.memory_space<smem>>
    %215 = vector.broadcast %214 : f32 to vector<8x16xf32>
    %216 = arith.mulf %215, %189 : vector<8x16xf32>
    %217 = arith.addf %184, %216 : vector<8x16xf32>
    %c15_94 = arith.constant 15 : index
    %c7_95 = arith.constant 7 : index
    %218 = memref.load %arg2[%c15_94, %c7_95] : memref<27x8xf32, #tpu.memory_space<smem>>
    %219 = vector.broadcast %218 : f32 to vector<8x16xf32>
    %220 = arith.mulf %219, %189 : vector<8x16xf32>
    %221 = arith.addf %188, %220 : vector<8x16xf32>
    %222 = vector.extract_strided_slice %23 {offsets = [2, 0], sizes = [8, 16], strides = [1, 1]} : vector<10x18xf32> to vector<8x16xf32>
    %c18 = arith.constant 18 : index
    %c0_96 = arith.constant 0 : index
    %223 = memref.load %arg2[%c18, %c0_96] : memref<27x8xf32, #tpu.memory_space<smem>>
    %224 = vector.broadcast %223 : f32 to vector<8x16xf32>
    %225 = arith.mulf %224, %222 : vector<8x16xf32>
    %226 = arith.addf %193, %225 : vector<8x16xf32>
    %c18_97 = arith.constant 18 : index
    %c1_98 = arith.constant 1 : index
    %227 = memref.load %arg2[%c18_97, %c1_98] : memref<27x8xf32, #tpu.memory_space<smem>>
    %228 = vector.broadcast %227 : f32 to vector<8x16xf32>
    %229 = arith.mulf %228, %222 : vector<8x16xf32>
    %230 = arith.addf %197, %229 : vector<8x16xf32>
    %c18_99 = arith.constant 18 : index
    %c2_100 = arith.constant 2 : index
    %231 = memref.load %arg2[%c18_99, %c2_100] : memref<27x8xf32, #tpu.memory_space<smem>>
    %232 = vector.broadcast %231 : f32 to vector<8x16xf32>
    %233 = arith.mulf %232, %222 : vector<8x16xf32>
    %234 = arith.addf %201, %233 : vector<8x16xf32>
    %c18_101 = arith.constant 18 : index
    %c3_102 = arith.constant 3 : index
    %235 = memref.load %arg2[%c18_101, %c3_102] : memref<27x8xf32, #tpu.memory_space<smem>>
    %236 = vector.broadcast %235 : f32 to vector<8x16xf32>
    %237 = arith.mulf %236, %222 : vector<8x16xf32>
    %238 = arith.addf %205, %237 : vector<8x16xf32>
    %c18_103 = arith.constant 18 : index
    %c4_104 = arith.constant 4 : index
    %239 = memref.load %arg2[%c18_103, %c4_104] : memref<27x8xf32, #tpu.memory_space<smem>>
    %240 = vector.broadcast %239 : f32 to vector<8x16xf32>
    %241 = arith.mulf %240, %222 : vector<8x16xf32>
    %242 = arith.addf %209, %241 : vector<8x16xf32>
    %c18_105 = arith.constant 18 : index
    %c5_106 = arith.constant 5 : index
    %243 = memref.load %arg2[%c18_105, %c5_106] : memref<27x8xf32, #tpu.memory_space<smem>>
    %244 = vector.broadcast %243 : f32 to vector<8x16xf32>
    %245 = arith.mulf %244, %222 : vector<8x16xf32>
    %246 = arith.addf %213, %245 : vector<8x16xf32>
    %c18_107 = arith.constant 18 : index
    %c6_108 = arith.constant 6 : index
    %247 = memref.load %arg2[%c18_107, %c6_108] : memref<27x8xf32, #tpu.memory_space<smem>>
    %248 = vector.broadcast %247 : f32 to vector<8x16xf32>
    %249 = arith.mulf %248, %222 : vector<8x16xf32>
    %250 = arith.addf %217, %249 : vector<8x16xf32>
    %c18_109 = arith.constant 18 : index
    %c7_110 = arith.constant 7 : index
    %251 = memref.load %arg2[%c18_109, %c7_110] : memref<27x8xf32, #tpu.memory_space<smem>>
    %252 = vector.broadcast %251 : f32 to vector<8x16xf32>
    %253 = arith.mulf %252, %222 : vector<8x16xf32>
    %254 = arith.addf %221, %253 : vector<8x16xf32>
    %255 = vector.extract_strided_slice %23 {offsets = [2, 1], sizes = [8, 16], strides = [1, 1]} : vector<10x18xf32> to vector<8x16xf32>
    %c21 = arith.constant 21 : index
    %c0_111 = arith.constant 0 : index
    %256 = memref.load %arg2[%c21, %c0_111] : memref<27x8xf32, #tpu.memory_space<smem>>
    %257 = vector.broadcast %256 : f32 to vector<8x16xf32>
    %258 = arith.mulf %257, %255 : vector<8x16xf32>
    %259 = arith.addf %226, %258 : vector<8x16xf32>
    %c21_112 = arith.constant 21 : index
    %c1_113 = arith.constant 1 : index
    %260 = memref.load %arg2[%c21_112, %c1_113] : memref<27x8xf32, #tpu.memory_space<smem>>
    %261 = vector.broadcast %260 : f32 to vector<8x16xf32>
    %262 = arith.mulf %261, %255 : vector<8x16xf32>
    %263 = arith.addf %230, %262 : vector<8x16xf32>
    %c21_114 = arith.constant 21 : index
    %c2_115 = arith.constant 2 : index
    %264 = memref.load %arg2[%c21_114, %c2_115] : memref<27x8xf32, #tpu.memory_space<smem>>
    %265 = vector.broadcast %264 : f32 to vector<8x16xf32>
    %266 = arith.mulf %265, %255 : vector<8x16xf32>
    %267 = arith.addf %234, %266 : vector<8x16xf32>
    %c21_116 = arith.constant 21 : index
    %c3_117 = arith.constant 3 : index
    %268 = memref.load %arg2[%c21_116, %c3_117] : memref<27x8xf32, #tpu.memory_space<smem>>
    %269 = vector.broadcast %268 : f32 to vector<8x16xf32>
    %270 = arith.mulf %269, %255 : vector<8x16xf32>
    %271 = arith.addf %238, %270 : vector<8x16xf32>
    %c21_118 = arith.constant 21 : index
    %c4_119 = arith.constant 4 : index
    %272 = memref.load %arg2[%c21_118, %c4_119] : memref<27x8xf32, #tpu.memory_space<smem>>
    %273 = vector.broadcast %272 : f32 to vector<8x16xf32>
    %274 = arith.mulf %273, %255 : vector<8x16xf32>
    %275 = arith.addf %242, %274 : vector<8x16xf32>
    %c21_120 = arith.constant 21 : index
    %c5_121 = arith.constant 5 : index
    %276 = memref.load %arg2[%c21_120, %c5_121] : memref<27x8xf32, #tpu.memory_space<smem>>
    %277 = vector.broadcast %276 : f32 to vector<8x16xf32>
    %278 = arith.mulf %277, %255 : vector<8x16xf32>
    %279 = arith.addf %246, %278 : vector<8x16xf32>
    %c21_122 = arith.constant 21 : index
    %c6_123 = arith.constant 6 : index
    %280 = memref.load %arg2[%c21_122, %c6_123] : memref<27x8xf32, #tpu.memory_space<smem>>
    %281 = vector.broadcast %280 : f32 to vector<8x16xf32>
    %282 = arith.mulf %281, %255 : vector<8x16xf32>
    %283 = arith.addf %250, %282 : vector<8x16xf32>
    %c21_124 = arith.constant 21 : index
    %c7_125 = arith.constant 7 : index
    %284 = memref.load %arg2[%c21_124, %c7_125] : memref<27x8xf32, #tpu.memory_space<smem>>
    %285 = vector.broadcast %284 : f32 to vector<8x16xf32>
    %286 = arith.mulf %285, %255 : vector<8x16xf32>
    %287 = arith.addf %254, %286 : vector<8x16xf32>
    %288 = vector.extract_strided_slice %23 {offsets = [2, 2], sizes = [8, 16], strides = [1, 1]} : vector<10x18xf32> to vector<8x16xf32>
    %c24 = arith.constant 24 : index
    %c0_126 = arith.constant 0 : index
    %289 = memref.load %arg2[%c24, %c0_126] : memref<27x8xf32, #tpu.memory_space<smem>>
    %290 = vector.broadcast %289 : f32 to vector<8x16xf32>
    %291 = arith.mulf %290, %288 : vector<8x16xf32>
    %292 = arith.addf %259, %291 : vector<8x16xf32>
    %c24_127 = arith.constant 24 : index
    %c1_128 = arith.constant 1 : index
    %293 = memref.load %arg2[%c24_127, %c1_128] : memref<27x8xf32, #tpu.memory_space<smem>>
    %294 = vector.broadcast %293 : f32 to vector<8x16xf32>
    %295 = arith.mulf %294, %288 : vector<8x16xf32>
    %296 = arith.addf %263, %295 : vector<8x16xf32>
    %c24_129 = arith.constant 24 : index
    %c2_130 = arith.constant 2 : index
    %297 = memref.load %arg2[%c24_129, %c2_130] : memref<27x8xf32, #tpu.memory_space<smem>>
    %298 = vector.broadcast %297 : f32 to vector<8x16xf32>
    %299 = arith.mulf %298, %288 : vector<8x16xf32>
    %300 = arith.addf %267, %299 : vector<8x16xf32>
    %c24_131 = arith.constant 24 : index
    %c3_132 = arith.constant 3 : index
    %301 = memref.load %arg2[%c24_131, %c3_132] : memref<27x8xf32, #tpu.memory_space<smem>>
    %302 = vector.broadcast %301 : f32 to vector<8x16xf32>
    %303 = arith.mulf %302, %288 : vector<8x16xf32>
    %304 = arith.addf %271, %303 : vector<8x16xf32>
    %c24_133 = arith.constant 24 : index
    %c4_134 = arith.constant 4 : index
    %305 = memref.load %arg2[%c24_133, %c4_134] : memref<27x8xf32, #tpu.memory_space<smem>>
    %306 = vector.broadcast %305 : f32 to vector<8x16xf32>
    %307 = arith.mulf %306, %288 : vector<8x16xf32>
    %308 = arith.addf %275, %307 : vector<8x16xf32>
    %c24_135 = arith.constant 24 : index
    %c5_136 = arith.constant 5 : index
    %309 = memref.load %arg2[%c24_135, %c5_136] : memref<27x8xf32, #tpu.memory_space<smem>>
    %310 = vector.broadcast %309 : f32 to vector<8x16xf32>
    %311 = arith.mulf %310, %288 : vector<8x16xf32>
    %312 = arith.addf %279, %311 : vector<8x16xf32>
    %c24_137 = arith.constant 24 : index
    %c6_138 = arith.constant 6 : index
    %313 = memref.load %arg2[%c24_137, %c6_138] : memref<27x8xf32, #tpu.memory_space<smem>>
    %314 = vector.broadcast %313 : f32 to vector<8x16xf32>
    %315 = arith.mulf %314, %288 : vector<8x16xf32>
    %316 = arith.addf %283, %315 : vector<8x16xf32>
    %c24_139 = arith.constant 24 : index
    %c7_140 = arith.constant 7 : index
    %317 = memref.load %arg2[%c24_139, %c7_140] : memref<27x8xf32, #tpu.memory_space<smem>>
    %318 = vector.broadcast %317 : f32 to vector<8x16xf32>
    %319 = arith.mulf %318, %288 : vector<8x16xf32>
    %320 = arith.addf %287, %319 : vector<8x16xf32>
    %c1_141 = arith.constant 1 : index
    %321 = arith.index_cast %4 : i32 to index
    %c0_142 = arith.constant 0 : index
    %322 = vector.load %arg1[%c1_141, %321, %c0_142] : memref<3x18x18xf32, #tpu.memory_space<vmem>>, vector<1x10x18xf32>
    %323 = vector.shape_cast %322 : vector<1x10x18xf32> to vector<10x18xf32>
    %324 = vector.extract_strided_slice %323 {offsets = [0, 0], sizes = [8, 16], strides = [1, 1]} : vector<10x18xf32> to vector<8x16xf32>
    %c1_143 = arith.constant 1 : index
    %c0_144 = arith.constant 0 : index
    %325 = memref.load %arg2[%c1_143, %c0_144] : memref<27x8xf32, #tpu.memory_space<smem>>
    %326 = vector.broadcast %325 : f32 to vector<8x16xf32>
    %327 = arith.mulf %326, %324 : vector<8x16xf32>
    %328 = arith.addf %292, %327 : vector<8x16xf32>
    %c1_145 = arith.constant 1 : index
    %c1_146 = arith.constant 1 : index
    %329 = memref.load %arg2[%c1_145, %c1_146] : memref<27x8xf32, #tpu.memory_space<smem>>
    %330 = vector.broadcast %329 : f32 to vector<8x16xf32>
    %331 = arith.mulf %330, %324 : vector<8x16xf32>
    %332 = arith.addf %296, %331 : vector<8x16xf32>
    %c1_147 = arith.constant 1 : index
    %c2_148 = arith.constant 2 : index
    %333 = memref.load %arg2[%c1_147, %c2_148] : memref<27x8xf32, #tpu.memory_space<smem>>
    %334 = vector.broadcast %333 : f32 to vector<8x16xf32>
    %335 = arith.mulf %334, %324 : vector<8x16xf32>
    %336 = arith.addf %300, %335 : vector<8x16xf32>
    %c1_149 = arith.constant 1 : index
    %c3_150 = arith.constant 3 : index
    %337 = memref.load %arg2[%c1_149, %c3_150] : memref<27x8xf32, #tpu.memory_space<smem>>
    %338 = vector.broadcast %337 : f32 to vector<8x16xf32>
    %339 = arith.mulf %338, %324 : vector<8x16xf32>
    %340 = arith.addf %304, %339 : vector<8x16xf32>
    %c1_151 = arith.constant 1 : index
    %c4_152 = arith.constant 4 : index
    %341 = memref.load %arg2[%c1_151, %c4_152] : memref<27x8xf32, #tpu.memory_space<smem>>
    %342 = vector.broadcast %341 : f32 to vector<8x16xf32>
    %343 = arith.mulf %342, %324 : vector<8x16xf32>
    %344 = arith.addf %308, %343 : vector<8x16xf32>
    %c1_153 = arith.constant 1 : index
    %c5_154 = arith.constant 5 : index
    %345 = memref.load %arg2[%c1_153, %c5_154] : memref<27x8xf32, #tpu.memory_space<smem>>
    %346 = vector.broadcast %345 : f32 to vector<8x16xf32>
    %347 = arith.mulf %346, %324 : vector<8x16xf32>
    %348 = arith.addf %312, %347 : vector<8x16xf32>
    %c1_155 = arith.constant 1 : index
    %c6_156 = arith.constant 6 : index
    %349 = memref.load %arg2[%c1_155, %c6_156] : memref<27x8xf32, #tpu.memory_space<smem>>
    %350 = vector.broadcast %349 : f32 to vector<8x16xf32>
    %351 = arith.mulf %350, %324 : vector<8x16xf32>
    %352 = arith.addf %316, %351 : vector<8x16xf32>
    %c1_157 = arith.constant 1 : index
    %c7_158 = arith.constant 7 : index
    %353 = memref.load %arg2[%c1_157, %c7_158] : memref<27x8xf32, #tpu.memory_space<smem>>
    %354 = vector.broadcast %353 : f32 to vector<8x16xf32>
    %355 = arith.mulf %354, %324 : vector<8x16xf32>
    %356 = arith.addf %320, %355 : vector<8x16xf32>
    %357 = vector.extract_strided_slice %323 {offsets = [0, 1], sizes = [8, 16], strides = [1, 1]} : vector<10x18xf32> to vector<8x16xf32>
    %c4_159 = arith.constant 4 : index
    %c0_160 = arith.constant 0 : index
    %358 = memref.load %arg2[%c4_159, %c0_160] : memref<27x8xf32, #tpu.memory_space<smem>>
    %359 = vector.broadcast %358 : f32 to vector<8x16xf32>
    %360 = arith.mulf %359, %357 : vector<8x16xf32>
    %361 = arith.addf %328, %360 : vector<8x16xf32>
    %c4_161 = arith.constant 4 : index
    %c1_162 = arith.constant 1 : index
    %362 = memref.load %arg2[%c4_161, %c1_162] : memref<27x8xf32, #tpu.memory_space<smem>>
    %363 = vector.broadcast %362 : f32 to vector<8x16xf32>
    %364 = arith.mulf %363, %357 : vector<8x16xf32>
    %365 = arith.addf %332, %364 : vector<8x16xf32>
    %c4_163 = arith.constant 4 : index
    %c2_164 = arith.constant 2 : index
    %366 = memref.load %arg2[%c4_163, %c2_164] : memref<27x8xf32, #tpu.memory_space<smem>>
    %367 = vector.broadcast %366 : f32 to vector<8x16xf32>
    %368 = arith.mulf %367, %357 : vector<8x16xf32>
    %369 = arith.addf %336, %368 : vector<8x16xf32>
    %c4_165 = arith.constant 4 : index
    %c3_166 = arith.constant 3 : index
    %370 = memref.load %arg2[%c4_165, %c3_166] : memref<27x8xf32, #tpu.memory_space<smem>>
    %371 = vector.broadcast %370 : f32 to vector<8x16xf32>
    %372 = arith.mulf %371, %357 : vector<8x16xf32>
    %373 = arith.addf %340, %372 : vector<8x16xf32>
    %c4_167 = arith.constant 4 : index
    %c4_168 = arith.constant 4 : index
    %374 = memref.load %arg2[%c4_167, %c4_168] : memref<27x8xf32, #tpu.memory_space<smem>>
    %375 = vector.broadcast %374 : f32 to vector<8x16xf32>
    %376 = arith.mulf %375, %357 : vector<8x16xf32>
    %377 = arith.addf %344, %376 : vector<8x16xf32>
    %c4_169 = arith.constant 4 : index
    %c5_170 = arith.constant 5 : index
    %378 = memref.load %arg2[%c4_169, %c5_170] : memref<27x8xf32, #tpu.memory_space<smem>>
    %379 = vector.broadcast %378 : f32 to vector<8x16xf32>
    %380 = arith.mulf %379, %357 : vector<8x16xf32>
    %381 = arith.addf %348, %380 : vector<8x16xf32>
    %c4_171 = arith.constant 4 : index
    %c6_172 = arith.constant 6 : index
    %382 = memref.load %arg2[%c4_171, %c6_172] : memref<27x8xf32, #tpu.memory_space<smem>>
    %383 = vector.broadcast %382 : f32 to vector<8x16xf32>
    %384 = arith.mulf %383, %357 : vector<8x16xf32>
    %385 = arith.addf %352, %384 : vector<8x16xf32>
    %c4_173 = arith.constant 4 : index
    %c7_174 = arith.constant 7 : index
    %386 = memref.load %arg2[%c4_173, %c7_174] : memref<27x8xf32, #tpu.memory_space<smem>>
    %387 = vector.broadcast %386 : f32 to vector<8x16xf32>
    %388 = arith.mulf %387, %357 : vector<8x16xf32>
    %389 = arith.addf %356, %388 : vector<8x16xf32>
    %390 = vector.extract_strided_slice %323 {offsets = [0, 2], sizes = [8, 16], strides = [1, 1]} : vector<10x18xf32> to vector<8x16xf32>
    %c7_175 = arith.constant 7 : index
    %c0_176 = arith.constant 0 : index
    %391 = memref.load %arg2[%c7_175, %c0_176] : memref<27x8xf32, #tpu.memory_space<smem>>
    %392 = vector.broadcast %391 : f32 to vector<8x16xf32>
    %393 = arith.mulf %392, %390 : vector<8x16xf32>
    %394 = arith.addf %361, %393 : vector<8x16xf32>
    %c7_177 = arith.constant 7 : index
    %c1_178 = arith.constant 1 : index
    %395 = memref.load %arg2[%c7_177, %c1_178] : memref<27x8xf32, #tpu.memory_space<smem>>
    %396 = vector.broadcast %395 : f32 to vector<8x16xf32>
    %397 = arith.mulf %396, %390 : vector<8x16xf32>
    %398 = arith.addf %365, %397 : vector<8x16xf32>
    %c7_179 = arith.constant 7 : index
    %c2_180 = arith.constant 2 : index
    %399 = memref.load %arg2[%c7_179, %c2_180] : memref<27x8xf32, #tpu.memory_space<smem>>
    %400 = vector.broadcast %399 : f32 to vector<8x16xf32>
    %401 = arith.mulf %400, %390 : vector<8x16xf32>
    %402 = arith.addf %369, %401 : vector<8x16xf32>
    %c7_181 = arith.constant 7 : index
    %c3_182 = arith.constant 3 : index
    %403 = memref.load %arg2[%c7_181, %c3_182] : memref<27x8xf32, #tpu.memory_space<smem>>
    %404 = vector.broadcast %403 : f32 to vector<8x16xf32>
    %405 = arith.mulf %404, %390 : vector<8x16xf32>
    %406 = arith.addf %373, %405 : vector<8x16xf32>
    %c7_183 = arith.constant 7 : index
    %c4_184 = arith.constant 4 : index
    %407 = memref.load %arg2[%c7_183, %c4_184] : memref<27x8xf32, #tpu.memory_space<smem>>
    %408 = vector.broadcast %407 : f32 to vector<8x16xf32>
    %409 = arith.mulf %408, %390 : vector<8x16xf32>
    %410 = arith.addf %377, %409 : vector<8x16xf32>
    %c7_185 = arith.constant 7 : index
    %c5_186 = arith.constant 5 : index
    %411 = memref.load %arg2[%c7_185, %c5_186] : memref<27x8xf32, #tpu.memory_space<smem>>
    %412 = vector.broadcast %411 : f32 to vector<8x16xf32>
    %413 = arith.mulf %412, %390 : vector<8x16xf32>
    %414 = arith.addf %381, %413 : vector<8x16xf32>
    %c7_187 = arith.constant 7 : index
    %c6_188 = arith.constant 6 : index
    %415 = memref.load %arg2[%c7_187, %c6_188] : memref<27x8xf32, #tpu.memory_space<smem>>
    %416 = vector.broadcast %415 : f32 to vector<8x16xf32>
    %417 = arith.mulf %416, %390 : vector<8x16xf32>
    %418 = arith.addf %385, %417 : vector<8x16xf32>
    %c7_189 = arith.constant 7 : index
    %c7_190 = arith.constant 7 : index
    %419 = memref.load %arg2[%c7_189, %c7_190] : memref<27x8xf32, #tpu.memory_space<smem>>
    %420 = vector.broadcast %419 : f32 to vector<8x16xf32>
    %421 = arith.mulf %420, %390 : vector<8x16xf32>
    %422 = arith.addf %389, %421 : vector<8x16xf32>
    %423 = vector.extract_strided_slice %323 {offsets = [1, 0], sizes = [8, 16], strides = [1, 1]} : vector<10x18xf32> to vector<8x16xf32>
    %c10 = arith.constant 10 : index
    %c0_191 = arith.constant 0 : index
    %424 = memref.load %arg2[%c10, %c0_191] : memref<27x8xf32, #tpu.memory_space<smem>>
    %425 = vector.broadcast %424 : f32 to vector<8x16xf32>
    %426 = arith.mulf %425, %423 : vector<8x16xf32>
    %427 = arith.addf %394, %426 : vector<8x16xf32>
    %c10_192 = arith.constant 10 : index
    %c1_193 = arith.constant 1 : index
    %428 = memref.load %arg2[%c10_192, %c1_193] : memref<27x8xf32, #tpu.memory_space<smem>>
    %429 = vector.broadcast %428 : f32 to vector<8x16xf32>
    %430 = arith.mulf %429, %423 : vector<8x16xf32>
    %431 = arith.addf %398, %430 : vector<8x16xf32>
    %c10_194 = arith.constant 10 : index
    %c2_195 = arith.constant 2 : index
    %432 = memref.load %arg2[%c10_194, %c2_195] : memref<27x8xf32, #tpu.memory_space<smem>>
    %433 = vector.broadcast %432 : f32 to vector<8x16xf32>
    %434 = arith.mulf %433, %423 : vector<8x16xf32>
    %435 = arith.addf %402, %434 : vector<8x16xf32>
    %c10_196 = arith.constant 10 : index
    %c3_197 = arith.constant 3 : index
    %436 = memref.load %arg2[%c10_196, %c3_197] : memref<27x8xf32, #tpu.memory_space<smem>>
    %437 = vector.broadcast %436 : f32 to vector<8x16xf32>
    %438 = arith.mulf %437, %423 : vector<8x16xf32>
    %439 = arith.addf %406, %438 : vector<8x16xf32>
    %c10_198 = arith.constant 10 : index
    %c4_199 = arith.constant 4 : index
    %440 = memref.load %arg2[%c10_198, %c4_199] : memref<27x8xf32, #tpu.memory_space<smem>>
    %441 = vector.broadcast %440 : f32 to vector<8x16xf32>
    %442 = arith.mulf %441, %423 : vector<8x16xf32>
    %443 = arith.addf %410, %442 : vector<8x16xf32>
    %c10_200 = arith.constant 10 : index
    %c5_201 = arith.constant 5 : index
    %444 = memref.load %arg2[%c10_200, %c5_201] : memref<27x8xf32, #tpu.memory_space<smem>>
    %445 = vector.broadcast %444 : f32 to vector<8x16xf32>
    %446 = arith.mulf %445, %423 : vector<8x16xf32>
    %447 = arith.addf %414, %446 : vector<8x16xf32>
    %c10_202 = arith.constant 10 : index
    %c6_203 = arith.constant 6 : index
    %448 = memref.load %arg2[%c10_202, %c6_203] : memref<27x8xf32, #tpu.memory_space<smem>>
    %449 = vector.broadcast %448 : f32 to vector<8x16xf32>
    %450 = arith.mulf %449, %423 : vector<8x16xf32>
    %451 = arith.addf %418, %450 : vector<8x16xf32>
    %c10_204 = arith.constant 10 : index
    %c7_205 = arith.constant 7 : index
    %452 = memref.load %arg2[%c10_204, %c7_205] : memref<27x8xf32, #tpu.memory_space<smem>>
    %453 = vector.broadcast %452 : f32 to vector<8x16xf32>
    %454 = arith.mulf %453, %423 : vector<8x16xf32>
    %455 = arith.addf %422, %454 : vector<8x16xf32>
    %456 = vector.extract_strided_slice %323 {offsets = [1, 1], sizes = [8, 16], strides = [1, 1]} : vector<10x18xf32> to vector<8x16xf32>
    %c13 = arith.constant 13 : index
    %c0_206 = arith.constant 0 : index
    %457 = memref.load %arg2[%c13, %c0_206] : memref<27x8xf32, #tpu.memory_space<smem>>
    %458 = vector.broadcast %457 : f32 to vector<8x16xf32>
    %459 = arith.mulf %458, %456 : vector<8x16xf32>
    %460 = arith.addf %427, %459 : vector<8x16xf32>
    %c13_207 = arith.constant 13 : index
    %c1_208 = arith.constant 1 : index
    %461 = memref.load %arg2[%c13_207, %c1_208] : memref<27x8xf32, #tpu.memory_space<smem>>
    %462 = vector.broadcast %461 : f32 to vector<8x16xf32>
    %463 = arith.mulf %462, %456 : vector<8x16xf32>
    %464 = arith.addf %431, %463 : vector<8x16xf32>
    %c13_209 = arith.constant 13 : index
    %c2_210 = arith.constant 2 : index
    %465 = memref.load %arg2[%c13_209, %c2_210] : memref<27x8xf32, #tpu.memory_space<smem>>
    %466 = vector.broadcast %465 : f32 to vector<8x16xf32>
    %467 = arith.mulf %466, %456 : vector<8x16xf32>
    %468 = arith.addf %435, %467 : vector<8x16xf32>
    %c13_211 = arith.constant 13 : index
    %c3_212 = arith.constant 3 : index
    %469 = memref.load %arg2[%c13_211, %c3_212] : memref<27x8xf32, #tpu.memory_space<smem>>
    %470 = vector.broadcast %469 : f32 to vector<8x16xf32>
    %471 = arith.mulf %470, %456 : vector<8x16xf32>
    %472 = arith.addf %439, %471 : vector<8x16xf32>
    %c13_213 = arith.constant 13 : index
    %c4_214 = arith.constant 4 : index
    %473 = memref.load %arg2[%c13_213, %c4_214] : memref<27x8xf32, #tpu.memory_space<smem>>
    %474 = vector.broadcast %473 : f32 to vector<8x16xf32>
    %475 = arith.mulf %474, %456 : vector<8x16xf32>
    %476 = arith.addf %443, %475 : vector<8x16xf32>
    %c13_215 = arith.constant 13 : index
    %c5_216 = arith.constant 5 : index
    %477 = memref.load %arg2[%c13_215, %c5_216] : memref<27x8xf32, #tpu.memory_space<smem>>
    %478 = vector.broadcast %477 : f32 to vector<8x16xf32>
    %479 = arith.mulf %478, %456 : vector<8x16xf32>
    %480 = arith.addf %447, %479 : vector<8x16xf32>
    %c13_217 = arith.constant 13 : index
    %c6_218 = arith.constant 6 : index
    %481 = memref.load %arg2[%c13_217, %c6_218] : memref<27x8xf32, #tpu.memory_space<smem>>
    %482 = vector.broadcast %481 : f32 to vector<8x16xf32>
    %483 = arith.mulf %482, %456 : vector<8x16xf32>
    %484 = arith.addf %451, %483 : vector<8x16xf32>
    %c13_219 = arith.constant 13 : index
    %c7_220 = arith.constant 7 : index
    %485 = memref.load %arg2[%c13_219, %c7_220] : memref<27x8xf32, #tpu.memory_space<smem>>
    %486 = vector.broadcast %485 : f32 to vector<8x16xf32>
    %487 = arith.mulf %486, %456 : vector<8x16xf32>
    %488 = arith.addf %455, %487 : vector<8x16xf32>
    %489 = vector.extract_strided_slice %323 {offsets = [1, 2], sizes = [8, 16], strides = [1, 1]} : vector<10x18xf32> to vector<8x16xf32>
    %c16 = arith.constant 16 : index
    %c0_221 = arith.constant 0 : index
    %490 = memref.load %arg2[%c16, %c0_221] : memref<27x8xf32, #tpu.memory_space<smem>>
    %491 = vector.broadcast %490 : f32 to vector<8x16xf32>
    %492 = arith.mulf %491, %489 : vector<8x16xf32>
    %493 = arith.addf %460, %492 : vector<8x16xf32>
    %c16_222 = arith.constant 16 : index
    %c1_223 = arith.constant 1 : index
    %494 = memref.load %arg2[%c16_222, %c1_223] : memref<27x8xf32, #tpu.memory_space<smem>>
    %495 = vector.broadcast %494 : f32 to vector<8x16xf32>
    %496 = arith.mulf %495, %489 : vector<8x16xf32>
    %497 = arith.addf %464, %496 : vector<8x16xf32>
    %c16_224 = arith.constant 16 : index
    %c2_225 = arith.constant 2 : index
    %498 = memref.load %arg2[%c16_224, %c2_225] : memref<27x8xf32, #tpu.memory_space<smem>>
    %499 = vector.broadcast %498 : f32 to vector<8x16xf32>
    %500 = arith.mulf %499, %489 : vector<8x16xf32>
    %501 = arith.addf %468, %500 : vector<8x16xf32>
    %c16_226 = arith.constant 16 : index
    %c3_227 = arith.constant 3 : index
    %502 = memref.load %arg2[%c16_226, %c3_227] : memref<27x8xf32, #tpu.memory_space<smem>>
    %503 = vector.broadcast %502 : f32 to vector<8x16xf32>
    %504 = arith.mulf %503, %489 : vector<8x16xf32>
    %505 = arith.addf %472, %504 : vector<8x16xf32>
    %c16_228 = arith.constant 16 : index
    %c4_229 = arith.constant 4 : index
    %506 = memref.load %arg2[%c16_228, %c4_229] : memref<27x8xf32, #tpu.memory_space<smem>>
    %507 = vector.broadcast %506 : f32 to vector<8x16xf32>
    %508 = arith.mulf %507, %489 : vector<8x16xf32>
    %509 = arith.addf %476, %508 : vector<8x16xf32>
    %c16_230 = arith.constant 16 : index
    %c5_231 = arith.constant 5 : index
    %510 = memref.load %arg2[%c16_230, %c5_231] : memref<27x8xf32, #tpu.memory_space<smem>>
    %511 = vector.broadcast %510 : f32 to vector<8x16xf32>
    %512 = arith.mulf %511, %489 : vector<8x16xf32>
    %513 = arith.addf %480, %512 : vector<8x16xf32>
    %c16_232 = arith.constant 16 : index
    %c6_233 = arith.constant 6 : index
    %514 = memref.load %arg2[%c16_232, %c6_233] : memref<27x8xf32, #tpu.memory_space<smem>>
    %515 = vector.broadcast %514 : f32 to vector<8x16xf32>
    %516 = arith.mulf %515, %489 : vector<8x16xf32>
    %517 = arith.addf %484, %516 : vector<8x16xf32>
    %c16_234 = arith.constant 16 : index
    %c7_235 = arith.constant 7 : index
    %518 = memref.load %arg2[%c16_234, %c7_235] : memref<27x8xf32, #tpu.memory_space<smem>>
    %519 = vector.broadcast %518 : f32 to vector<8x16xf32>
    %520 = arith.mulf %519, %489 : vector<8x16xf32>
    %521 = arith.addf %488, %520 : vector<8x16xf32>
    %522 = vector.extract_strided_slice %323 {offsets = [2, 0], sizes = [8, 16], strides = [1, 1]} : vector<10x18xf32> to vector<8x16xf32>
    %c19 = arith.constant 19 : index
    %c0_236 = arith.constant 0 : index
    %523 = memref.load %arg2[%c19, %c0_236] : memref<27x8xf32, #tpu.memory_space<smem>>
    %524 = vector.broadcast %523 : f32 to vector<8x16xf32>
    %525 = arith.mulf %524, %522 : vector<8x16xf32>
    %526 = arith.addf %493, %525 : vector<8x16xf32>
    %c19_237 = arith.constant 19 : index
    %c1_238 = arith.constant 1 : index
    %527 = memref.load %arg2[%c19_237, %c1_238] : memref<27x8xf32, #tpu.memory_space<smem>>
    %528 = vector.broadcast %527 : f32 to vector<8x16xf32>
    %529 = arith.mulf %528, %522 : vector<8x16xf32>
    %530 = arith.addf %497, %529 : vector<8x16xf32>
    %c19_239 = arith.constant 19 : index
    %c2_240 = arith.constant 2 : index
    %531 = memref.load %arg2[%c19_239, %c2_240] : memref<27x8xf32, #tpu.memory_space<smem>>
    %532 = vector.broadcast %531 : f32 to vector<8x16xf32>
    %533 = arith.mulf %532, %522 : vector<8x16xf32>
    %534 = arith.addf %501, %533 : vector<8x16xf32>
    %c19_241 = arith.constant 19 : index
    %c3_242 = arith.constant 3 : index
    %535 = memref.load %arg2[%c19_241, %c3_242] : memref<27x8xf32, #tpu.memory_space<smem>>
    %536 = vector.broadcast %535 : f32 to vector<8x16xf32>
    %537 = arith.mulf %536, %522 : vector<8x16xf32>
    %538 = arith.addf %505, %537 : vector<8x16xf32>
    %c19_243 = arith.constant 19 : index
    %c4_244 = arith.constant 4 : index
    %539 = memref.load %arg2[%c19_243, %c4_244] : memref<27x8xf32, #tpu.memory_space<smem>>
    %540 = vector.broadcast %539 : f32 to vector<8x16xf32>
    %541 = arith.mulf %540, %522 : vector<8x16xf32>
    %542 = arith.addf %509, %541 : vector<8x16xf32>
    %c19_245 = arith.constant 19 : index
    %c5_246 = arith.constant 5 : index
    %543 = memref.load %arg2[%c19_245, %c5_246] : memref<27x8xf32, #tpu.memory_space<smem>>
    %544 = vector.broadcast %543 : f32 to vector<8x16xf32>
    %545 = arith.mulf %544, %522 : vector<8x16xf32>
    %546 = arith.addf %513, %545 : vector<8x16xf32>
    %c19_247 = arith.constant 19 : index
    %c6_248 = arith.constant 6 : index
    %547 = memref.load %arg2[%c19_247, %c6_248] : memref<27x8xf32, #tpu.memory_space<smem>>
    %548 = vector.broadcast %547 : f32 to vector<8x16xf32>
    %549 = arith.mulf %548, %522 : vector<8x16xf32>
    %550 = arith.addf %517, %549 : vector<8x16xf32>
    %c19_249 = arith.constant 19 : index
    %c7_250 = arith.constant 7 : index
    %551 = memref.load %arg2[%c19_249, %c7_250] : memref<27x8xf32, #tpu.memory_space<smem>>
    %552 = vector.broadcast %551 : f32 to vector<8x16xf32>
    %553 = arith.mulf %552, %522 : vector<8x16xf32>
    %554 = arith.addf %521, %553 : vector<8x16xf32>
    %555 = vector.extract_strided_slice %323 {offsets = [2, 1], sizes = [8, 16], strides = [1, 1]} : vector<10x18xf32> to vector<8x16xf32>
    %c22 = arith.constant 22 : index
    %c0_251 = arith.constant 0 : index
    %556 = memref.load %arg2[%c22, %c0_251] : memref<27x8xf32, #tpu.memory_space<smem>>
    %557 = vector.broadcast %556 : f32 to vector<8x16xf32>
    %558 = arith.mulf %557, %555 : vector<8x16xf32>
    %559 = arith.addf %526, %558 : vector<8x16xf32>
    %c22_252 = arith.constant 22 : index
    %c1_253 = arith.constant 1 : index
    %560 = memref.load %arg2[%c22_252, %c1_253] : memref<27x8xf32, #tpu.memory_space<smem>>
    %561 = vector.broadcast %560 : f32 to vector<8x16xf32>
    %562 = arith.mulf %561, %555 : vector<8x16xf32>
    %563 = arith.addf %530, %562 : vector<8x16xf32>
    %c22_254 = arith.constant 22 : index
    %c2_255 = arith.constant 2 : index
    %564 = memref.load %arg2[%c22_254, %c2_255] : memref<27x8xf32, #tpu.memory_space<smem>>
    %565 = vector.broadcast %564 : f32 to vector<8x16xf32>
    %566 = arith.mulf %565, %555 : vector<8x16xf32>
    %567 = arith.addf %534, %566 : vector<8x16xf32>
    %c22_256 = arith.constant 22 : index
    %c3_257 = arith.constant 3 : index
    %568 = memref.load %arg2[%c22_256, %c3_257] : memref<27x8xf32, #tpu.memory_space<smem>>
    %569 = vector.broadcast %568 : f32 to vector<8x16xf32>
    %570 = arith.mulf %569, %555 : vector<8x16xf32>
    %571 = arith.addf %538, %570 : vector<8x16xf32>
    %c22_258 = arith.constant 22 : index
    %c4_259 = arith.constant 4 : index
    %572 = memref.load %arg2[%c22_258, %c4_259] : memref<27x8xf32, #tpu.memory_space<smem>>
    %573 = vector.broadcast %572 : f32 to vector<8x16xf32>
    %574 = arith.mulf %573, %555 : vector<8x16xf32>
    %575 = arith.addf %542, %574 : vector<8x16xf32>
    %c22_260 = arith.constant 22 : index
    %c5_261 = arith.constant 5 : index
    %576 = memref.load %arg2[%c22_260, %c5_261] : memref<27x8xf32, #tpu.memory_space<smem>>
    %577 = vector.broadcast %576 : f32 to vector<8x16xf32>
    %578 = arith.mulf %577, %555 : vector<8x16xf32>
    %579 = arith.addf %546, %578 : vector<8x16xf32>
    %c22_262 = arith.constant 22 : index
    %c6_263 = arith.constant 6 : index
    %580 = memref.load %arg2[%c22_262, %c6_263] : memref<27x8xf32, #tpu.memory_space<smem>>
    %581 = vector.broadcast %580 : f32 to vector<8x16xf32>
    %582 = arith.mulf %581, %555 : vector<8x16xf32>
    %583 = arith.addf %550, %582 : vector<8x16xf32>
    %c22_264 = arith.constant 22 : index
    %c7_265 = arith.constant 7 : index
    %584 = memref.load %arg2[%c22_264, %c7_265] : memref<27x8xf32, #tpu.memory_space<smem>>
    %585 = vector.broadcast %584 : f32 to vector<8x16xf32>
    %586 = arith.mulf %585, %555 : vector<8x16xf32>
    %587 = arith.addf %554, %586 : vector<8x16xf32>
    %588 = vector.extract_strided_slice %323 {offsets = [2, 2], sizes = [8, 16], strides = [1, 1]} : vector<10x18xf32> to vector<8x16xf32>
    %c25 = arith.constant 25 : index
    %c0_266 = arith.constant 0 : index
    %589 = memref.load %arg2[%c25, %c0_266] : memref<27x8xf32, #tpu.memory_space<smem>>
    %590 = vector.broadcast %589 : f32 to vector<8x16xf32>
    %591 = arith.mulf %590, %588 : vector<8x16xf32>
    %592 = arith.addf %559, %591 : vector<8x16xf32>
    %c25_267 = arith.constant 25 : index
    %c1_268 = arith.constant 1 : index
    %593 = memref.load %arg2[%c25_267, %c1_268] : memref<27x8xf32, #tpu.memory_space<smem>>
    %594 = vector.broadcast %593 : f32 to vector<8x16xf32>
    %595 = arith.mulf %594, %588 : vector<8x16xf32>
    %596 = arith.addf %563, %595 : vector<8x16xf32>
    %c25_269 = arith.constant 25 : index
    %c2_270 = arith.constant 2 : index
    %597 = memref.load %arg2[%c25_269, %c2_270] : memref<27x8xf32, #tpu.memory_space<smem>>
    %598 = vector.broadcast %597 : f32 to vector<8x16xf32>
    %599 = arith.mulf %598, %588 : vector<8x16xf32>
    %600 = arith.addf %567, %599 : vector<8x16xf32>
    %c25_271 = arith.constant 25 : index
    %c3_272 = arith.constant 3 : index
    %601 = memref.load %arg2[%c25_271, %c3_272] : memref<27x8xf32, #tpu.memory_space<smem>>
    %602 = vector.broadcast %601 : f32 to vector<8x16xf32>
    %603 = arith.mulf %602, %588 : vector<8x16xf32>
    %604 = arith.addf %571, %603 : vector<8x16xf32>
    %c25_273 = arith.constant 25 : index
    %c4_274 = arith.constant 4 : index
    %605 = memref.load %arg2[%c25_273, %c4_274] : memref<27x8xf32, #tpu.memory_space<smem>>
    %606 = vector.broadcast %605 : f32 to vector<8x16xf32>
    %607 = arith.mulf %606, %588 : vector<8x16xf32>
    %608 = arith.addf %575, %607 : vector<8x16xf32>
    %c25_275 = arith.constant 25 : index
    %c5_276 = arith.constant 5 : index
    %609 = memref.load %arg2[%c25_275, %c5_276] : memref<27x8xf32, #tpu.memory_space<smem>>
    %610 = vector.broadcast %609 : f32 to vector<8x16xf32>
    %611 = arith.mulf %610, %588 : vector<8x16xf32>
    %612 = arith.addf %579, %611 : vector<8x16xf32>
    %c25_277 = arith.constant 25 : index
    %c6_278 = arith.constant 6 : index
    %613 = memref.load %arg2[%c25_277, %c6_278] : memref<27x8xf32, #tpu.memory_space<smem>>
    %614 = vector.broadcast %613 : f32 to vector<8x16xf32>
    %615 = arith.mulf %614, %588 : vector<8x16xf32>
    %616 = arith.addf %583, %615 : vector<8x16xf32>
    %c25_279 = arith.constant 25 : index
    %c7_280 = arith.constant 7 : index
    %617 = memref.load %arg2[%c25_279, %c7_280] : memref<27x8xf32, #tpu.memory_space<smem>>
    %618 = vector.broadcast %617 : f32 to vector<8x16xf32>
    %619 = arith.mulf %618, %588 : vector<8x16xf32>
    %620 = arith.addf %587, %619 : vector<8x16xf32>
    %c2_281 = arith.constant 2 : index
    %621 = arith.index_cast %4 : i32 to index
    %c0_282 = arith.constant 0 : index
    %622 = vector.load %arg1[%c2_281, %621, %c0_282] : memref<3x18x18xf32, #tpu.memory_space<vmem>>, vector<1x10x18xf32>
    %623 = vector.shape_cast %622 : vector<1x10x18xf32> to vector<10x18xf32>
    %624 = vector.extract_strided_slice %623 {offsets = [0, 0], sizes = [8, 16], strides = [1, 1]} : vector<10x18xf32> to vector<8x16xf32>
    %c2_283 = arith.constant 2 : index
    %c0_284 = arith.constant 0 : index
    %625 = memref.load %arg2[%c2_283, %c0_284] : memref<27x8xf32, #tpu.memory_space<smem>>
    %626 = vector.broadcast %625 : f32 to vector<8x16xf32>
    %627 = arith.mulf %626, %624 : vector<8x16xf32>
    %628 = arith.addf %592, %627 : vector<8x16xf32>
    %c2_285 = arith.constant 2 : index
    %c1_286 = arith.constant 1 : index
    %629 = memref.load %arg2[%c2_285, %c1_286] : memref<27x8xf32, #tpu.memory_space<smem>>
    %630 = vector.broadcast %629 : f32 to vector<8x16xf32>
    %631 = arith.mulf %630, %624 : vector<8x16xf32>
    %632 = arith.addf %596, %631 : vector<8x16xf32>
    %c2_287 = arith.constant 2 : index
    %c2_288 = arith.constant 2 : index
    %633 = memref.load %arg2[%c2_287, %c2_288] : memref<27x8xf32, #tpu.memory_space<smem>>
    %634 = vector.broadcast %633 : f32 to vector<8x16xf32>
    %635 = arith.mulf %634, %624 : vector<8x16xf32>
    %636 = arith.addf %600, %635 : vector<8x16xf32>
    %c2_289 = arith.constant 2 : index
    %c3_290 = arith.constant 3 : index
    %637 = memref.load %arg2[%c2_289, %c3_290] : memref<27x8xf32, #tpu.memory_space<smem>>
    %638 = vector.broadcast %637 : f32 to vector<8x16xf32>
    %639 = arith.mulf %638, %624 : vector<8x16xf32>
    %640 = arith.addf %604, %639 : vector<8x16xf32>
    %c2_291 = arith.constant 2 : index
    %c4_292 = arith.constant 4 : index
    %641 = memref.load %arg2[%c2_291, %c4_292] : memref<27x8xf32, #tpu.memory_space<smem>>
    %642 = vector.broadcast %641 : f32 to vector<8x16xf32>
    %643 = arith.mulf %642, %624 : vector<8x16xf32>
    %644 = arith.addf %608, %643 : vector<8x16xf32>
    %c2_293 = arith.constant 2 : index
    %c5_294 = arith.constant 5 : index
    %645 = memref.load %arg2[%c2_293, %c5_294] : memref<27x8xf32, #tpu.memory_space<smem>>
    %646 = vector.broadcast %645 : f32 to vector<8x16xf32>
    %647 = arith.mulf %646, %624 : vector<8x16xf32>
    %648 = arith.addf %612, %647 : vector<8x16xf32>
    %c2_295 = arith.constant 2 : index
    %c6_296 = arith.constant 6 : index
    %649 = memref.load %arg2[%c2_295, %c6_296] : memref<27x8xf32, #tpu.memory_space<smem>>
    %650 = vector.broadcast %649 : f32 to vector<8x16xf32>
    %651 = arith.mulf %650, %624 : vector<8x16xf32>
    %652 = arith.addf %616, %651 : vector<8x16xf32>
    %c2_297 = arith.constant 2 : index
    %c7_298 = arith.constant 7 : index
    %653 = memref.load %arg2[%c2_297, %c7_298] : memref<27x8xf32, #tpu.memory_space<smem>>
    %654 = vector.broadcast %653 : f32 to vector<8x16xf32>
    %655 = arith.mulf %654, %624 : vector<8x16xf32>
    %656 = arith.addf %620, %655 : vector<8x16xf32>
    %657 = vector.extract_strided_slice %623 {offsets = [0, 1], sizes = [8, 16], strides = [1, 1]} : vector<10x18xf32> to vector<8x16xf32>
    %c5_299 = arith.constant 5 : index
    %c0_300 = arith.constant 0 : index
    %658 = memref.load %arg2[%c5_299, %c0_300] : memref<27x8xf32, #tpu.memory_space<smem>>
    %659 = vector.broadcast %658 : f32 to vector<8x16xf32>
    %660 = arith.mulf %659, %657 : vector<8x16xf32>
    %661 = arith.addf %628, %660 : vector<8x16xf32>
    %c5_301 = arith.constant 5 : index
    %c1_302 = arith.constant 1 : index
    %662 = memref.load %arg2[%c5_301, %c1_302] : memref<27x8xf32, #tpu.memory_space<smem>>
    %663 = vector.broadcast %662 : f32 to vector<8x16xf32>
    %664 = arith.mulf %663, %657 : vector<8x16xf32>
    %665 = arith.addf %632, %664 : vector<8x16xf32>
    %c5_303 = arith.constant 5 : index
    %c2_304 = arith.constant 2 : index
    %666 = memref.load %arg2[%c5_303, %c2_304] : memref<27x8xf32, #tpu.memory_space<smem>>
    %667 = vector.broadcast %666 : f32 to vector<8x16xf32>
    %668 = arith.mulf %667, %657 : vector<8x16xf32>
    %669 = arith.addf %636, %668 : vector<8x16xf32>
    %c5_305 = arith.constant 5 : index
    %c3_306 = arith.constant 3 : index
    %670 = memref.load %arg2[%c5_305, %c3_306] : memref<27x8xf32, #tpu.memory_space<smem>>
    %671 = vector.broadcast %670 : f32 to vector<8x16xf32>
    %672 = arith.mulf %671, %657 : vector<8x16xf32>
    %673 = arith.addf %640, %672 : vector<8x16xf32>
    %c5_307 = arith.constant 5 : index
    %c4_308 = arith.constant 4 : index
    %674 = memref.load %arg2[%c5_307, %c4_308] : memref<27x8xf32, #tpu.memory_space<smem>>
    %675 = vector.broadcast %674 : f32 to vector<8x16xf32>
    %676 = arith.mulf %675, %657 : vector<8x16xf32>
    %677 = arith.addf %644, %676 : vector<8x16xf32>
    %c5_309 = arith.constant 5 : index
    %c5_310 = arith.constant 5 : index
    %678 = memref.load %arg2[%c5_309, %c5_310] : memref<27x8xf32, #tpu.memory_space<smem>>
    %679 = vector.broadcast %678 : f32 to vector<8x16xf32>
    %680 = arith.mulf %679, %657 : vector<8x16xf32>
    %681 = arith.addf %648, %680 : vector<8x16xf32>
    %c5_311 = arith.constant 5 : index
    %c6_312 = arith.constant 6 : index
    %682 = memref.load %arg2[%c5_311, %c6_312] : memref<27x8xf32, #tpu.memory_space<smem>>
    %683 = vector.broadcast %682 : f32 to vector<8x16xf32>
    %684 = arith.mulf %683, %657 : vector<8x16xf32>
    %685 = arith.addf %652, %684 : vector<8x16xf32>
    %c5_313 = arith.constant 5 : index
    %c7_314 = arith.constant 7 : index
    %686 = memref.load %arg2[%c5_313, %c7_314] : memref<27x8xf32, #tpu.memory_space<smem>>
    %687 = vector.broadcast %686 : f32 to vector<8x16xf32>
    %688 = arith.mulf %687, %657 : vector<8x16xf32>
    %689 = arith.addf %656, %688 : vector<8x16xf32>
    %690 = vector.extract_strided_slice %623 {offsets = [0, 2], sizes = [8, 16], strides = [1, 1]} : vector<10x18xf32> to vector<8x16xf32>
    %c8 = arith.constant 8 : index
    %c0_315 = arith.constant 0 : index
    %691 = memref.load %arg2[%c8, %c0_315] : memref<27x8xf32, #tpu.memory_space<smem>>
    %692 = vector.broadcast %691 : f32 to vector<8x16xf32>
    %693 = arith.mulf %692, %690 : vector<8x16xf32>
    %694 = arith.addf %661, %693 : vector<8x16xf32>
    %c8_316 = arith.constant 8 : index
    %c1_317 = arith.constant 1 : index
    %695 = memref.load %arg2[%c8_316, %c1_317] : memref<27x8xf32, #tpu.memory_space<smem>>
    %696 = vector.broadcast %695 : f32 to vector<8x16xf32>
    %697 = arith.mulf %696, %690 : vector<8x16xf32>
    %698 = arith.addf %665, %697 : vector<8x16xf32>
    %c8_318 = arith.constant 8 : index
    %c2_319 = arith.constant 2 : index
    %699 = memref.load %arg2[%c8_318, %c2_319] : memref<27x8xf32, #tpu.memory_space<smem>>
    %700 = vector.broadcast %699 : f32 to vector<8x16xf32>
    %701 = arith.mulf %700, %690 : vector<8x16xf32>
    %702 = arith.addf %669, %701 : vector<8x16xf32>
    %c8_320 = arith.constant 8 : index
    %c3_321 = arith.constant 3 : index
    %703 = memref.load %arg2[%c8_320, %c3_321] : memref<27x8xf32, #tpu.memory_space<smem>>
    %704 = vector.broadcast %703 : f32 to vector<8x16xf32>
    %705 = arith.mulf %704, %690 : vector<8x16xf32>
    %706 = arith.addf %673, %705 : vector<8x16xf32>
    %c8_322 = arith.constant 8 : index
    %c4_323 = arith.constant 4 : index
    %707 = memref.load %arg2[%c8_322, %c4_323] : memref<27x8xf32, #tpu.memory_space<smem>>
    %708 = vector.broadcast %707 : f32 to vector<8x16xf32>
    %709 = arith.mulf %708, %690 : vector<8x16xf32>
    %710 = arith.addf %677, %709 : vector<8x16xf32>
    %c8_324 = arith.constant 8 : index
    %c5_325 = arith.constant 5 : index
    %711 = memref.load %arg2[%c8_324, %c5_325] : memref<27x8xf32, #tpu.memory_space<smem>>
    %712 = vector.broadcast %711 : f32 to vector<8x16xf32>
    %713 = arith.mulf %712, %690 : vector<8x16xf32>
    %714 = arith.addf %681, %713 : vector<8x16xf32>
    %c8_326 = arith.constant 8 : index
    %c6_327 = arith.constant 6 : index
    %715 = memref.load %arg2[%c8_326, %c6_327] : memref<27x8xf32, #tpu.memory_space<smem>>
    %716 = vector.broadcast %715 : f32 to vector<8x16xf32>
    %717 = arith.mulf %716, %690 : vector<8x16xf32>
    %718 = arith.addf %685, %717 : vector<8x16xf32>
    %c8_328 = arith.constant 8 : index
    %c7_329 = arith.constant 7 : index
    %719 = memref.load %arg2[%c8_328, %c7_329] : memref<27x8xf32, #tpu.memory_space<smem>>
    %720 = vector.broadcast %719 : f32 to vector<8x16xf32>
    %721 = arith.mulf %720, %690 : vector<8x16xf32>
    %722 = arith.addf %689, %721 : vector<8x16xf32>
    %723 = vector.extract_strided_slice %623 {offsets = [1, 0], sizes = [8, 16], strides = [1, 1]} : vector<10x18xf32> to vector<8x16xf32>
    %c11 = arith.constant 11 : index
    %c0_330 = arith.constant 0 : index
    %724 = memref.load %arg2[%c11, %c0_330] : memref<27x8xf32, #tpu.memory_space<smem>>
    %725 = vector.broadcast %724 : f32 to vector<8x16xf32>
    %726 = arith.mulf %725, %723 : vector<8x16xf32>
    %727 = arith.addf %694, %726 : vector<8x16xf32>
    %c11_331 = arith.constant 11 : index
    %c1_332 = arith.constant 1 : index
    %728 = memref.load %arg2[%c11_331, %c1_332] : memref<27x8xf32, #tpu.memory_space<smem>>
    %729 = vector.broadcast %728 : f32 to vector<8x16xf32>
    %730 = arith.mulf %729, %723 : vector<8x16xf32>
    %731 = arith.addf %698, %730 : vector<8x16xf32>
    %c11_333 = arith.constant 11 : index
    %c2_334 = arith.constant 2 : index
    %732 = memref.load %arg2[%c11_333, %c2_334] : memref<27x8xf32, #tpu.memory_space<smem>>
    %733 = vector.broadcast %732 : f32 to vector<8x16xf32>
    %734 = arith.mulf %733, %723 : vector<8x16xf32>
    %735 = arith.addf %702, %734 : vector<8x16xf32>
    %c11_335 = arith.constant 11 : index
    %c3_336 = arith.constant 3 : index
    %736 = memref.load %arg2[%c11_335, %c3_336] : memref<27x8xf32, #tpu.memory_space<smem>>
    %737 = vector.broadcast %736 : f32 to vector<8x16xf32>
    %738 = arith.mulf %737, %723 : vector<8x16xf32>
    %739 = arith.addf %706, %738 : vector<8x16xf32>
    %c11_337 = arith.constant 11 : index
    %c4_338 = arith.constant 4 : index
    %740 = memref.load %arg2[%c11_337, %c4_338] : memref<27x8xf32, #tpu.memory_space<smem>>
    %741 = vector.broadcast %740 : f32 to vector<8x16xf32>
    %742 = arith.mulf %741, %723 : vector<8x16xf32>
    %743 = arith.addf %710, %742 : vector<8x16xf32>
    %c11_339 = arith.constant 11 : index
    %c5_340 = arith.constant 5 : index
    %744 = memref.load %arg2[%c11_339, %c5_340] : memref<27x8xf32, #tpu.memory_space<smem>>
    %745 = vector.broadcast %744 : f32 to vector<8x16xf32>
    %746 = arith.mulf %745, %723 : vector<8x16xf32>
    %747 = arith.addf %714, %746 : vector<8x16xf32>
    %c11_341 = arith.constant 11 : index
    %c6_342 = arith.constant 6 : index
    %748 = memref.load %arg2[%c11_341, %c6_342] : memref<27x8xf32, #tpu.memory_space<smem>>
    %749 = vector.broadcast %748 : f32 to vector<8x16xf32>
    %750 = arith.mulf %749, %723 : vector<8x16xf32>
    %751 = arith.addf %718, %750 : vector<8x16xf32>
    %c11_343 = arith.constant 11 : index
    %c7_344 = arith.constant 7 : index
    %752 = memref.load %arg2[%c11_343, %c7_344] : memref<27x8xf32, #tpu.memory_space<smem>>
    %753 = vector.broadcast %752 : f32 to vector<8x16xf32>
    %754 = arith.mulf %753, %723 : vector<8x16xf32>
    %755 = arith.addf %722, %754 : vector<8x16xf32>
    %756 = vector.extract_strided_slice %623 {offsets = [1, 1], sizes = [8, 16], strides = [1, 1]} : vector<10x18xf32> to vector<8x16xf32>
    %c14 = arith.constant 14 : index
    %c0_345 = arith.constant 0 : index
    %757 = memref.load %arg2[%c14, %c0_345] : memref<27x8xf32, #tpu.memory_space<smem>>
    %758 = vector.broadcast %757 : f32 to vector<8x16xf32>
    %759 = arith.mulf %758, %756 : vector<8x16xf32>
    %760 = arith.addf %727, %759 : vector<8x16xf32>
    %c14_346 = arith.constant 14 : index
    %c1_347 = arith.constant 1 : index
    %761 = memref.load %arg2[%c14_346, %c1_347] : memref<27x8xf32, #tpu.memory_space<smem>>
    %762 = vector.broadcast %761 : f32 to vector<8x16xf32>
    %763 = arith.mulf %762, %756 : vector<8x16xf32>
    %764 = arith.addf %731, %763 : vector<8x16xf32>
    %c14_348 = arith.constant 14 : index
    %c2_349 = arith.constant 2 : index
    %765 = memref.load %arg2[%c14_348, %c2_349] : memref<27x8xf32, #tpu.memory_space<smem>>
    %766 = vector.broadcast %765 : f32 to vector<8x16xf32>
    %767 = arith.mulf %766, %756 : vector<8x16xf32>
    %768 = arith.addf %735, %767 : vector<8x16xf32>
    %c14_350 = arith.constant 14 : index
    %c3_351 = arith.constant 3 : index
    %769 = memref.load %arg2[%c14_350, %c3_351] : memref<27x8xf32, #tpu.memory_space<smem>>
    %770 = vector.broadcast %769 : f32 to vector<8x16xf32>
    %771 = arith.mulf %770, %756 : vector<8x16xf32>
    %772 = arith.addf %739, %771 : vector<8x16xf32>
    %c14_352 = arith.constant 14 : index
    %c4_353 = arith.constant 4 : index
    %773 = memref.load %arg2[%c14_352, %c4_353] : memref<27x8xf32, #tpu.memory_space<smem>>
    %774 = vector.broadcast %773 : f32 to vector<8x16xf32>
    %775 = arith.mulf %774, %756 : vector<8x16xf32>
    %776 = arith.addf %743, %775 : vector<8x16xf32>
    %c14_354 = arith.constant 14 : index
    %c5_355 = arith.constant 5 : index
    %777 = memref.load %arg2[%c14_354, %c5_355] : memref<27x8xf32, #tpu.memory_space<smem>>
    %778 = vector.broadcast %777 : f32 to vector<8x16xf32>
    %779 = arith.mulf %778, %756 : vector<8x16xf32>
    %780 = arith.addf %747, %779 : vector<8x16xf32>
    %c14_356 = arith.constant 14 : index
    %c6_357 = arith.constant 6 : index
    %781 = memref.load %arg2[%c14_356, %c6_357] : memref<27x8xf32, #tpu.memory_space<smem>>
    %782 = vector.broadcast %781 : f32 to vector<8x16xf32>
    %783 = arith.mulf %782, %756 : vector<8x16xf32>
    %784 = arith.addf %751, %783 : vector<8x16xf32>
    %c14_358 = arith.constant 14 : index
    %c7_359 = arith.constant 7 : index
    %785 = memref.load %arg2[%c14_358, %c7_359] : memref<27x8xf32, #tpu.memory_space<smem>>
    %786 = vector.broadcast %785 : f32 to vector<8x16xf32>
    %787 = arith.mulf %786, %756 : vector<8x16xf32>
    %788 = arith.addf %755, %787 : vector<8x16xf32>
    %789 = vector.extract_strided_slice %623 {offsets = [1, 2], sizes = [8, 16], strides = [1, 1]} : vector<10x18xf32> to vector<8x16xf32>
    %c17 = arith.constant 17 : index
    %c0_360 = arith.constant 0 : index
    %790 = memref.load %arg2[%c17, %c0_360] : memref<27x8xf32, #tpu.memory_space<smem>>
    %791 = vector.broadcast %790 : f32 to vector<8x16xf32>
    %792 = arith.mulf %791, %789 : vector<8x16xf32>
    %793 = arith.addf %760, %792 : vector<8x16xf32>
    %c17_361 = arith.constant 17 : index
    %c1_362 = arith.constant 1 : index
    %794 = memref.load %arg2[%c17_361, %c1_362] : memref<27x8xf32, #tpu.memory_space<smem>>
    %795 = vector.broadcast %794 : f32 to vector<8x16xf32>
    %796 = arith.mulf %795, %789 : vector<8x16xf32>
    %797 = arith.addf %764, %796 : vector<8x16xf32>
    %c17_363 = arith.constant 17 : index
    %c2_364 = arith.constant 2 : index
    %798 = memref.load %arg2[%c17_363, %c2_364] : memref<27x8xf32, #tpu.memory_space<smem>>
    %799 = vector.broadcast %798 : f32 to vector<8x16xf32>
    %800 = arith.mulf %799, %789 : vector<8x16xf32>
    %801 = arith.addf %768, %800 : vector<8x16xf32>
    %c17_365 = arith.constant 17 : index
    %c3_366 = arith.constant 3 : index
    %802 = memref.load %arg2[%c17_365, %c3_366] : memref<27x8xf32, #tpu.memory_space<smem>>
    %803 = vector.broadcast %802 : f32 to vector<8x16xf32>
    %804 = arith.mulf %803, %789 : vector<8x16xf32>
    %805 = arith.addf %772, %804 : vector<8x16xf32>
    %c17_367 = arith.constant 17 : index
    %c4_368 = arith.constant 4 : index
    %806 = memref.load %arg2[%c17_367, %c4_368] : memref<27x8xf32, #tpu.memory_space<smem>>
    %807 = vector.broadcast %806 : f32 to vector<8x16xf32>
    %808 = arith.mulf %807, %789 : vector<8x16xf32>
    %809 = arith.addf %776, %808 : vector<8x16xf32>
    %c17_369 = arith.constant 17 : index
    %c5_370 = arith.constant 5 : index
    %810 = memref.load %arg2[%c17_369, %c5_370] : memref<27x8xf32, #tpu.memory_space<smem>>
    %811 = vector.broadcast %810 : f32 to vector<8x16xf32>
    %812 = arith.mulf %811, %789 : vector<8x16xf32>
    %813 = arith.addf %780, %812 : vector<8x16xf32>
    %c17_371 = arith.constant 17 : index
    %c6_372 = arith.constant 6 : index
    %814 = memref.load %arg2[%c17_371, %c6_372] : memref<27x8xf32, #tpu.memory_space<smem>>
    %815 = vector.broadcast %814 : f32 to vector<8x16xf32>
    %816 = arith.mulf %815, %789 : vector<8x16xf32>
    %817 = arith.addf %784, %816 : vector<8x16xf32>
    %c17_373 = arith.constant 17 : index
    %c7_374 = arith.constant 7 : index
    %818 = memref.load %arg2[%c17_373, %c7_374] : memref<27x8xf32, #tpu.memory_space<smem>>
    %819 = vector.broadcast %818 : f32 to vector<8x16xf32>
    %820 = arith.mulf %819, %789 : vector<8x16xf32>
    %821 = arith.addf %788, %820 : vector<8x16xf32>
    %822 = vector.extract_strided_slice %623 {offsets = [2, 0], sizes = [8, 16], strides = [1, 1]} : vector<10x18xf32> to vector<8x16xf32>
    %c20 = arith.constant 20 : index
    %c0_375 = arith.constant 0 : index
    %823 = memref.load %arg2[%c20, %c0_375] : memref<27x8xf32, #tpu.memory_space<smem>>
    %824 = vector.broadcast %823 : f32 to vector<8x16xf32>
    %825 = arith.mulf %824, %822 : vector<8x16xf32>
    %826 = arith.addf %793, %825 : vector<8x16xf32>
    %c20_376 = arith.constant 20 : index
    %c1_377 = arith.constant 1 : index
    %827 = memref.load %arg2[%c20_376, %c1_377] : memref<27x8xf32, #tpu.memory_space<smem>>
    %828 = vector.broadcast %827 : f32 to vector<8x16xf32>
    %829 = arith.mulf %828, %822 : vector<8x16xf32>
    %830 = arith.addf %797, %829 : vector<8x16xf32>
    %c20_378 = arith.constant 20 : index
    %c2_379 = arith.constant 2 : index
    %831 = memref.load %arg2[%c20_378, %c2_379] : memref<27x8xf32, #tpu.memory_space<smem>>
    %832 = vector.broadcast %831 : f32 to vector<8x16xf32>
    %833 = arith.mulf %832, %822 : vector<8x16xf32>
    %834 = arith.addf %801, %833 : vector<8x16xf32>
    %c20_380 = arith.constant 20 : index
    %c3_381 = arith.constant 3 : index
    %835 = memref.load %arg2[%c20_380, %c3_381] : memref<27x8xf32, #tpu.memory_space<smem>>
    %836 = vector.broadcast %835 : f32 to vector<8x16xf32>
    %837 = arith.mulf %836, %822 : vector<8x16xf32>
    %838 = arith.addf %805, %837 : vector<8x16xf32>
    %c20_382 = arith.constant 20 : index
    %c4_383 = arith.constant 4 : index
    %839 = memref.load %arg2[%c20_382, %c4_383] : memref<27x8xf32, #tpu.memory_space<smem>>
    %840 = vector.broadcast %839 : f32 to vector<8x16xf32>
    %841 = arith.mulf %840, %822 : vector<8x16xf32>
    %842 = arith.addf %809, %841 : vector<8x16xf32>
    %c20_384 = arith.constant 20 : index
    %c5_385 = arith.constant 5 : index
    %843 = memref.load %arg2[%c20_384, %c5_385] : memref<27x8xf32, #tpu.memory_space<smem>>
    %844 = vector.broadcast %843 : f32 to vector<8x16xf32>
    %845 = arith.mulf %844, %822 : vector<8x16xf32>
    %846 = arith.addf %813, %845 : vector<8x16xf32>
    %c20_386 = arith.constant 20 : index
    %c6_387 = arith.constant 6 : index
    %847 = memref.load %arg2[%c20_386, %c6_387] : memref<27x8xf32, #tpu.memory_space<smem>>
    %848 = vector.broadcast %847 : f32 to vector<8x16xf32>
    %849 = arith.mulf %848, %822 : vector<8x16xf32>
    %850 = arith.addf %817, %849 : vector<8x16xf32>
    %c20_388 = arith.constant 20 : index
    %c7_389 = arith.constant 7 : index
    %851 = memref.load %arg2[%c20_388, %c7_389] : memref<27x8xf32, #tpu.memory_space<smem>>
    %852 = vector.broadcast %851 : f32 to vector<8x16xf32>
    %853 = arith.mulf %852, %822 : vector<8x16xf32>
    %854 = arith.addf %821, %853 : vector<8x16xf32>
    %855 = vector.extract_strided_slice %623 {offsets = [2, 1], sizes = [8, 16], strides = [1, 1]} : vector<10x18xf32> to vector<8x16xf32>
    %c23 = arith.constant 23 : index
    %c0_390 = arith.constant 0 : index
    %856 = memref.load %arg2[%c23, %c0_390] : memref<27x8xf32, #tpu.memory_space<smem>>
    %857 = vector.broadcast %856 : f32 to vector<8x16xf32>
    %858 = arith.mulf %857, %855 : vector<8x16xf32>
    %859 = arith.addf %826, %858 : vector<8x16xf32>
    %c23_391 = arith.constant 23 : index
    %c1_392 = arith.constant 1 : index
    %860 = memref.load %arg2[%c23_391, %c1_392] : memref<27x8xf32, #tpu.memory_space<smem>>
    %861 = vector.broadcast %860 : f32 to vector<8x16xf32>
    %862 = arith.mulf %861, %855 : vector<8x16xf32>
    %863 = arith.addf %830, %862 : vector<8x16xf32>
    %c23_393 = arith.constant 23 : index
    %c2_394 = arith.constant 2 : index
    %864 = memref.load %arg2[%c23_393, %c2_394] : memref<27x8xf32, #tpu.memory_space<smem>>
    %865 = vector.broadcast %864 : f32 to vector<8x16xf32>
    %866 = arith.mulf %865, %855 : vector<8x16xf32>
    %867 = arith.addf %834, %866 : vector<8x16xf32>
    %c23_395 = arith.constant 23 : index
    %c3_396 = arith.constant 3 : index
    %868 = memref.load %arg2[%c23_395, %c3_396] : memref<27x8xf32, #tpu.memory_space<smem>>
    %869 = vector.broadcast %868 : f32 to vector<8x16xf32>
    %870 = arith.mulf %869, %855 : vector<8x16xf32>
    %871 = arith.addf %838, %870 : vector<8x16xf32>
    %c23_397 = arith.constant 23 : index
    %c4_398 = arith.constant 4 : index
    %872 = memref.load %arg2[%c23_397, %c4_398] : memref<27x8xf32, #tpu.memory_space<smem>>
    %873 = vector.broadcast %872 : f32 to vector<8x16xf32>
    %874 = arith.mulf %873, %855 : vector<8x16xf32>
    %875 = arith.addf %842, %874 : vector<8x16xf32>
    %c23_399 = arith.constant 23 : index
    %c5_400 = arith.constant 5 : index
    %876 = memref.load %arg2[%c23_399, %c5_400] : memref<27x8xf32, #tpu.memory_space<smem>>
    %877 = vector.broadcast %876 : f32 to vector<8x16xf32>
    %878 = arith.mulf %877, %855 : vector<8x16xf32>
    %879 = arith.addf %846, %878 : vector<8x16xf32>
    %c23_401 = arith.constant 23 : index
    %c6_402 = arith.constant 6 : index
    %880 = memref.load %arg2[%c23_401, %c6_402] : memref<27x8xf32, #tpu.memory_space<smem>>
    %881 = vector.broadcast %880 : f32 to vector<8x16xf32>
    %882 = arith.mulf %881, %855 : vector<8x16xf32>
    %883 = arith.addf %850, %882 : vector<8x16xf32>
    %c23_403 = arith.constant 23 : index
    %c7_404 = arith.constant 7 : index
    %884 = memref.load %arg2[%c23_403, %c7_404] : memref<27x8xf32, #tpu.memory_space<smem>>
    %885 = vector.broadcast %884 : f32 to vector<8x16xf32>
    %886 = arith.mulf %885, %855 : vector<8x16xf32>
    %887 = arith.addf %854, %886 : vector<8x16xf32>
    %888 = vector.extract_strided_slice %623 {offsets = [2, 2], sizes = [8, 16], strides = [1, 1]} : vector<10x18xf32> to vector<8x16xf32>
    %c26 = arith.constant 26 : index
    %c0_405 = arith.constant 0 : index
    %889 = memref.load %arg2[%c26, %c0_405] : memref<27x8xf32, #tpu.memory_space<smem>>
    %890 = vector.broadcast %889 : f32 to vector<8x16xf32>
    %891 = arith.mulf %890, %888 : vector<8x16xf32>
    %892 = arith.addf %859, %891 : vector<8x16xf32>
    %c26_406 = arith.constant 26 : index
    %c1_407 = arith.constant 1 : index
    %893 = memref.load %arg2[%c26_406, %c1_407] : memref<27x8xf32, #tpu.memory_space<smem>>
    %894 = vector.broadcast %893 : f32 to vector<8x16xf32>
    %895 = arith.mulf %894, %888 : vector<8x16xf32>
    %896 = arith.addf %863, %895 : vector<8x16xf32>
    %c26_408 = arith.constant 26 : index
    %c2_409 = arith.constant 2 : index
    %897 = memref.load %arg2[%c26_408, %c2_409] : memref<27x8xf32, #tpu.memory_space<smem>>
    %898 = vector.broadcast %897 : f32 to vector<8x16xf32>
    %899 = arith.mulf %898, %888 : vector<8x16xf32>
    %900 = arith.addf %867, %899 : vector<8x16xf32>
    %c26_410 = arith.constant 26 : index
    %c3_411 = arith.constant 3 : index
    %901 = memref.load %arg2[%c26_410, %c3_411] : memref<27x8xf32, #tpu.memory_space<smem>>
    %902 = vector.broadcast %901 : f32 to vector<8x16xf32>
    %903 = arith.mulf %902, %888 : vector<8x16xf32>
    %904 = arith.addf %871, %903 : vector<8x16xf32>
    %c26_412 = arith.constant 26 : index
    %c4_413 = arith.constant 4 : index
    %905 = memref.load %arg2[%c26_412, %c4_413] : memref<27x8xf32, #tpu.memory_space<smem>>
    %906 = vector.broadcast %905 : f32 to vector<8x16xf32>
    %907 = arith.mulf %906, %888 : vector<8x16xf32>
    %908 = arith.addf %875, %907 : vector<8x16xf32>
    %c26_414 = arith.constant 26 : index
    %c5_415 = arith.constant 5 : index
    %909 = memref.load %arg2[%c26_414, %c5_415] : memref<27x8xf32, #tpu.memory_space<smem>>
    %910 = vector.broadcast %909 : f32 to vector<8x16xf32>
    %911 = arith.mulf %910, %888 : vector<8x16xf32>
    %912 = arith.addf %879, %911 : vector<8x16xf32>
    %c26_416 = arith.constant 26 : index
    %c6_417 = arith.constant 6 : index
    %913 = memref.load %arg2[%c26_416, %c6_417] : memref<27x8xf32, #tpu.memory_space<smem>>
    %914 = vector.broadcast %913 : f32 to vector<8x16xf32>
    %915 = arith.mulf %914, %888 : vector<8x16xf32>
    %916 = arith.addf %883, %915 : vector<8x16xf32>
    %c26_418 = arith.constant 26 : index
    %c7_419 = arith.constant 7 : index
    %917 = memref.load %arg2[%c26_418, %c7_419] : memref<27x8xf32, #tpu.memory_space<smem>>
    %918 = vector.broadcast %917 : f32 to vector<8x16xf32>
    %919 = arith.mulf %918, %888 : vector<8x16xf32>
    %920 = arith.addf %887, %919 : vector<8x16xf32>
    %c0_420 = arith.constant 0 : index
    %c0_421 = arith.constant 0 : index
    %c0_422 = arith.constant 0 : index
    %921 = vector.load %arg7[%c0_420, %c0_421, %c0_422] : memref<8x8x16xf32, #tpu.memory_space<vmem>>, vector<1x8x16xf32>
    %922 = vector.shape_cast %921 : vector<1x8x16xf32> to vector<8x16xf32>
    %cst = arith.constant 0.000000e+00 : f32
    %923 = vector.broadcast %cst : f32 to vector<8x16xf32>
    %924 = arith.maximumf %892, %923 : vector<8x16xf32>
    %925 = arith.addf %922, %924 : vector<8x16xf32>
    %c0_423 = arith.constant 0 : index
    %c0_424 = arith.constant 0 : index
    %c0_425 = arith.constant 0 : index
    %926 = vector.load %arg7[%c0_423, %c0_424, %c0_425] : memref<8x8x16xf32, #tpu.memory_space<vmem>>, vector<1x8x16xf32>
    %927 = vector.shape_cast %926 : vector<1x8x16xf32> to vector<8x16xf32>
    %928 = vector.shape_cast %925 : vector<8x16xf32> to vector<1x8x16xf32>
    tpu.vector_store %arg7[%c0_423, %c0_424, %c0_425], %928 {strides = array<i32>} : memref<8x8x16xf32, #tpu.memory_space<vmem>>, vector<1x8x16xf32>,
    %c1_426 = arith.constant 1 : index
    %c0_427 = arith.constant 0 : index
    %c0_428 = arith.constant 0 : index
    %929 = vector.load %arg7[%c1_426, %c0_427, %c0_428] : memref<8x8x16xf32, #tpu.memory_space<vmem>>, vector<1x8x16xf32>
    %930 = vector.shape_cast %929 : vector<1x8x16xf32> to vector<8x16xf32>
    %cst_429 = arith.constant 0.000000e+00 : f32
    %931 = vector.broadcast %cst_429 : f32 to vector<8x16xf32>
    %932 = arith.maximumf %896, %931 : vector<8x16xf32>
    %933 = arith.addf %930, %932 : vector<8x16xf32>
    %c1_430 = arith.constant 1 : index
    %c0_431 = arith.constant 0 : index
    %c0_432 = arith.constant 0 : index
    %934 = vector.load %arg7[%c1_430, %c0_431, %c0_432] : memref<8x8x16xf32, #tpu.memory_space<vmem>>, vector<1x8x16xf32>
    %935 = vector.shape_cast %934 : vector<1x8x16xf32> to vector<8x16xf32>
    %936 = vector.shape_cast %933 : vector<8x16xf32> to vector<1x8x16xf32>
    tpu.vector_store %arg7[%c1_430, %c0_431, %c0_432], %936 {strides = array<i32>} : memref<8x8x16xf32, #tpu.memory_space<vmem>>, vector<1x8x16xf32>,
    %c2_433 = arith.constant 2 : index
    %c0_434 = arith.constant 0 : index
    %c0_435 = arith.constant 0 : index
    %937 = vector.load %arg7[%c2_433, %c0_434, %c0_435] : memref<8x8x16xf32, #tpu.memory_space<vmem>>, vector<1x8x16xf32>
    %938 = vector.shape_cast %937 : vector<1x8x16xf32> to vector<8x16xf32>
    %cst_436 = arith.constant 0.000000e+00 : f32
    %939 = vector.broadcast %cst_436 : f32 to vector<8x16xf32>
    %940 = arith.maximumf %900, %939 : vector<8x16xf32>
    %941 = arith.addf %938, %940 : vector<8x16xf32>
    %c2_437 = arith.constant 2 : index
    %c0_438 = arith.constant 0 : index
    %c0_439 = arith.constant 0 : index
    %942 = vector.load %arg7[%c2_437, %c0_438, %c0_439] : memref<8x8x16xf32, #tpu.memory_space<vmem>>, vector<1x8x16xf32>
    %943 = vector.shape_cast %942 : vector<1x8x16xf32> to vector<8x16xf32>
    %944 = vector.shape_cast %941 : vector<8x16xf32> to vector<1x8x16xf32>
    tpu.vector_store %arg7[%c2_437, %c0_438, %c0_439], %944 {strides = array<i32>} : memref<8x8x16xf32, #tpu.memory_space<vmem>>, vector<1x8x16xf32>,
    %c3_440 = arith.constant 3 : index
    %c0_441 = arith.constant 0 : index
    %c0_442 = arith.constant 0 : index
    %945 = vector.load %arg7[%c3_440, %c0_441, %c0_442] : memref<8x8x16xf32, #tpu.memory_space<vmem>>, vector<1x8x16xf32>
    %946 = vector.shape_cast %945 : vector<1x8x16xf32> to vector<8x16xf32>
    %cst_443 = arith.constant 0.000000e+00 : f32
    %947 = vector.broadcast %cst_443 : f32 to vector<8x16xf32>
    %948 = arith.maximumf %904, %947 : vector<8x16xf32>
    %949 = arith.addf %946, %948 : vector<8x16xf32>
    %c3_444 = arith.constant 3 : index
    %c0_445 = arith.constant 0 : index
    %c0_446 = arith.constant 0 : index
    %950 = vector.load %arg7[%c3_444, %c0_445, %c0_446] : memref<8x8x16xf32, #tpu.memory_space<vmem>>, vector<1x8x16xf32>
    %951 = vector.shape_cast %950 : vector<1x8x16xf32> to vector<8x16xf32>
    %952 = vector.shape_cast %949 : vector<8x16xf32> to vector<1x8x16xf32>
    tpu.vector_store %arg7[%c3_444, %c0_445, %c0_446], %952 {strides = array<i32>} : memref<8x8x16xf32, #tpu.memory_space<vmem>>, vector<1x8x16xf32>,
    %c4_447 = arith.constant 4 : index
    %c0_448 = arith.constant 0 : index
    %c0_449 = arith.constant 0 : index
    %953 = vector.load %arg7[%c4_447, %c0_448, %c0_449] : memref<8x8x16xf32, #tpu.memory_space<vmem>>, vector<1x8x16xf32>
    %954 = vector.shape_cast %953 : vector<1x8x16xf32> to vector<8x16xf32>
    %cst_450 = arith.constant 0.000000e+00 : f32
    %955 = vector.broadcast %cst_450 : f32 to vector<8x16xf32>
    %956 = arith.maximumf %908, %955 : vector<8x16xf32>
    %957 = arith.addf %954, %956 : vector<8x16xf32>
    %c4_451 = arith.constant 4 : index
    %c0_452 = arith.constant 0 : index
    %c0_453 = arith.constant 0 : index
    %958 = vector.load %arg7[%c4_451, %c0_452, %c0_453] : memref<8x8x16xf32, #tpu.memory_space<vmem>>, vector<1x8x16xf32>
    %959 = vector.shape_cast %958 : vector<1x8x16xf32> to vector<8x16xf32>
    %960 = vector.shape_cast %957 : vector<8x16xf32> to vector<1x8x16xf32>
    tpu.vector_store %arg7[%c4_451, %c0_452, %c0_453], %960 {strides = array<i32>} : memref<8x8x16xf32, #tpu.memory_space<vmem>>, vector<1x8x16xf32>,
    %c5_454 = arith.constant 5 : index
    %c0_455 = arith.constant 0 : index
    %c0_456 = arith.constant 0 : index
    %961 = vector.load %arg7[%c5_454, %c0_455, %c0_456] : memref<8x8x16xf32, #tpu.memory_space<vmem>>, vector<1x8x16xf32>
    %962 = vector.shape_cast %961 : vector<1x8x16xf32> to vector<8x16xf32>
    %cst_457 = arith.constant 0.000000e+00 : f32
    %963 = vector.broadcast %cst_457 : f32 to vector<8x16xf32>
    %964 = arith.maximumf %912, %963 : vector<8x16xf32>
    %965 = arith.addf %962, %964 : vector<8x16xf32>
    %c5_458 = arith.constant 5 : index
    %c0_459 = arith.constant 0 : index
    %c0_460 = arith.constant 0 : index
    %966 = vector.load %arg7[%c5_458, %c0_459, %c0_460] : memref<8x8x16xf32, #tpu.memory_space<vmem>>, vector<1x8x16xf32>
    %967 = vector.shape_cast %966 : vector<1x8x16xf32> to vector<8x16xf32>
    %968 = vector.shape_cast %965 : vector<8x16xf32> to vector<1x8x16xf32>
    tpu.vector_store %arg7[%c5_458, %c0_459, %c0_460], %968 {strides = array<i32>} : memref<8x8x16xf32, #tpu.memory_space<vmem>>, vector<1x8x16xf32>,
    %c6_461 = arith.constant 6 : index
    %c0_462 = arith.constant 0 : index
    %c0_463 = arith.constant 0 : index
    %969 = vector.load %arg7[%c6_461, %c0_462, %c0_463] : memref<8x8x16xf32, #tpu.memory_space<vmem>>, vector<1x8x16xf32>
    %970 = vector.shape_cast %969 : vector<1x8x16xf32> to vector<8x16xf32>
    %cst_464 = arith.constant 0.000000e+00 : f32
    %971 = vector.broadcast %cst_464 : f32 to vector<8x16xf32>
    %972 = arith.maximumf %916, %971 : vector<8x16xf32>
    %973 = arith.addf %970, %972 : vector<8x16xf32>
    %c6_465 = arith.constant 6 : index
    %c0_466 = arith.constant 0 : index
    %c0_467 = arith.constant 0 : index
    %974 = vector.load %arg7[%c6_465, %c0_466, %c0_467] : memref<8x8x16xf32, #tpu.memory_space<vmem>>, vector<1x8x16xf32>
    %975 = vector.shape_cast %974 : vector<1x8x16xf32> to vector<8x16xf32>
    %976 = vector.shape_cast %973 : vector<8x16xf32> to vector<1x8x16xf32>
    tpu.vector_store %arg7[%c6_465, %c0_466, %c0_467], %976 {strides = array<i32>} : memref<8x8x16xf32, #tpu.memory_space<vmem>>, vector<1x8x16xf32>,
    %c7_468 = arith.constant 7 : index
    %c0_469 = arith.constant 0 : index
    %c0_470 = arith.constant 0 : index
    %977 = vector.load %arg7[%c7_468, %c0_469, %c0_470] : memref<8x8x16xf32, #tpu.memory_space<vmem>>, vector<1x8x16xf32>
    %978 = vector.shape_cast %977 : vector<1x8x16xf32> to vector<8x16xf32>
    %cst_471 = arith.constant 0.000000e+00 : f32
    %979 = vector.broadcast %cst_471 : f32 to vector<8x16xf32>
    %980 = arith.maximumf %920, %979 : vector<8x16xf32>
    %981 = arith.addf %978, %980 : vector<8x16xf32>
    %c7_472 = arith.constant 7 : index
    %c0_473 = arith.constant 0 : index
    %c0_474 = arith.constant 0 : index
    %982 = vector.load %arg7[%c7_472, %c0_473, %c0_474] : memref<8x8x16xf32, #tpu.memory_space<vmem>>, vector<1x8x16xf32>
    %983 = vector.shape_cast %982 : vector<1x8x16xf32> to vector<8x16xf32>
    %984 = vector.shape_cast %981 : vector<8x16xf32> to vector<1x8x16xf32>
    tpu.vector_store %arg7[%c7_472, %c0_473, %c0_474], %984 {strides = array<i32>} : memref<8x8x16xf32, #tpu.memory_space<vmem>>, vector<1x8x16xf32>,
    %c1_i32 = arith.constant 1 : i32
    %985 = arith.cmpi eq, %arg0, %c1_i32 : i32
    %986 = arith.extui %985 : i1 to i32
    %c0_i32_475 = arith.constant 0 : i32
    %987 = arith.cmpi ne, %986, %c0_i32_475 : i32
    scf.if %987 {
      %c0_476 = arith.constant 0 : index
      %c0_477 = arith.constant 0 : index
      %c0_478 = arith.constant 0 : index
      %988 = vector.load %arg7[%c0_476, %c0_477, %c0_478] : memref<8x8x16xf32, #tpu.memory_space<vmem>>, vector<8x8x16xf32>
      %cst_479 = arith.constant dense<0.000000e+00> : vector<8x8xf32>
      %989 = vector.multi_reduction <add>, %988, %cst_479 [2] : vector<8x8x16xf32> to vector<8x8xf32>
      %cst_480 = arith.constant dense<0.000000e+00> : vector<8xf32>
      %990 = vector.multi_reduction <add>, %989, %cst_480 [1] : vector<8x8xf32> to vector<8xf32>
      %991 = vector.shape_cast %990 : vector<8xf32> to vector<8x1xf32>
      %cst_481 = arith.constant 3.906250e-03 : f32
      %992 = vector.broadcast %cst_481 : f32 to vector<8x1xf32>
      %993 = arith.mulf %991, %992 : vector<8x1xf32>
      %c0_482 = arith.constant 0 : index
      %c0_483 = arith.constant 0 : index
      %994 = vector.load %arg4[%c0_482, %c0_483] : memref<8x1xf32, #tpu.memory_space<vmem>>, vector<8x1xf32>
      %995 = arith.mulf %993, %994 : vector<8x1xf32>
      %cst_484 = arith.constant dense<0.000000e+00> : vector<1xf32>
      %996 = vector.multi_reduction <add>, %995, %cst_484 [0] : vector<8x1xf32> to vector<1xf32>
      %997 = vector.shape_cast %996 : vector<1xf32> to vector<1x1xf32>
      %c0_485 = arith.constant 0 : index
      %c0_486 = arith.constant 0 : index
      %998 = vector.load %arg5[%c0_485, %c0_486] : memref<1x1xf32, #tpu.memory_space<vmem>>, vector<1x1xf32>
      %999 = arith.addf %997, %998 : vector<1x1xf32>
      %cst_487 = arith.constant 0.000000e+00 : f32
      %1000 = vector.broadcast %cst_487 : f32 to vector<1x1xf32>
      %1001 = arith.subf %1000, %999 : vector<1x1xf32>
      %cst_488 = arith.constant 0.000000e+00 : f32
      %1002 = vector.broadcast %cst_488 : f32 to vector<1x1xf32>
      %1003 = arith.maximumf %1001, %1002 : vector<1x1xf32>
      %1004 = math.absf %1001 : vector<1x1xf32>
      %cst_489 = arith.constant 0.000000e+00 : f32
      %1005 = vector.broadcast %cst_489 : f32 to vector<1x1xf32>
      %1006 = arith.subf %1005, %1004 : vector<1x1xf32>
      %1007 = math.exp %1006 : vector<1x1xf32>
      %cst_490 = arith.constant 1.000000e+00 : f32
      %1008 = vector.broadcast %cst_490 : f32 to vector<1x1xf32>
      %1009 = arith.addf %1008, %1007 : vector<1x1xf32>
      %1010 = math.log %1009 : vector<1x1xf32>
      %1011 = arith.addf %1003, %1010 : vector<1x1xf32>
      %cst_491 = arith.constant 0.142857149 : f32
      %1012 = vector.broadcast %cst_491 : f32 to vector<1x1xf32>
      %1013 = arith.mulf %1011, %1012 : vector<1x1xf32>
      %c0_492 = arith.constant 0 : index
      %c0_493 = arith.constant 0 : index
      %1014 = vector.load %arg6[%c0_492, %c0_493] : memref<1x1xf32, #tpu.memory_space<vmem>>, vector<1x1xf32>
      tpu.vector_store %arg6[%c0_492, %c0_493], %1013 {strides = array<i32>} : memref<1x1xf32, #tpu.memory_space<vmem>>, vector<1x1xf32>,
    } else {
    }
    return
  }
  func.func @transform_0(%arg0: i32) -> (i32, i32, i32) {
    %c0_i32 = arith.constant 0 : i32
    %c0_i32_0 = arith.constant 0 : i32
    %c0_i32_1 = arith.constant 0 : i32
    %c0_i32_2 = arith.constant 0 : i32
    return %c0_i32, %c0_i32_0, %c0_i32_1 : i32, i32, i32
  }
  func.func @transform_1(%arg0: i32) -> (i32, i32) {
    %c0_i32 = arith.constant 0 : i32
    %c0_i32_0 = arith.constant 0 : i32
    %c0_i32_1 = arith.constant 0 : i32
    return %c0_i32, %c0_i32_0 : i32, i32
  }
  func.func @transform_2(%arg0: i32) -> i32 {
    %c0_i32 = arith.constant 0 : i32
    %c0_i32_0 = arith.constant 0 : i32
    return %c0_i32 : i32
  }
  func.func @transform_3(%arg0: i32) -> (i32, i32) {
    %c0_i32 = arith.constant 0 : i32
    %c0_i32_0 = arith.constant 0 : i32
    %c0_i32_1 = arith.constant 0 : i32
    return %c0_i32, %c0_i32_0 : i32, i32
  }
  func.func @transform_4(%arg0: i32) -> (i32, i32) {
    %c0_i32 = arith.constant 0 : i32
    %c0_i32_0 = arith.constant 0 : i32
    %c0_i32_1 = arith.constant 0 : i32
    return %c0_i32, %c0_i32_0 : i32, i32
  }
  func.func @transform_5(%arg0: i32) -> (i32, i32) {
    %c0_i32 = arith.constant 0 : i32
    %c0_i32_0 = arith.constant 0 : i32
    %c0_i32_1 = arith.constant 0 : i32
    return %c0_i32, %c0_i32_0 : i32, i32
  }
}

</mosaic_0001>

<bundles_post_ra>
// kernel: sub.1
= control target key start
LH: loop header
LB: loop body
LE: loop exit
PB: predicated region body
PF: predicated region fallthrough
CT: control target
= control target key end

     0   :  { %s34_s0 = inlined_call_operand.vmem [shape: f32[8], index: 0, kind: input, shape index: {}]   ;;  %s35_s1 = inlined_call_operand.vmem [shape: f32[8], index: 1, kind: input, shape index: {}]   ;;  %s36_s2 = inlined_call_operand.vmem [shape: f32[8], index: 2, kind: output, shape index: {}]  }
   0x1   :  { %v3_v0 = vld [vmem:[%s34_s0] sm:$0x1] }
   0x2   :  { %v4_v1 = vld [vmem:[%s35_s1] sm:$0x1] }
   0x3   :  { %v7_v2 = vsub.f32 %v3_v0, %v4_v1 }
   0x5   :  { %9 = vst [vmem:[%s36_s2] sm:$0x1] %v7_v2 }

// kernel: predictor_forward.1
= control target key start
LH: loop header
LB: loop body
LE: loop exit
PB: predicated region body
PF: predicated region fallthrough
CT: control target
= control target key end

     0   :  { %s5474_s0 = inlined_call_operand.vmem [shape: f32[3,18,18], index: 0, kind: input, shape index: {}]   ;;  %s5475_s1 = inlined_call_operand.vmem [shape: f32[27,8], index: 1, kind: input, shape index: {}]   ;;  %s5476_s2 = inlined_call_operand.vmem [shape: f32[8], index: 2, kind: input, shape index: {}]   ;;  %s5477_s3 = inlined_call_operand.vmem [shape: f32[8,1], index: 3, kind: input, shape index: {}]   ;;  %s5478_s4 = inlined_call_operand.<no memory space> [shape: f32[1,1], index: 4, kind: input, shape index: {}]   ;;  %s5479_s5 = inlined_call_operand.hbm [shape: f32[1,1], index: 5, kind: output, shape index: {}]  }
   0x1   :  { %v10_v0 = vstv %s5478_s4 }
   0x2   :  { %11 = vst [vmem:[#allocation3] sm:$0x1] %v10_v0 }
   0x3   :  { %12 = vsyncpa [#allocation6], 0 }
   0x4   :  { %13 = vsyncpa [#allocation8], 0 }
   0x5   :  { %14 = vsyncpa [#allocation5], 0  ;;  %s3159_s20 = smov 0  }
   0x6 LB: > { %s166_s23 = sshll.u32 %s5475_s1, 4  ;;  %s3168_s24 = sadd.s32 4294967295, %s3116_s20   ;;  %s3116_s20 = sphi %s3159_s20, %s20_s20   ;;  %s167_s23 = int_to_ptr.vmem [resolvable:$true] %s166_s23 }
   0x7   : > { %p2749_p0 = scmp.ge.s32.totalorder %s3116_s20, 1  ;;  %p151_p1 = scmp.lt.s32.totalorder %s3116_s20, 3 }
   0x8   : > { %p5480_p4 = scmp.eq.s32.totalorder %s3168_s24, 0  ;;  %s180_s27 = sshll.u32 %s5476_s2, 4  ;;  %s181_s27 = int_to_ptr.vmem [resolvable:$true] %s180_s27 }
   0x9   : > { %p3173_p3 = pnand %p2749_p0, %p151_p1  ;;  %s3042_s29 = scalar_lea.vmem %s167_s23, 512 }
   0xa   : > { %p3043_p7 = scmp.ne.s32.totalorder %s167_s23, %s3042_s29  ;;  %p3050_p11 = scmp.lt.s32.totalorder %s167_s23, %s167_s23 }
   0xb   : > { %s5484_s4 = scalar_select %p3173_p3, 1, 0 }
   0xc   : > { %p3002_p5 = pneg %p3173_p3  ;;  %p3051_p12 = scmp.lt.s32.totalorder %s3042_s29, %s3042_s29 }
   0xe   : > { %p3185_p6 = pnand %p5480_p4, %p3002_p5  ;;  %p3052_p13 = por %p3051_p12, %p3050_p11 }
  0x10   : > { %p3044_p8 = pneg %p3185_p6 }
  0x12   : > { %p3045_p9 = pnand %p3044_p8, %p3043_p7 }
  0x14   : > { %p3046_p10 = pneg %p3045_p9 }
  0x16   : > { %p3053_p0 = pnand %p3052_p13, %p3046_p10 }
  0x18   : > { %3056 = shalt.err (!%p3053_p0)
}
  0x19   : > { %s3118_s30 = smov [#allocation4]   ;;  %s3119_s6 = smov 128  }
  0x1a   : > { %s3120_s7 = smov 8   ;;  %s3057_s8 = scalar_lea.vmem %s181_s27, 16 }
  0x1b   : > { %3005 = dma.vmem_to_smem (!%p3185_p6), %s167_s23, 512, %s3118_s30, [#allocation6], %s3119_s6, %s3119_s6, %s3120_s7  }
  0x1c   : > { %p3058_p1 = scmp.ne.s32.totalorder %s181_s27, %s3057_s8  ;;  %p3065_p7 = scmp.lt.s32.totalorder %s181_s27, %s181_s27 }
  0x1d   : > { %p3066_p9 = scmp.lt.s32.totalorder %s3057_s8, %s3057_s8 }
  0x1e   : > { %p3060_p5 = pnand %p3058_p1, %p3044_p8 }
  0x1f   : > { %p3067_p4 = por %p3066_p9, %p3065_p7 }
  0x20   : > { %p3061_p2 = pneg %p3060_p5 }
  0x22   : > { %p3068_p3 = pnand %p3067_p4, %p3061_p2 }
  0x24   : > { %3071 = shalt.err (!%p3068_p3)
}
  0x25   : > { %s3121_s9 = smov [#allocation7]   ;;  %p5486_p10 = scmp.ne.s32.totalorder %s5484_s4, 0 }
  0x26   : > { %3008 = dma.vmem_to_smem (!%p3185_p6), %s181_s27, 16, %s3121_s9, [#allocation8]  }
  0x27   : > { %199 = sbr.rel (%p5486_p10) target bundleno = 863 (0x35f), region = 40 }
  0x2e   : > { %p5487_p11 = scmp.eq.s32.totalorder %s3168_s24, 0 }
  0x30   : > { %3103 = dma.done.wait (%p5487_p11), [#allocation6], 512   ;;  %p5488_p12 = pmov %p5487_p11 }
  0x31   : > { %p5489_p8 = pmov %p5487_p11 }
  0x32   : > { %3105 = vsyncadd (%p5488_p12), [#allocation6], 4294966784 }
  0x33   : > { %3107 = dma.done.wait (%p5489_p8), [#allocation8], 16   ;;  %p5490_p13 = pmov %p5489_p8 }
  0x35   : > { %3109 = vsyncadd (%p5490_p13), [#allocation8], 4294967280 }
  0x36   : > { %209 = sfence }
  0x37   : > { %p5491_p2 = scmp.ne.s32.totalorder %s3168_s24, 0 }
  0x38   : > { %vm226_vm0 = vcmask (!%p5491_p2), 130048   ;;  %v3122_v1 = vmov (!%p5491_p2), 0.0  }
  0x39   : > { %225 = sbr.rel (%p5491_p2) target bundleno = 64 (0x40), region = 52  ;;  %227 = vst.msk [vmem:[#allocation2] sm:$0xff] (!%p5491_p2), %vm226_vm0, %v3122_v1  ;;  %228 = vst.msk [vmem:[#allocation2 + $0x8] sm:$0xff] (!%p5491_p2), %vm226_vm0, %v3122_v1 }
  0x3a   : > { %229 = vst.msk [vmem:[#allocation2 + $0x10] sm:$0xff] (!%p5491_p2), %vm226_vm0, %v3122_v1  ;;  %230 = vst.msk [vmem:[#allocation2 + $0x18] sm:$0xff] (!%p5491_p2), %vm226_vm0, %v3122_v1 }
  0x3b   : > { %231 = vst.msk [vmem:[#allocation2 + $0x20] sm:$0xff] (!%p5491_p2), %vm226_vm0, %v3122_v1  ;;  %232 = vst.msk [vmem:[#allocation2 + $0x28] sm:$0xff] (!%p5491_p2), %vm226_vm0, %v3122_v1 }
  0x3c   : > { %233 = vst.msk [vmem:[#allocation2 + $0x30] sm:$0xff] (!%p5491_p2), %vm226_vm0, %v3122_v1  ;;  %234 = vst.msk [vmem:[#allocation2 + $0x38] sm:$0xff] (!%p5491_p2), %vm226_vm0, %v3122_v1 }
  0x40 PF: > { %s2756_s10 = sshll.u32 %s3168_s24, 3  ;;  %s2773_s14 = sld [smem:[#allocation4 + $0x182]]  ;;  %vm421_vm1 = vcmask 1046528   ;;  %vm718_vm2 = vcmask 1045504   ;;  %vm2524_vm3 = vcmask 130048  }
  0x41   : > { %s3217_s13 = scalar_lea.vmem %s5474_s0, %s2756_s10  ;;  %s2771_s15 = sld [smem:[#allocation4 + $0x180]] }
  0x42   : > { %s2774_s16 = sld [smem:[#allocation4 + $0x183]]  ;;  %s2772_s17 = sld [smem:[#allocation4 + $0x181]]  ;;  %v3220_v2 = vld [vmem:[%s3217_s13] sm:$0xff]  ;;  %v3259_v29 = vld [vmem:[%s3217_s13 + $0x8] sm:$0x3] }
  0x43   : > { %s2776_s18 = sld [smem:[#allocation4 + $0x185]]  ;;  %s2775_s19 = sld [smem:[#allocation4 + $0x184]] }
  0x44   : > { %s2778_s21 = sld [smem:[#allocation4 + $0x187]]  ;;  %s2777_s22 = sld [smem:[#allocation4 + $0x186]] }
  0x45   : > { %s5482_s23 = smov 127   ;;  %s2780_s4 = sld [smem:[#allocation4 + $0x301]] }
  0x46   : > { %v304_v3 = vstv %s2773_s14  ;;  %s2779_s25 = sld [smem:[#allocation4 + $0x300]]  ;;  %s2782_s26 = sld [smem:[#allocation4 + $0x303]] }
  0x47   : > { %v305_v4 = vmul.f32 %v304_v3, %v3220_v2  ;;  %v288_v5 = vstv %s2771_s15  ;;  %s2781_s27 = sld [smem:[#allocation4 + $0x302]]  ;;  %s2784_s28 = sld [smem:[#allocation4 + $0x305]] }
  0x48   : > { %v312_v6 = vstv %s2774_s16  ;;  %v289_v7 = vmul.f32 %v288_v5, %v3220_v2  ;;  %v296_v8 = vstv %s2772_s17  ;;  %s2783_s29 = sld [smem:[#allocation4 + $0x304]]  ;;  %s3236_s30 = sld [smem:[#allocation4 + $0x601]] }
  0x49   : > { %307 = vrot.lane.b32.xlu1 %v305_v4, %s5482_s23  ;;  %v313_v9 = vmul.f32 %v312_v6, %v3220_v2  ;;  %v297_v10 = vmul.f32 %v296_v8, %v3220_v2  ;;  %v328_v11 = vstv %s2776_s18  ;;  %v320_v12 = vstv %s2775_s19  ;;  %s3238_s6 = sld [smem:[#allocation4 + $0x600]]  ;;  %s3242_s7 = sld [smem:[#allocation4 + $0x307]] }
  0x4a   : > { %291 = vrot.lane.b32.xlu0 %v289_v7, %s5482_s23  ;;  %v329_v13 = vmul.f32 %v328_v11, %v3220_v2  ;;  %v321_v14 = vmul.f32 %v320_v12, %v3220_v2  ;;  %v344_v15 = vstv %s2778_s21  ;;  %v336_v16 = vstv %s2777_s22  ;;  %s3246_s8 = sld [smem:[#allocation4 + $0x603]]  ;;  %s3248_s9 = sld [smem:[#allocation4 + $0x306]] }
  0x4b   : > { %v345_v17 = vmul.f32 %v344_v15, %v3220_v2  ;;  %v337_v18 = vmul.f32 %v336_v16, %v3220_v2  ;;  %v360_v19 = vstv %s2780_s4  ;;  %s3250_s10 = sld [smem:[#allocation4 + $0x602]]  ;;  %s3124_s11 = smov 126  }
  0x4c   : > { %v352_v20 = vstv %s2779_s25  ;;  %v361_v21 = vmul.f32 %v360_v19, %v3220_v2  ;;  %v376_v23 = vstv %s2782_s26  ;;  %s3254_s12 = sld [smem:[#allocation4 + $0x605]]  ;;  %s3263_s14 = sld [smem:[#allocation4 + $0x604]] }
  0x4d   : > { %315 = vrot.lane.b32.xlu1 %v313_v9, %s5482_s23  ;;  %v353_v22 = vmul.f32 %v352_v20, %v3220_v2  ;;  %v368_v24 = vstv %s2781_s27  ;;  %v377_v25 = vmul.f32 %v376_v23, %v3220_v2  ;;  %v392_v27 = vstv %s2784_s28  ;;  %s3269_s15 = sld [smem:[#allocation4 + $0x607]]  ;;  %s3279_s16 = sld [smem:[#allocation4 + $0x606]] }
  0x4e   : > { %299 = vrot.lane.b32.xlu0 %v297_v10, %s5482_s23  ;;  %v369_v26 = vmul.f32 %v368_v24, %v3220_v2  ;;  %v384_v28 = vstv %s2783_s29  ;;  %v518_v30 = vstv %s3236_s30  ;;  %v393_v32 = vmul.f32 %v392_v27, %v3220_v2  ;;  %s3286_s17 = sld [smem:[#allocation4 + $0x781]]  ;;  %s3290_s18 = sld [smem:[#allocation4 + $0x780]] }
  0x4f   : > { %v505_v31 = vstv %s3238_s6  ;;  %v385_v33 = vmul.f32 %v384_v28, %v3220_v2  ;;  %v408_v34 = vstv %s3242_s7  ;;  %v519_v35 = vmul.f32 %v518_v30, %v3220_v2  ;;  %s3304_s19 = sld [smem:[#allocation4 + $0x783]]  ;;  %s3306_s21 = sld [smem:[#allocation4 + $0x782]] }
  0x50   : > { %v520_v36 = vmul.f32 %v518_v30, %v3259_v29  ;;  %v506_v37 = vmul.f32 %v505_v31, %v3220_v2  ;;  %v544_v38 = vstv %s3246_s8  ;;  %v400_v39 = vstv %s3248_s9  ;;  %s3316_s22 = sld [smem:[#allocation4 + $0x785]]  ;;  %s3321_s4 = sld [smem:[#allocation4 + $0x784]] }
  0x51   : > { %331 = vrot.lane.b32.xlu1 %v329_v13, %s5482_s23  ;;  %v507_v40 = vmul.f32 %v505_v31, %v3259_v29  ;;  %v531_v41 = vstv %s3250_s10  ;;  %v409_v42 = vmul.f32 %v408_v34, %v3220_v2  ;;  %v545_v43 = vmul.f32 %v544_v38, %v3220_v2  ;;  %s3328_s25 = sld [smem:[#allocation4 + $0x787]]  ;;  %s3335_s26 = sld [smem:[#allocation4 + $0x786]] }
  0x52   : > { %323 = vrot.lane.b32.xlu0 %v321_v14, %s5482_s23  ;;  %v546_v44 = vmul.f32 %v544_v38, %v3259_v29  ;;  %v570_v45 = vstv %s3254_s12  ;;  %v401_v46 = vmul.f32 %v400_v39, %v3220_v2  ;;  %v523_v47 = vrot.slane %v519_v35, 1  ;;  %s3339_s27 = sld [smem:[#allocation4 + $0xa81]]  ;;  %s3346_s28 = sld [smem:[#allocation4 + $0xa80]] }
  0x53   : > { %v524_v48 = vrot.slane %v520_v36, 1  ;;  %v510_v49 = vrot.slane %v506_v37, 1  ;;  %v511_v50 = vrot.slane %v507_v40, 1  ;;  %v532_v51 = vmul.f32 %v531_v41, %v3220_v2  ;;  %s3358_s29 = sld [smem:[#allocation4 + $0xa83]]  ;;  %s3363_s30 = sld [smem:[#allocation4 + $0xa82]] }
  0x54   : > { %v533_v52 = vmul.f32 %v531_v41, %v3259_v29  ;;  %v557_v53 = vstv %s3263_s14  ;;  %v571_v54 = vmul.f32 %v570_v45, %v3220_v2  ;;  %v549_v55 = vrot.slane %v545_v43, 1  ;;  %s3365_s6 = sld [smem:[#allocation4 + $0xa85]]  ;;  %s3369_s7 = sld [smem:[#allocation4 + $0xa84]] }
  0x55   : > { %347 = vrot.lane.b32.xlu1 %v345_v17, %s5482_s23  ;;  %v550_v56 = vrot.slane %v546_v44, 1  ;;  %v572_v57 = vmul.f32 %v570_v45, %v3259_v29  ;;  %v596_v58 = vstv %s3269_s15  ;;  %v525_v59 = vsel %vm421_vm1, %v523_v47, %v524_v48  ;;  %s3377_s8 = sld [smem:[#allocation4 + $0xa87]]  ;;  %s3383_s9 = sld [smem:[#allocation4 + $0xa86]] }
  0x56   : > { %339 = vrot.lane.b32.xlu0 %v337_v18, %s5482_s23  ;;  %v558_v60 = vmul.f32 %v557_v53, %v3220_v2  ;;  %v559_v61 = vmul.f32 %v557_v53, %v3259_v29  ;;  %v512_v62 = vsel %vm421_vm1, %v510_v49, %v511_v50  ;;  %v536_v63 = vrot.slane %v532_v51, 1  ;;  %s3399_s10 = sld [smem:[#allocation4 + $0xc01]]  ;;  %s3406_s12 = sld [smem:[#allocation4 + $0xc00]] }
  0x57   : > { %v537_v0 = vrot.slane %v533_v52, 1  ;;  %v597_v1 = vmul.f32 %v596_v58, %v3220_v2  ;;  %v598_v3 = vmul.f32 %v596_v58, %v3259_v29  ;;  %v583_v4 = vstv %s3279_s16  ;;  %s3412_s14 = sld [smem:[#allocation4 + $0xc03]]  ;;  %s3416_s15 = sld [smem:[#allocation4 + $0xc02]] }
  0x58   : > { %v551_v5 = vsel %vm421_vm1, %v549_v55, %v550_v56  ;;  %v575_v6 = vrot.slane %v571_v54, 1  ;;  %v576_v7 = vrot.slane %v572_v57, 1  ;;  %v562_v8 = vrot.slane %v558_v60, 1  ;;  %s3418_s16 = sld [smem:[#allocation4 + $0xc05]]  ;;  %p2985_p3 = scmp.ne.s32.totalorder %s3168_s24, 1 }
  0x59   : > { %363 = vrot.lane.b32.xlu1 %v361_v21, %s3124_s11  ;;  %v563_v9 = vrot.slane %v559_v61, 1  ;;  %v622_v10 = vstv %s3286_s17  ;;  %v609_v11 = vstv %s3290_s18  ;;  %v538_v12 = vsel %vm421_vm1, %v536_v63, %v537_v0  ;;  %s3424_s17 = sld [smem:[#allocation4 + $0xc04]]  ;;  %s3427_s18 = sld [smem:[#allocation4 + $0xc07]] }
  0x5a   : > { %355 = vrot.lane.b32.xlu0 %v353_v22, %s3124_s11  ;;  %v584_v13 = vmul.f32 %v583_v4, %v3220_v2  ;;  %v585_v14 = vmul.f32 %v583_v4, %v3259_v29  ;;  %v601_v15 = vrot.slane %v597_v1, 1  ;;  %v602_v16 = vrot.slane %v598_v3, 1 }
  0x5b   : > { %v623_v17 = vmul.f32 %v622_v10, %v3220_v2  ;;  %v624_v18 = vmul.f32 %v622_v10, %v3259_v29  ;;  %v610_v19 = vmul.f32 %v609_v11, %v3220_v2  ;;  %v611_v20 = vmul.f32 %v609_v11, %v3259_v29 }
  0x5c   : > { %v577_v21 = vsel %vm421_vm1, %v575_v6, %v576_v7  ;;  %v564_v22 = vsel %vm421_vm1, %v562_v8, %v563_v9  ;;  %v588_v23 = vrot.slane %v584_v13, 1  ;;  %v589_v24 = vrot.slane %v585_v14, 1 }
  0x5d   : > { %379 = vrot.lane.b32.xlu1 %v377_v25, %s3124_s11  ;;  %v648_v25 = vstv %s3304_s19  ;;  %v603_v27 = vsel %vm421_vm1, %v601_v15, %v602_v16  ;;  %v627_v28 = vrot.slane %v623_v17, 1  ;;  %v628_v30 = vrot.slane %v624_v18, 1  ;;  %s3437_s19 = sld [smem:[#allocation4 + $0xc06]] }
  0x5e   : > { %371 = vrot.lane.b32.xlu0 %v369_v26, %s3124_s11  ;;  %v635_v26 = vstv %s3306_s21  ;;  %v614_v31 = vrot.slane %v610_v19, 1  ;;  %v650_v34 = vmul.f32 %v648_v25, %v3259_v29  ;;  %v674_v36 = vstv %s3316_s22  ;;  %s3450_s21 = sld [smem:[#allocation4 + $0x201]]  ;;  %s3452_s22 = sld [smem:[#allocation4 + $0x200]] }
  0x5f   : > { %v636_v35 = vmul.f32 %v635_v26, %v3220_v2  ;;  %v590_v37 = vsel %vm421_vm1, %v588_v23, %v589_v24  ;;  %v637_v38 = vmul.f32 %v635_v26, %v3259_v29  ;;  %v661_v39 = vstv %s3321_s4  ;;  %s3459_s4 = sld [smem:[#allocation4 + $0x203]] }
  0x60   : > { %v629_v40 = vsel %vm421_vm1, %v627_v28, %v628_v30  ;;  %v700_v43 = vstv %s3328_s25  ;;  %v654_v45 = vrot.slane %v650_v34, 1  ;;  %v676_v47 = vmul.f32 %v674_v36, %v3259_v29  ;;  %s3461_s25 = sld [smem:[#allocation4 + $0x202]] }
  0x61   : > { %395 = vrot.lane.b32.xlu1 %v393_v32, %s3124_s11  ;;  %v615_v32 = vrot.slane %v611_v20, 1  ;;  %v641_v48 = vrot.slane %v637_v38, 1  ;;  %v662_v49 = vmul.f32 %v661_v39, %v3220_v2  ;;  %v663_v50 = vmul.f32 %v661_v39, %v3259_v29 }
  0x62   : > { %387 = vrot.lane.b32.xlu0 %v385_v33, %s3124_s11  ;;  %v649_v33 = vmul.f32 %v648_v25, %v3220_v2  ;;  %v687_v51 = vstv %s3335_s26  ;;  %v701_v52 = vmul.f32 %v700_v43, %v3220_v2  ;;  %v702_v53 = vmul.f32 %v700_v43, %v3259_v29  ;;  %s3467_s26 = sld [smem:[#allocation4 + $0x205]] }
  0x63   : > { %v616_v41 = vsel %vm421_vm1, %v614_v31, %v615_v32  ;;  %v815_v55 = vstv %s3339_s27  ;;  %v680_v57 = vrot.slane %v676_v47, 1  ;;  %v688_v58 = vmul.f32 %v687_v51, %v3220_v2  ;;  %s3469_s27 = sld [smem:[#allocation4 + $0x204]] }
  0x64   : > { %v653_v44 = vrot.slane %v649_v33, 1  ;;  %v666_v61 = vrot.slane %v662_v49, 1  ;;  %v689_v63 = vmul.f32 %v687_v51, %v3259_v29  ;;  %v705_v0 = vrot.slane %v701_v52, 1 }
  0x65   : > { %411 = vrot.lane.b32.xlu1 %v409_v42, %s3124_s11  ;;  %v675_v42 = vmul.f32 %v674_v36, %v3220_v2  ;;  %v706_v1 = vrot.slane %v702_v53, 1  ;;  %v816_v3 = vmul.f32 %v815_v55, %v3220_v2  ;;  %v817_v4 = vmul.f32 %v815_v55, %v3259_v29 }
  0x66   : > { %403 = vrot.lane.b32.xlu0 %v401_v46, %s3124_s11  ;;  %v640_v46 = vrot.slane %v636_v35, 1  ;;  %v655_v56 = vsel %vm421_vm1, %v653_v44, %v654_v45  ;;  %v692_v8 = vrot.slane %v688_v58, 1  ;;  %v841_v9 = vstv %s3358_s29  ;;  %s3475_s29 = sld [smem:[#allocation4 + $0x206]] }
  0x67   : > { %v679_v54 = vrot.slane %v675_v42, 1  ;;  %v693_v11 = vrot.slane %v689_v63, 1  ;;  %v867_v13 = vstv %s3365_s6  ;;  %v707_v14 = vsel %vm421_vm1, %v705_v0, %v706_v1  ;;  %s3483_s6 = sld [smem:[#allocation4 + $0x2]] }
  0x68   : > { %v642_v60 = vsel %vm421_vm1, %v640_v46, %v641_v48  ;;  %v820_v15 = vrot.slane %v816_v3, 2  ;;  %v821_v16 = vrot.slane %v817_v4, 2  ;;  %v854_v17 = vstv %s3369_s7  ;;  %s3487_s7 = sld [smem:[#allocation4]] }
  0x69   : > { %526 = vrot.lane.b32.xlu1 %v525_v59, %s5482_s23  ;;  %v802_v59 = vstv %s3346_s28  ;;  %v681_v7 = vsel %vm421_vm1, %v679_v54, %v680_v57  ;;  %v842_v20 = vmul.f32 %v841_v9, %v3220_v2  ;;  %v868_v24 = vmul.f32 %v867_v13, %v3220_v2  ;;  %s3473_s28 = sld [smem:[#allocation4 + $0x207]] }
  0x6a   : > { %513 = vrot.lane.b32.xlu0 %v512_v62, %s5482_s23  ;;  %v667_v62 = vrot.slane %v663_v50, 1  ;;  %v804_v6 = vmul.f32 %v802_v59, %v3259_v29  ;;  %v893_v25 = vstv %s3377_s8  ;;  %v694_v26 = vsel %vm421_vm1, %v692_v8, %v693_v11  ;;  %s3492_s8 = sld [smem:[#allocation4 + $0x380]] }
  0x6b   : > { %v855_v28 = vmul.f32 %v854_v17, %v3220_v2  ;;  %v856_v30 = vmul.f32 %v854_v17, %v3259_v29  ;;  %v822_v31 = vsel %vm718_vm2, %v820_v15, %v821_v16  ;;  %v880_v32 = vstv %s3383_s9  ;;  %s3495_s9 = sld [smem:[#allocation7 + $0x2]] }
  0x6c   : > { %v668_v10 = vsel %vm421_vm1, %v666_v61, %v667_v62  ;;  %v808_v19 = vrot.slane %v804_v6, 2  ;;  %v846_v34 = vrot.slane %v842_v20, 2  ;;  %v894_v35 = vmul.f32 %v893_v25, %v3220_v2 }
  0x6d   : > { %552 = vrot.lane.b32.xlu1 %v551_v5, %s5482_s23  ;;  %v803_v5 = vmul.f32 %v802_v59, %v3220_v2  ;;  %v895_v36 = vmul.f32 %v893_v25, %v3259_v29  ;;  %v859_v42 = vrot.slane %v855_v28, 2  ;;  %v860_v43 = vrot.slane %v856_v30, 2  ;;  %v3490_v25 = vld [vmem:[%s3217_s13 + $0x18] sm:$0xff] }
  0x6e   : > { %539 = vrot.lane.b32.xlu0 %v538_v12, %s5482_s23  ;;  %v828_v12 = vstv %s3363_s30  ;;  %v881_v44 = vmul.f32 %v880_v32, %v3220_v2  ;;  %v898_v45 = vrot.slane %v894_v35, 2  ;;  %v882_v47 = vmul.f32 %v880_v32, %v3259_v29  ;;  %s3481_s30 = sld [smem:[#allocation4 + $0x381]] }
  0x6f   : > { %v807_v18 = vrot.slane %v803_v5, 2  ;;  %v830_v23 = vmul.f32 %v828_v12, %v3259_v29  ;;  %v899_v46 = vrot.slane %v895_v36, 2  ;;  %v919_v48 = vstv %s3399_s10  ;;  %s3497_s10 = sld [smem:[#allocation4 + $0x3]] }
  0x70   : > { %v906_v51 = vstv %s3406_s12  ;;  %v861_v53 = vsel %vm718_vm2, %v859_v42, %v860_v43  ;;  %v885_v54 = vrot.slane %v881_v44, 2  ;;  %v945_v55 = vstv %s3412_s14  ;;  %s3502_s12 = sld [smem:[#allocation4 + $0x383]]  ;;  %s3504_s14 = sld [smem:[#allocation4 + $0x382]] }
  0x71   : > { %578 = vrot.lane.b32.xlu1 %v577_v21, %s5482_s23  ;;  %v843_v21 = vmul.f32 %v841_v9, %v3259_v29  ;;  %v809_v33 = vsel %vm718_vm2, %v807_v18, %v808_v19  ;;  %v834_v39 = vrot.slane %v830_v23, 2  ;;  %v921_v57 = vmul.f32 %v919_v48, %v3259_v29 }
  0x72   : > { %565 = vrot.lane.b32.xlu0 %v564_v22, %s5482_s23  ;;  %v829_v22 = vmul.f32 %v828_v12, %v3220_v2  ;;  %v932_v58 = vstv %s3416_s15  ;;  %v971_v59 = vstv %s3418_s16  ;;  %v886_v61 = vrot.slane %v882_v47, 2  ;;  %s3511_s15 = sld [smem:[#allocation7]]  ;;  %s3513_s16 = sld [smem:[#allocation7 + $0x3]] }
  0x73   : > { %v907_v62 = vmul.f32 %v906_v51, %v3220_v2  ;;  %v958_v63 = vstv %s3424_s17  ;;  %v908_v0 = vmul.f32 %v906_v51, %v3259_v29  ;;  %v946_v1 = vmul.f32 %v945_v55, %v3220_v2  ;;  %s3519_s17 = sld [smem:[#allocation7 + $0x1]] }
  0x74   : > { %v833_v38 = vrot.slane %v829_v22, 2  ;;  %v947_v3 = vmul.f32 %v945_v55, %v3259_v29  ;;  %v997_v4 = vstv %s3427_s18  ;;  %v933_v5 = vmul.f32 %v932_v58, %v3220_v2  ;;  %s3521_s18 = sld [smem:[#allocation4 + $0x1]] }
  0x75   : > { %604 = vrot.lane.b32.xlu1 %v603_v27, %s5482_s23  ;;  %v869_v27 = vmul.f32 %v867_v13, %v3259_v29  ;;  %v934_v6 = vmul.f32 %v932_v58, %v3259_v29  ;;  %v973_v8 = vmul.f32 %v971_v59, %v3259_v29  ;;  %v959_v11 = vmul.f32 %v958_v63, %v3220_v2 }
  0x76   : > { %591 = vrot.lane.b32.xlu0 %v590_v37, %s5482_s23  ;;  %v847_v37 = vrot.slane %v843_v21, 2  ;;  %v835_v50 = vsel %vm718_vm2, %v833_v38, %v834_v39  ;;  %v960_v12 = vmul.f32 %v958_v63, %v3259_v29  ;;  %v887_v13 = vsel %vm718_vm2, %v885_v54, %v886_v61 }
  0x77   : > { %v998_v15 = vmul.f32 %v997_v4, %v3220_v2  ;;  %v999_v16 = vmul.f32 %v997_v4, %v3259_v29  ;;  %v912_v17 = vrot.slane %v908_v0, 2  ;;  %v950_v18 = vrot.slane %v946_v1, 2 }
  0x78   : > { %v848_v49 = vsel %vm718_vm2, %v846_v34, %v847_v37  ;;  %v951_v19 = vrot.slane %v947_v3, 2  ;;  %v984_v20 = vstv %s3437_s19  ;;  %v937_v21 = vrot.slane %v933_v5, 2  ;;  %s3529_s19 = sld [smem:[#allocation4 + $0x385]] }
  0x79   : > { %630 = vrot.lane.b32.xlu1 %v629_v40, %s3124_s11  ;;  %v872_v40 = vrot.slane %v868_v24, 2  ;;  %v938_v22 = vrot.slane %v934_v6, 2  ;;  %v977_v24 = vrot.slane %v973_v8, 2  ;;  %v964_v28 = vrot.slane %v960_v12, 2 }
  0x7a   : > { %617 = vrot.lane.b32.xlu0 %v616_v41, %s3124_s11  ;;  %v873_v41 = vrot.slane %v869_v27, 2  ;;  %v963_v27 = vrot.slane %v959_v11, 2  ;;  %v1002_v30 = vrot.slane %v998_v15, 2  ;;  %v985_v32 = vmul.f32 %v984_v20, %v3220_v2 }
  0x7b   : > { %v952_v35 = vsel %vm718_vm2, %v950_v18, %v951_v19  ;;  %v986_v36 = vmul.f32 %v984_v20, %v3259_v29  ;;  %v1046_v37 = vstv %s3452_s22  ;;  %v939_v38 = vsel %vm718_vm2, %v937_v21, %v938_v22  ;;  %s3541_s22 = sld [smem:[#allocation7 + $0x5]] }
  0x7c   : > { %v874_v52 = vsel %vm718_vm2, %v872_v40, %v873_v41  ;;  %v1070_v40 = vstv %s3459_s4  ;;  %v1062_v41 = vstv %s3461_s25  ;;  %v965_v42 = vsel %vm718_vm2, %v963_v27, %v964_v28  ;;  %s3543_s4 = sld [smem:[#allocation4 + $0x5]]  ;;  %s3553_s25 = sld [smem:[#allocation4 + $0x4]] }
  0x7d   : > { %656 = vrot.lane.b32.xlu1 %v655_v56, %s3124_s11  ;;  %v920_v56 = vmul.f32 %v919_v48, %v3220_v2  ;;  %v1086_v44 = vstv %s3467_s26  ;;  %v989_v47 = vrot.slane %v985_v32, 2  ;;  %v3538_v48 = vmul.f32 %v3490_v25, %v1046_v37  ;;  %s3555_s26 = sld [smem:[#allocation4 + $0x7]]  ;;  %v3648_v32 = vld [vmem:[%s3217_s13 + $0x20] sm:$0x3] }
  0x7e   : > { %643 = vrot.lane.b32.xlu0 %v642_v60, %s3124_s11  ;;  %v900_v60 = vsel %vm718_vm2, %v898_v45, %v899_v46  ;;  %v1078_v45 = vstv %s3469_s27  ;;  %v3547_v51 = vmul.f32 %v3490_v25, %v1070_v40  ;;  %v3558_v54 = vmul.f32 %v3490_v25, %v1086_v44  ;;  %s3565_s27 = sld [smem:[#allocation4 + $0x6]] }
  0x7f   : > { %v924_v9 = vrot.slane %v920_v56, 2  ;;  %v3561_v55 = vmul.f32 %v3490_v25, %v1078_v45  ;;  %v1102_v56 = vstv %s3473_s28  ;;  %v1118_v58 = vstv %s3481_s30  ;;  %s3582_s28 = sld [smem:[#allocation4 + $0x387]]  ;;  %s3595_s30 = sld [smem:[#allocation4 + $0x386]] }
  0x80   : > { %v268_v61 = vstv %s3497_s10  ;;  %v1134_v0 = vstv %s3502_s12  ;;  %v1126_v1 = vstv %s3504_s14  ;;  %v3589_v4 = vmul.f32 %v3490_v25, %v1102_v56  ;;  %s3629_s10 = sld [smem:[#allocation4 + $0x682]]  ;;  %s3636_s12 = sld [smem:[#allocation4 + $0x685]] }
  0x81   : > { %682 = vrot.lane.b32.xlu1 %v681_v7, %s3124_s11  ;;  %v972_v7 = vmul.f32 %v971_v59, %v3220_v2  ;;  %v1110_v59 = vstv %s3492_s8  ;;  %v237_v6 = vstv %s3511_s15  ;;  %s3605_s8 = sld [smem:[#allocation7 + $0x7]]  ;;  %v3612_v12 = vmul.f32 %v3490_v25, %v1134_v0  ;;  %s3638_s14 = sld [smem:[#allocation4 + $0x684]] }
  0x82   : > { %669 = vrot.lane.b32.xlu0 %v668_v10, %s3124_s11  ;;  %v925_v10 = vrot.slane %v921_v57, 2  ;;  %v1094_v57 = vstv %s3475_s29  ;;  %s3584_s29 = sld [smem:[#allocation4 + $0x683]]  ;;  %v3601_v8 = vmul.f32 %v3490_v25, %v1110_v59  ;;  %v276_v18 = vstv %s3543_s4  ;;  %s3651_s15 = sld [smem:[#allocation4 + $0x687]] }
  0x83   : > { %v976_v23 = vrot.slane %v972_v7, 2  ;;  %v3592_v5 = vmul.f32 %v3490_v25, %v1094_v57  ;;  %v3598_v7 = vmul.f32 %v3490_v25, %v1118_v58  ;;  %v239_v19 = vstv %s3519_s17  ;;  %s3661_s17 = sld [smem:[#allocation4 + $0x801]]  ;;  %s3741_s4 = sld [smem:[#allocation4 + $0x802]] }
  0x84   : > { %v247_v21 = vstv %s3541_s22  ;;  %v272_v22 = vstv %s3553_s25  ;;  %s3733_s22 = sld [smem:[#allocation4 + $0x803]]  ;;  %vm2639_vm4 = vcmask (!%p2985_p3), 1041409   ;;  %vm2641_vm5 = vcmask (!%p2985_p3), 1042434  }
  0x85   : > { %708 = vrot.lane.b32.xlu1 %v707_v14, %s3124_s11  ;;  %v911_v14 = vrot.slane %v907_v62, 2  ;;  %v978_v39 = vsel %vm718_vm2, %v976_v23, %v977_v24  ;;  %v241_v62 = vstv %s3495_s9  ;;  %s3607_s9 = sld [smem:[#allocation7 + $0x6]]  ;;  %v284_v24 = vstv %s3555_s26  ;;  %s3747_s25 = sld [smem:[#allocation4 + $0x483]] }
  0x86   : > { %695 = vrot.lane.b32.xlu0 %v694_v26, %s3124_s11  ;;  %v926_v26 = vsel %vm718_vm2, %v924_v9, %v925_v10  ;;  %v269_v9 = vmul.f32 %v268_v61, %v3220_v2  ;;  %v260_v10 = vstv %s3521_s18  ;;  %s5492_s18 = smov 127   ;;  %s3749_s26 = sld [smem:[#allocation4 + $0x482]]  ;;  %vm2643_vm6 = vcmask (!%p2985_p3), 1043459  }
  0x87   : > { %v913_v34 = vsel %vm718_vm2, %v911_v14, %v912_v17  ;;  %v243_v14 = vstv %s3513_s16  ;;  %v261_v20 = vmul.f32 %v260_v10, %v3220_v2  ;;  %s3653_s16 = sld [smem:[#allocation4 + $0x686]]  ;;  %vm2645_vm7 = vcmask (!%p2985_p3), 1044484  }
  0x88   : > { %v3631_v23 = vadd.f32 %v269_v9, %v243_v14  ;;  %v1301_v37 = vstv %s3584_s29  ;;  %s3807_s29 = sld [smem:[#allocation4 + $0x807]]  ;;  %vm2647_vm8 = vcmask (!%p2985_p3), 1045509   ;;  %vm2649_vm9 = vcmask (!%p2985_p3), 1046534  }
  0x89   : > { %823 = vrot.lane.b32.xlu1 %v822_v31, %s5482_s23  ;;  %v1003_v31 = vrot.slane %v999_v16, 2  ;;  %v1150_v16 = vstv %s3529_s19  ;;  %v3697_v59 = vmul.f32 %v3648_v32, %v1301_v37  ;;  %s3706_s19 = sld [smem:[#allocation4 + $0x481]]  ;;  %vm2651_vm10 = vcmask (!%p2985_p3), 1047559  }
  0x8a   : > { %810 = vrot.lane.b32.xlu0 %v809_v33, %s5482_s23  ;;  %v1054_v33 = vstv %s3450_s21  ;;  %s3531_s21 = sld [smem:[#allocation4 + $0x384]]  ;;  %v3641_v28 = vmul.f32 %v3490_v25, %v1150_v16  ;;  %vm2654_vm11 = vcmask (!%p2985_p3), 64512   ;;  %vm2661_vm12 = vcmask (!%p2985_p3), 7168  }
  0x8b   : > { %v3525_v43 = vmul.f32 %v3490_v25, %v1054_v33  ;;  %v3535_v46 = vsel %vm718_vm2, %v1002_v30, %v1003_v31  ;;  %v277_v31 = vmul.f32 %v276_v18, %v3220_v2  ;;  %v249_v44 = vstv %s3607_s9  ;;  %s3852_s9 = sld [smem:[#allocation4 + $0x486]] }
  0x8c   : > { %v1307_v14 = vrot.slane %v3697_v59, 1  ;;  %v1379_v18 = vstv %s3661_s17  ;;  %s3917_s17 = sld [smem:[#allocation4 + $0xb04]]  ;;  %vm2682_vm13 = vcmask (!%p2985_p3), 0  }
  0x8d   : > { %849 = vrot.lane.b32.xlu1 %v848_v49, %s5482_s23  ;;  %v264_v49 = vstv %s3483_s6  ;;  %s3567_s6 = sld [smem:[#allocation4 + $0x681]]  ;;  %v1340_v10 = vstv %s3653_s16  ;;  %s3906_s16 = sld [smem:[#allocation4 + $0xb05]] }
  0x8e   : > { %836 = vrot.lane.b32.xlu0 %v835_v50, %s5482_s23  ;;  %v990_v50 = vrot.slane %v986_v36, 2  ;;  %v1166_v36 = vstv %s3582_s28  ;;  %s3789_s28 = sld [smem:[#allocation4 + $0x484]] }
  0x8f   : > { %v3691_v57 = vmul.f32 %v3490_v25, %v1166_v36 }
  0x90   : > { %v991_v3 = vsel %vm718_vm2, %v989_v47, %v990_v50  ;;  %v1142_v17 = vstv %s3531_s21  ;;  %v3676_v47 = vadd.f32 %v261_v20, %v239_v19  ;;  %s3715_s21 = sld [smem:[#allocation4 + $0x480]] }
  0x91   : > { %875 = vrot.lane.b32.xlu1 %v874_v52, %s5482_s23  ;;  %v3550_v52 = vmul.f32 %v3490_v25, %v1062_v41  ;;  %v3644_v30 = vmul.f32 %v3490_v25, %v1142_v17 }
  0x92   : > { %862 = vrot.lane.b32.xlu0 %v861_v53, %s5482_s23  ;;  %v256_v53 = vstv %s3487_s7  ;;  %s3573_s7 = sld [smem:[#allocation7 + $0x4]] }
  0x93   : > { %v257_v63 = vmul.f32 %v256_v53, %v3220_v2  ;;  %v1275_v27 = vstv %s3567_s6  ;;  %v3684_v53 = vmul.f32 %v3490_v25, %v1301_v37  ;;  %s3756_s6 = sld [smem:[#allocation4 + $0x804]] }
  0x94   : > { %v1276_v41 = vmul.f32 %v3490_v25, %v1275_v27  ;;  %v1277_v45 = vmul.f32 %v3648_v32, %v1275_v27  ;;  %v1341_v27 = vmul.f32 %v3490_v25, %v1340_v10 }
  0x95   : > { %901 = vrot.lane.b32.xlu1 %v900_v60, %s5482_s23  ;;  %v265_v60 = vmul.f32 %v264_v49, %v3220_v2  ;;  %v3619_v15 = vadd.f32 %v257_v63, %v237_v6  ;;  %v3678_v49 = vadd.f32 %v277_v31, %v247_v21  ;;  %v1306_v9 = vrot.slane %v3684_v53, 1 }
  0x96   : > { %888 = vrot.lane.b32.xlu0 %v887_v13, %s5482_s23  ;;  %s3575_s23 = sld [smem:[#allocation4 + $0x680]]  ;;  %v3615_v13 = vmul.f32 %v3490_v25, %v1126_v1  ;;  %v1281_v63 = vrot.slane %v1277_v45, 1  ;;  %v1327_v1 = vstv %s3636_s12 }
  0x97   : > { %v3609_v11 = vadd.f32 %v265_v60, %v241_v62  ;;  %v1288_v62 = vstv %s3629_s10  ;;  %v1328_v19 = vmul.f32 %v3490_v25, %v1327_v1  ;;  %v1329_v20 = vmul.f32 %v3648_v32, %v1327_v1  ;;  %s3854_s10 = sld [smem:[#allocation4 + $0xb01]]  ;;  %s3858_s12 = sld [smem:[#allocation4 + $0xb00]] }
  0x98   : > { %v1289_v16 = vmul.f32 %v3490_v25, %v1288_v62  ;;  %v1290_v17 = vmul.f32 %v3648_v32, %v1288_v62 }
  0x99   : > { %927 = vrot.lane.b32.xlu1 %v926_v26, %s3124_s11  ;;  %v280_v26 = vstv %s3565_s27  ;;  %s3754_s27 = sld [smem:[#allocation4 + $0x805]] }
  0x9a   : > { %914 = vrot.lane.b32.xlu0 %v913_v34, %s3124_s11  ;;  %v245_v34 = vstv %s3573_s7  ;;  %v281_v40 = vmul.f32 %v280_v26, %v3220_v2  ;;  %v1294_v36 = vrot.slane %v1290_v17, 1  ;;  %s3759_s7 = sld [smem:[#allocation4 + $0x485]] }
  0x9c   : > { %v1262_v33 = vstv %s3575_s23  ;;  %s3668_s23 = sld [smem:[#allocation4 + $0x800]]  ;;  %v3703_v61 = vadd.f32 %v281_v40, %v249_v44  ;;  %v1333_v40 = vrot.slane %v1329_v20, 1 }
  0x9d   : > { %953 = vrot.lane.b32.xlu1 %v952_v35, %s3124_s11  ;;  %v273_v35 = vmul.f32 %v272_v22, %v3220_v2  ;;  %v3681_v50 = vmul.f32 %v3648_v32, %v1262_v33 }
  0x9e   : > { %940 = vrot.lane.b32.xlu0 %v939_v38, %s3124_s11  ;;  %v1158_v38 = vstv %s3595_s30  ;;  %s3815_s30 = sld [smem:[#allocation4 + $0x806]] }
  0x9f   : > { %v3688_v56 = vadd.f32 %v273_v35, %v245_v34  ;;  %v3694_v58 = vmul.f32 %v3490_v25, %v1158_v38  ;;  %v1268_v6 = vrot.slane %v3681_v50, 1  ;;  %v1381_v34 = vmul.f32 %v3648_v32, %v1379_v18 }
  0xa0   : > { %v1293_v35 = vrot.slane %v1289_v16, 1 }
  0xa1   : > { %979 = vrot.lane.b32.xlu1 %v978_v39, %s3124_s11  ;;  %v285_v39 = vmul.f32 %v284_v24, %v3220_v2  ;;  %v1385_v59 = vrot.slane %v1381_v34, 1  ;;  %v1418_v34 = vstv %s3756_s6  ;;  %s4023_s6 = sld [smem:[#allocation4 + $0x903]] }
  0xa2   : > { %966 = vrot.lane.b32.xlu0 %v965_v42, %s3124_s11  ;;  %v251_v42 = vstv %s3605_s8  ;;  %v1366_v22 = vstv %s3668_s23  ;;  %s3844_s8 = sld [smem:[#allocation4 + $0x487]] }
  0xa3   : > { %v3701_v60 = vadd.f32 %v285_v39, %v251_v42  ;;  %v1367_v37 = vmul.f32 %v3490_v25, %v1366_v22  ;;  %v1368_v38 = vmul.f32 %v3648_v32, %v1366_v22  ;;  %v1332_v39 = vrot.slane %v1328_v19, 1  ;;  %s3923_s23 = sld [smem:[#allocation4 + $0xb07]] }
  0xa4   : > { %v428_v42 = vstv %s3706_s19  ;;  %s3929_s19 = sld [smem:[#allocation4 + $0xb06]] }
  0xa5   : > { %1005 = vrot.lane.b32.xlu1 %v3535_v46, %s3124_s11  ;;  %v3674_v46 = vmul.f32 %v3490_v25, %v1262_v33  ;;  %v1380_v33 = vmul.f32 %v3490_v25, %v1379_v18  ;;  %v1372_v62 = vrot.slane %v1368_v38, 1  ;;  %v430_v1 = vmul.f32 %v428_v42, %v3259_v29 }
  0xa6   : > { %992 = vrot.lane.b32.xlu0 %v991_v3, %s3124_s11  ;;  %v1314_v3 = vstv %s3638_s14  ;;  %v1392_v18 = vstv %s3741_s4  ;;  %s3863_s14 = sld [smem:[#allocation4 + $0xb03]]  ;;  %s3967_s4 = sld [smem:[#allocation4 + $0x901]] }
  0xa7   : > { %v1267_v0 = vrot.slane %v3674_v46, 1  ;;  %v1315_v21 = vmul.f32 %v3490_v25, %v1314_v3  ;;  %v1316_v24 = vmul.f32 %v3648_v32, %v1314_v3  ;;  %v1345_v46 = vrot.slane %v1341_v27, 1 }
  0xa8   : > { %v1384_v53 = vrot.slane %v1380_v33, 1  ;;  %v434_v20 = vrot.slane %v430_v1, 1  ;;  %v1393_v33 = vmul.f32 %v3490_v25, %v1392_v18 }
  0xa9   : > { %1057 = vrot.lane.b32.xlu1 %v3525_v43, %s5492_s18  ;;  %v1280_v43 = vrot.slane %v1276_v41, 1  ;;  %v1319_v41 = vrot.slane %v1315_v21, 1  ;;  %v3768_v3 = vsel %vm421_vm1, %v1267_v0, %v1268_v6  ;;  %v1405_v0 = vstv %s3733_s22  ;;  %s3955_s22 = sld [smem:[#allocation4 + $0xc80]] }
  0xaa   : > { %1049 = vrot.lane.b32.xlu0 %v3538_v48, %s5492_s18  ;;  %v1353_v48 = vstv %s3651_s15  ;;  %v450_v21 = vstv %s3747_s25  ;;  %v1406_v22 = vmul.f32 %v3490_v25, %v1405_v0  ;;  %s3869_s15 = sld [smem:[#allocation4 + $0xb02]]  ;;  %s3987_s25 = sld [smem:[#allocation4 + $0x900]] }
  0xab   : > { %v1355_v26 = vmul.f32 %v3648_v32, %v1353_v48  ;;  %v3736_v31 = vsel %vm421_vm1, %v1280_v43, %v1281_v63  ;;  %v416_v43 = vstv %s3715_s21  ;;  %v429_v63 = vmul.f32 %v428_v42, %v3220_v2  ;;  %s3953_s21 = sld [smem:[#allocation4 + $0xc81]] }
  0xac   : > { %v3783_v17 = vmul.f32 %v416_v43, %v3220_v2  ;;  %v452_v38 = vmul.f32 %v450_v21, %v3259_v29 }
  0xad   : > { %1073 = vrot.lane.b32.xlu1 %v3547_v51, %s5492_s18  ;;  %v1354_v51 = vmul.f32 %v3490_v25, %v1353_v48  ;;  %v1359_v45 = vrot.slane %v1355_v26, 1  ;;  %v3771_v48 = vsel %vm421_vm1, %v1306_v9, %v1307_v14  ;;  %v3798_v14 = vsel %vm421_vm1, %v1384_v53, %v1385_v59 }
  0xae   : > { %1065 = vrot.lane.b32.xlu0 %v3550_v52, %s5492_s18  ;;  %v1342_v52 = vmul.f32 %v3648_v32, %v1340_v10  ;;  %v3774_v10 = vsel %vm421_vm1, %v1293_v35, %v1294_v36  ;;  %v433_v19 = vrot.slane %v429_v63, 1  ;;  %v422_v27 = vrot.slane %v3783_v17, 1  ;;  %v3827_v36 = vld [vmem:[%s3217_s13] sm:$0xff] }
  0xaf   : > { %v1358_v44 = vrot.slane %v1354_v51, 1  ;;  %v439_v51 = vstv %s3749_s26  ;;  %v1420_v53 = vmul.f32 %v3648_v32, %v1418_v34  ;;  %v456_v17 = vrot.slane %v452_v38, 1  ;;  %s4005_s26 = sld [smem:[#allocation4 + $0xc83]] }
  0xb0   : > { %v1346_v50 = vrot.slane %v1342_v52, 1  ;;  %v441_v42 = vmul.f32 %v439_v51, %v3259_v29 }
  0xb1   : > { %1089 = vrot.lane.b32.xlu1 %v3558_v54, %s5492_s18  ;;  %v1320_v54 = vrot.slane %v1316_v24, 1  ;;  %v3792_v6 = vsel %vm421_vm1, %v1358_v44, %v1359_v45  ;;  %v1407_v24 = vmul.f32 %v3648_v32, %v1405_v0  ;;  %v1410_v44 = vrot.slane %v1406_v22, 1 }
  0xb2   : > { %1081 = vrot.lane.b32.xlu0 %v3561_v55, %s5492_s18  ;;  %v1371_v55 = vrot.slane %v1367_v37, 1  ;;  %v3795_v9 = vsel %vm421_vm1, %v1345_v46, %v1346_v50  ;;  %v451_v37 = vmul.f32 %v3827_v36, %v450_v21  ;;  %v1419_v50 = vmul.f32 %v3490_v25, %v1418_v34 }
  0xb3   : > { %v3780_v16 = vsel %vm421_vm1, %v1319_v41, %v1320_v54  ;;  %v440_v41 = vmul.f32 %v3827_v36, %v439_v51  ;;  %v1411_v45 = vrot.slane %v1407_v24, 1  ;;  %v1444_v22 = vstv %s3815_s30  ;;  %s4103_s30 = sld [smem:[#allocation4 + $0x905]] }
  0xb4   : > { %v3804_v2 = vsel %vm421_vm1, %v1371_v55, %v1372_v62  ;;  %v461_v55 = vstv %s3789_s28  ;;  %v1397_v62 = vrot.slane %v1393_v33, 1  ;;  %v455_v1 = vrot.slane %v451_v37, 1  ;;  %v3874_v33 = vld [vmem:[%s3217_s13 + $0x8] sm:$0x3]  ;;  %s4035_s28 = sld [smem:[#allocation4 + $0xc85]] }
  0xb5   : > { %1105 = vrot.lane.b32.xlu1 %v3589_v4, %s5492_s18  ;;  %v3777_v4 = vsel %vm421_vm1, %v1332_v39, %v1333_v40  ;;  %v472_v39 = vstv %s3759_s7  ;;  %v3835_v40 = vsel %vm421_vm1, %v433_v19, %v434_v20  ;;  %v1423_v20 = vrot.slane %v1419_v50, 1  ;;  %s4031_s7 = sld [smem:[#allocation4 + $0x902]] }
  0xb6   : > { %1097 = vrot.lane.b32.xlu0 %v3592_v5, %s5492_s18  ;;  %v3786_v5 = vmul.f32 %v416_v43, %v3259_v29  ;;  %v473_v59 = vmul.f32 %v3827_v36, %v472_v39  ;;  %v474_v43 = vmul.f32 %v472_v39, %v3259_v29  ;;  %v445_v29 = vrot.slane %v441_v42, 1 }
  0xb7   : > { %v462_v21 = vmul.f32 %v3827_v36, %v461_v55  ;;  %v463_v34 = vmul.f32 %v3874_v33, %v461_v55  ;;  %v3883_v37 = vsel %vm421_vm1, %v1410_v44, %v1411_v45  ;;  %v3893_v42 = vsel %vm421_vm1, %v455_v1, %v456_v17 }
  0xb8   : > { %v423_v52 = vrot.slane %v3786_v5, 1  ;;  %v444_v5 = vrot.slane %v440_v41, 1  ;;  %v477_v51 = vrot.slane %v473_v59, 1  ;;  %v494_v45 = vstv %s3844_s8  ;;  %s4118_s8 = sld [smem:[#allocation4 + $0x904]] }
  0xb9   : > { %1121 = vrot.lane.b32.xlu1 %v3598_v7, %s3124_s11  ;;  %v1431_v7 = vstv %s3754_s27  ;;  %v466_v44 = vrot.slane %v462_v21, 1  ;;  %v483_v59 = vstv %s3852_s9  ;;  %v1558_v1 = vstv %s3858_s12  ;;  %s4018_s27 = sld [smem:[#allocation4 + $0xc82]]  ;;  %s4128_s9 = sld [smem:[#allocation4 + $0xc87]] }
  0xba   : > { %1113 = vrot.lane.b32.xlu0 %v3601_v8, %s3124_s11  ;;  %v1394_v8 = vmul.f32 %v3648_v32, %v1392_v18  ;;  %v1432_v54 = vmul.f32 %v3490_v25, %v1431_v7  ;;  %v1433_v46 = vmul.f32 %v3648_v32, %v1431_v7  ;;  %v1457_v18 = vstv %s3807_s29  ;;  %s4064_s29 = sld [smem:[#allocation4 + $0xc84]]  ;;  %s4140_s12 = sld [smem:[#allocation4 + $0x907]] }
  0xbb   : > { %v3817_v26 = vpop.permute.xlu1 %307  ;;  %v478_v7 = vrot.slane %v474_v43, 1  ;;  %v1458_v38 = vmul.f32 %v3490_v25, %v1457_v18  ;;  %v1459_v39 = vmul.f32 %v3648_v32, %v1457_v18  ;;  %v496_v18 = vmul.f32 %v3874_v33, %v494_v45 }
  0xbc   : > { %v3823_v35 = vpop.permute.xlu0 %291  ;;  %v1398_v63 = vrot.slane %v1394_v8, 1  ;;  %v1436_v0 = vrot.slane %v1432_v54, 1  ;;  %v1437_v19 = vrot.slane %v1433_v46, 1  ;;  %v3900_v54 = vsel %vm421_vm1, %v444_v5, %v445_v29 }
  0xbd   : > { %1137 = vrot.lane.b32.xlu1 %v3612_v12, %s3124_s11  ;;  %5493 = vst [vmem:[#allocation13_spill] sm:$0xff] %v3900_v54  ;;  %v1462_v55 = vrot.slane %v1458_v38, 1  ;;  %v495_v29 = vmul.f32 %v3827_v36, %v494_v45  ;;  %v1584_v21 = vstv %s3869_s15  ;;  %v1560_v38 = vmul.f32 %v3648_v32, %v1558_v1  ;;  %s4211_s15 = sld [smem:[#allocation4 + $0x281]] }
  0xbe   : > { %1129 = vrot.lane.b32.xlu0 %v3615_v13, %s3124_s11  ;;  %v3890_v41 = vsel %vm421_vm1, %v1397_v62, %v1398_v63  ;;  %v1463_v62 = vrot.slane %v1459_v39, 1  ;;  %v1571_v63 = vstv %s3854_s10  ;;  %v1585_v45 = vmul.f32 %v3490_v25, %v1584_v21  ;;  %s4135_s10 = sld [smem:[#allocation4 + $0xc86]] }
  0xbf   : > { %v3846_v12 = vpop.permute.xlu1 %315  ;;  %v1649_v54 = vstv %s3923_s23  ;;  %s4231_s23 = sld [smem:[#allocation4 + $0x282]] }
  0xc0   : > { %v3856_v13 = vpop.permute.xlu0 %299 }
  0xc1   : > { %1153 = vrot.lane.b32.xlu1 %v3641_v28, %s3124_s11  ;;  %v1424_v28 = vrot.slane %v1420_v53, 1  ;;  %v3914_v53 = vsel %vm421_vm1, %v477_v51, %v478_v7  ;;  %v1573_v51 = vmul.f32 %v3648_v32, %v1571_v63  ;;  %v1559_v7 = vmul.f32 %v3490_v25, %v1558_v1 }
  0xc2   : > { %1145 = vrot.lane.b32.xlu0 %v3644_v30, %s3124_s11  ;;  %v3880_v30 = vsel %vm421_vm1, %v422_v27, %v423_v52  ;;  %v1445_v27 = vmul.f32 %v3490_v25, %v1444_v22  ;;  %v1446_v52 = vmul.f32 %v3648_v32, %v1444_v22  ;;  %5494 = vst [vmem:[#allocation14_spill] sm:$0xff] %v3914_v53 }
  0xc3   : > { %v3871_v24 = vpop.permute.xlu1 %331  ;;  %v3911_v50 = vsel %vm421_vm1, %v1423_v20, %v1424_v28  ;;  %v485_v20 = vmul.f32 %v3874_v33, %v483_v59  ;;  %v1572_v28 = vmul.f32 %v3490_v25, %v1571_v63  ;;  %v1623_v63 = vstv %s3906_s16  ;;  %s4221_s16 = sld [smem:[#allocation4 + $0x280]] }
  0xc4   : > { %v3877_v8 = vpop.permute.xlu0 %323  ;;  %v1449_v17 = vrot.slane %v1445_v27, 1  ;;  %v1450_v5 = vrot.slane %v1446_v52, 1 }
  0xc5   : > { %1169 = vrot.lane.b32.xlu1 %v3691_v57, %s3124_s11  ;;  %v3903_v57 = vsel %vm421_vm1, %v1436_v0, %v1437_v19  ;;  %v1597_v0 = vstv %s3863_s14  ;;  %v484_v19 = vmul.f32 %v3827_v36, %v483_v59  ;;  %v500_v59 = vrot.slane %v496_v18, 1  ;;  %s4150_s14 = sld [smem:[#allocation4 + $0x906]] }
  0xc6   : > { %1161 = vrot.lane.b32.xlu0 %v3694_v58, %s3124_s11  ;;  %v467_v58 = vrot.slane %v463_v34, 1  ;;  %v1598_v39 = vmul.f32 %v3490_v25, %v1597_v0  ;;  %v1599_v27 = vmul.f32 %v3648_v32, %v1597_v0  ;;  %v3960_v52 = vsel %vm421_vm1, %v1449_v17, %v1450_v5 }
  0xc7   : > { %v3908_v46 = vpop.permute.xlu1 %347  ;;  %v1576_v1 = vrot.slane %v1572_v28, 2  ;;  %v1577_v17 = vrot.slane %v1573_v51, 2  ;;  %v1563_v5 = vrot.slane %v1559_v7, 2  ;;  %v1625_v51 = vmul.f32 %v3648_v32, %v1623_v63 }
  0xc8   : > { %v3919_v43 = vpop.permute.xlu0 %339  ;;  %v1603_v53 = vrot.slane %v1599_v27, 2 }
  0xc9   : > { %1283 = vrot.lane.b32.xlu1 %v3736_v31, %s5492_s18  ;;  %v3940_v31 = vsel %vm421_vm1, %v466_v44, %v467_v58  ;;  %v499_v44 = vrot.slane %v495_v29, 1  ;;  %v1586_v58 = vmul.f32 %v3648_v32, %v1584_v21  ;;  %v1610_v29 = vstv %s3917_s17  ;;  %s4229_s17 = sld [smem:[#allocation4 + $0x283]] }
  0xca   : > { %1270 = vrot.lane.b32.xlu0 %v3768_v3, %s5492_s18  ;;  %5495 = vst [vmem:[#allocation15_spill] sm:$0xff] %v3940_v31  ;;  %v3948_v3 = vsel %vm421_vm1, %v1462_v55, %v1463_v62  ;;  %v488_v55 = vrot.slane %v484_v19, 1  ;;  %v489_v62 = vrot.slane %v485_v20, 1  ;;  %v1564_v21 = vrot.slane %v1560_v38, 2 }
  0xcb   : > { %v3937_v22 = vpop.permute.xlu1 %363  ;;  %v1602_v31 = vrot.slane %v1598_v39, 2  ;;  %v1590_v18 = vrot.slane %v1586_v58, 2  ;;  %v1624_v19 = vmul.f32 %v3490_v25, %v1623_v63  ;;  %v1636_v20 = vstv %s3929_s19  ;;  %s4239_s19 = sld [smem:[#allocation4 + $0x285]] }
  0xcc   : > { %v3945_v34 = vpop.permute.xlu0 %355  ;;  %v3982_v28 = vsel %vm421_vm1, %v499_v44, %v500_v59  ;;  %v1611_v7 = vmul.f32 %v3490_v25, %v1610_v29  ;;  %v1612_v38 = vmul.f32 %v3648_v32, %v1610_v29  ;;  %v3992_v39 = vsel %vm421_vm1, %v488_v55, %v489_v62 }
  0xcd   : > { %1309 = vrot.lane.b32.xlu1 %v3771_v48, %s5492_s18  ;;  %5496 = vst [vmem:[#allocation16_spill] sm:$0xff] %v3982_v28  ;;  %5497 = vst [vmem:[#allocation17_spill] sm:$0xff] %v3992_v39  ;;  %v3995_v27 = vsel %vm718_vm2, %v1576_v1, %v1577_v17  ;;  %v1651_v44 = vmul.f32 %v3648_v32, %v1649_v54  ;;  %v1637_v58 = vmul.f32 %v3490_v25, %v1636_v20 }
  0xce   : > { %1296 = vrot.lane.b32.xlu0 %v3774_v10, %s5492_s18  ;;  %v1589_v10 = vrot.slane %v1585_v45, 2  ;;  %v1638_v59 = vmul.f32 %v3648_v32, %v1636_v20  ;;  %v1675_v63 = vstv %s3953_s21  ;;  %v1662_v29 = vstv %s3955_s22  ;;  %s4241_s21 = sld [smem:[#allocation4 + $0x81]]  ;;  %s4247_s22 = sld [smem:[#allocation4 + $0x284]] }
  0xcf   : > { %v3969_v48 = vpop.permute.xlu1 %379  ;;  %v4010_v55 = vsel %vm718_vm2, %v1563_v5, %v1564_v21  ;;  %v4013_v62 = vsel %vm718_vm2, %v1602_v31, %v1603_v53  ;;  %v1628_v1 = vrot.slane %v1624_v19, 2  ;;  %v1629_v17 = vrot.slane %v1625_v51, 2 }
  0xd0   : > { %v3972_v0 = vpop.permute.xlu0 %371  ;;  %v1615_v20 = vrot.slane %v1611_v7, 2  ;;  %v1616_v39 = vrot.slane %v1612_v38, 2  ;;  %v725_v28 = vstv %s3967_s4  ;;  %v1676_v53 = vmul.f32 %v3490_v25, %v1675_v63  ;;  %s4249_s4 = sld [smem:[#allocation4 + $0x287]] }
  0xd1   : > { %1335 = vrot.lane.b32.xlu1 %v3777_v4, %s5492_s18  ;;  %v1677_v31 = vmul.f32 %v3648_v32, %v1675_v63  ;;  %v1663_v5 = vmul.f32 %v3490_v25, %v1662_v29  ;;  %v1664_v21 = vmul.f32 %v3648_v32, %v1662_v29  ;;  %v1641_v19 = vrot.slane %v1637_v58, 2 }
  0xd2   : > { %1322 = vrot.lane.b32.xlu0 %v3780_v16, %s5492_s18  ;;  %v1650_v16 = vmul.f32 %v3490_v25, %v1649_v54  ;;  %v4016_v54 = vsel %vm718_vm2, %v1589_v10, %v1590_v18  ;;  %v1655_v18 = vrot.slane %v1651_v44, 2  ;;  %v1642_v51 = vrot.slane %v1638_v59, 2 }
  0xd3   : > { %v3989_v4 = vpop.permute.xlu1 %395  ;;  %v4039_v7 = vadd.f32 %v3817_v26, %v3609_v11  ;;  %v4043_v38 = vadd.f32 %v3823_v35, %v3619_v15  ;;  %v726_v63 = vmul.f32 %v3827_v36, %v725_v28  ;;  %v4051_v44 = vadd.f32 %v3846_v12, %v3631_v23 }
  0xd4   : > { %v3999_v45 = vpop.permute.xlu0 %387  ;;  %v1654_v10 = vrot.slane %v1650_v16, 2  ;;  %v727_v16 = vmul.f32 %v3874_v33, %v725_v28  ;;  %v4056_v11 = vsel %vm718_vm2, %v1628_v1, %v1629_v17  ;;  %v4059_v15 = vsel %vm718_vm2, %v1615_v20, %v1616_v39 }
  0xd5   : > { %1361 = vrot.lane.b32.xlu1 %v3792_v6, %s5492_s18  ;;  %v713_v26 = vstv %s3987_s25  ;;  %v1680_v35 = vrot.slane %v1676_v53, 2  ;;  %v1681_v28 = vrot.slane %v1677_v31, 2  ;;  %v1667_v58 = vrot.slane %v1663_v5, 2  ;;  %s4257_s25 = sld [smem:[#allocation4 + $0x286]] }
  0xd6   : > { %1348 = vrot.lane.b32.xlu0 %v3795_v9, %s5492_s18  ;;  %v1668_v59 = vrot.slane %v1664_v21, 2  ;;  %v302_v23 = vadd.f32 %v3856_v13, %v3676_v47  ;;  %v4071_v12 = vsel %vm718_vm2, %v1654_v10, %v1655_v18  ;;  %v4074_v39 = vsel %vm718_vm2, %v1641_v19, %v1642_v51 }
  0xd7   : > { %v4025_v6 = vpop.permute.xlu1 %411  ;;  %v1701_v29 = vstv %s4005_s26  ;;  %v730_v1 = vrot.slane %v726_v63, 2  ;;  %v731_v17 = vrot.slane %v727_v16, 2  ;;  %v714_v20 = vmul.f32 %v3827_v36, %v713_v26  ;;  %s4259_s26 = sld [smem:[#allocation4 + $0x401]] }
  0xd8   : > { %v4033_v9 = vpop.permute.xlu0 %403  ;;  %v1688_v53 = vstv %s4018_s27  ;;  %v4083_v47 = vadd.f32 %v3871_v24, %v3678_v49  ;;  %v4087_v13 = vadd.f32 %v3877_v8, %v3688_v56  ;;  %v715_v31 = vmul.f32 %v3874_v33, %v713_v26  ;;  %s4272_s27 = sld [smem:[#allocation4 + $0x400]] }
  0xd9   : > { %1387 = vrot.lane.b32.xlu1 %v3798_v14, %s3124_s11  ;;  %v4096_v21 = vsel %vm718_vm2, %v1680_v35, %v1681_v28  ;;  %v4099_v10 = vsel %vm718_vm2, %v1667_v58, %v1668_v59  ;;  %v1702_v49 = vmul.f32 %v3490_v25, %v1701_v29  ;;  %v736_v24 = vstv %s4031_s7  ;;  %s4284_s7 = sld [smem:[#allocation4 + $0x83]] }
  0xda   : > { %1374 = vrot.lane.b32.xlu0 %v3804_v2, %s3124_s11  ;;  %v1703_v8 = vmul.f32 %v3648_v32, %v1701_v29  ;;  %v1690_v18 = vmul.f32 %v3648_v32, %v1688_v53  ;;  %v1727_v19 = vstv %s4035_s28  ;;  %v4114_v51 = vsel %vm718_vm2, %v730_v1, %v731_v17  ;;  %s4292_s28 = sld [smem:[#allocation4 + $0x403]] }
  0xdb   : > { %v4062_v14 = vpop.permute.xlu1 %526  ;;  %v719_v63 = vrot.slane %v714_v20, 2  ;;  %v4122_v35 = vadd.f32 %v3908_v46, %v3701_v60  ;;  %v720_v28 = vrot.slane %v715_v31, 2  ;;  %v738_v58 = vmul.f32 %v3874_v33, %v736_v24 }
  0xdc   : > { %v4068_v2 = vpop.permute.xlu0 %513  ;;  %v1706_v29 = vrot.slane %v1702_v49, 2  ;;  %v1728_v1 = vmul.f32 %v3490_v25, %v1727_v19  ;;  %v1729_v17 = vmul.f32 %v3648_v32, %v1727_v19  ;;  %v1714_v20 = vstv %s4064_s29  ;;  %s4294_s29 = sld [smem:[#allocation4 + $0x402]] }
  0xdd   : > { %1413 = vrot.lane.b32.xlu1 %v3883_v37, %s3124_s11  ;;  %v747_v37 = vstv %s4023_s6  ;;  %v366_v60 = vadd.f32 %v3937_v22, %v302_v23  ;;  %v1694_v31 = vrot.slane %v1690_v18, 2  ;;  %v358_v49 = vadd.f32 %v3945_v34, %v4043_v38  ;;  %s4282_s6 = sld [smem:[#allocation4 + $0x80]] }
  0xde   : > { %1400 = vrot.lane.b32.xlu0 %v3890_v41, %s3124_s11  ;;  %v1689_v41 = vmul.f32 %v3490_v25, %v1688_v53  ;;  %v748_v16 = vmul.f32 %v3827_v36, %v747_v37  ;;  %v749_v26 = vmul.f32 %v3874_v33, %v747_v37  ;;  %v4144_v37 = vadd.f32 %v3919_v43, %v3703_v61 }
  0xdf   : > { %v4093_v5 = vpop.permute.xlu1 %552  ;;  %v4155_v23 = vsel %vm718_vm2, %v719_v63, %v720_v28  ;;  %v4158_v61 = vmul.f32 %v3490_v25, %v1714_v20  ;;  %v382_v43 = vadd.f32 %v3969_v48, %v4051_v44  ;;  %v1733_v38 = vrot.slane %v1729_v17, 2 }
  0xe0   : > { %v4105_v56 = vpop.permute.xlu0 %539  ;;  %v1693_v53 = vrot.slane %v1689_v41, 2  ;;  %v753_v22 = vrot.slane %v749_v26, 2  ;;  %v742_v41 = vrot.slane %v738_v58, 2  ;;  %v769_v18 = vstv %s4103_s30  ;;  %s4308_s30 = sld [smem:[#allocation4 + $0x82]] }
  0xe1   : > { %1439 = vrot.lane.b32.xlu1 %v3903_v57, %s3124_s11  ;;  %v737_v57 = vmul.f32 %v3827_v36, %v736_v24  ;;  %v752_v24 = vrot.slane %v748_v16, 2  ;;  %v1716_v48 = vmul.f32 %v3648_v32, %v1714_v20  ;;  %v374_v44 = vadd.f32 %v3972_v0, %v4039_v7 }
  0xe2   : > { %1426 = vrot.lane.b32.xlu0 %v3911_v50, %s3124_s11  ;;  %v1707_v50 = vrot.slane %v1703_v8, 2  ;;  %v4174_v16 = vsel %vm718_vm2, %v1693_v53, %v1694_v31  ;;  %v4180_v26 = vadd.f32 %v3880_v30, %v358_v49  ;;  %v758_v28 = vstv %s4118_s8  ;;  %s4310_s8 = sld [smem:[#allocation4 + $0x405]] }
  0xe3   : > { %v4130_v59 = vpop.permute.xlu1 %578  ;;  %v741_v8 = vrot.slane %v737_v57, 2  ;;  %v1719_v58 = vrot.slane %v4158_v61, 2  ;;  %v770_v0 = vmul.f32 %v3827_v36, %v769_v18  ;;  %v1753_v30 = vstv %s4128_s9  ;;  %s4336_s9 = sld [smem:[#allocation4 + $0x404]] }
  0xe4   : > { %v4138_v46 = vpop.permute.xlu0 %565  ;;  %v4171_v63 = vsel %vm718_vm2, %v1706_v29, %v1707_v50  ;;  %v4197_v7 = vadd.f32 %v3893_v42, %v382_v43  ;;  %v1720_v20 = vrot.slane %v1716_v48, 2  ;;  %v760_v50 = vmul.f32 %v3874_v33, %v758_v28  ;;  %v5498_v42 = vld [vmem:[#allocation13_spill] sm:$0xff] }
  0xe5   : > { %1465 = vrot.lane.b32.xlu1 %v3948_v3, %s3124_s11  ;;  %v1732_v3 = vrot.slane %v1728_v1, 2  ;;  %v4191_v57 = vsel %vm718_vm2, %v741_v8, %v742_v41  ;;  %v771_v1 = vmul.f32 %v3874_v33, %v769_v18  ;;  %v791_v53 = vstv %s4140_s12  ;;  %s4350_s12 = sld [smem:[#allocation4 + $0x85]] }
  0xe6   : > { %1452 = vrot.lane.b32.xlu0 %v3960_v52, %s3124_s11  ;;  %v4166_v52 = vadd.f32 %v3835_v40, %v366_v60  ;;  %v4185_v40 = vsel %vm718_vm2, %v752_v24, %v753_v22  ;;  %v759_v60 = vmul.f32 %v3827_v36, %v758_v28  ;;  %v4214_v31 = vadd.f32 %v5498_v42, %v374_v44  ;;  %v5501_v42 = vld [vmem:[#allocation16_spill] sm:$0xff] }
  0xe7   : > { %v4162_v34 = vpop.permute.xlu1 %604  ;;  %v4202_v29 = vsel %vm718_vm2, %v1732_v3, %v1733_v38  ;;  %v1754_v49 = vmul.f32 %v3490_v25, %v1753_v30  ;;  %v1755_v24 = vmul.f32 %v3648_v32, %v1753_v30  ;;  %v780_v22 = vstv %s4150_s14  ;;  %s4352_s14 = sld [smem:[#allocation4 + $0x700]] }
  0xe8   : > { %v4168_v19 = vpop.permute.xlu0 %591  ;;  %v398_v8 = vadd.f32 %v3989_v4, %v4083_v47  ;;  %v774_v41 = vrot.slane %v770_v0, 2  ;;  %v775_v38 = vrot.slane %v771_v1, 2  ;;  %v792_v4 = vmul.f32 %v3827_v36, %v791_v53 }
  0xe9   : > { %1579 = vrot.lane.b32.xlu1 %v3995_v27, %s5492_s18  ;;  %v793_v47 = vmul.f32 %v3874_v33, %v791_v53  ;;  %v781_v18 = vmul.f32 %v3827_v36, %v780_v22  ;;  %v406_v48 = vadd.f32 %v4033_v9, %v4144_v37  ;;  %v1758_v44 = vrot.slane %v1754_v49, 2  ;;  %v5499_v36 = vld [vmem:[#allocation14_spill] sm:$0xff] }
  0xea   : > { %1566 = vrot.lane.b32.xlu0 %v4010_v55, %s5492_s18  ;;  %v1740_v55 = vstv %s4135_s10  ;;  %v1759_v28 = vrot.slane %v1755_v24, 2  ;;  %v4270_v37 = vld [vmem:[%s3217_s13 + $0x30] sm:$0xff]  ;;  %v4280_v1 = vsel %vm718_vm2, %v774_v41, %v775_v38  ;;  %v1810_v53 = vstv %s4211_s15  ;;  %v5502_v24 = vld [vmem:[#allocation17_spill] sm:$0xff]  ;;  %s4338_s10 = sld [smem:[#allocation4 + $0x701]]  ;;  %s4365_s15 = sld [smem:[#allocation4 + $0x84]] }
  0xeb   : > { %v4199_v27 = vpop.permute.xlu1 %630  ;;  %v1741_v61 = vmul.f32 %v3490_v25, %v1740_v55  ;;  %v1742_v43 = vmul.f32 %v3648_v32, %v1740_v55  ;;  %v763_v32 = vrot.slane %v759_v60, 2  ;;  %v797_v55 = vrot.slane %v793_v47, 2 }
  0xec   : > { %v4206_v17 = vpop.permute.xlu0 %617  ;;  %v785_v60 = vrot.slane %v781_v18, 2  ;;  %v1802_v41 = vstv %s4221_s16  ;;  %v4356_v18 = vadd.f32 %v4093_v5, %v4197_v7  ;;  %s4367_s16 = sld [smem:[#allocation4 + $0x407]]  ;;  %v1866_v7 = vstv %s4272_s27  ;;  %s4516_s27 = sld [smem:[#allocation4 + $0x706]] }
  0xed   : > { %1605 = vrot.lane.b32.xlu1 %v4013_v62, %s5492_s18  ;;  %v390_v62 = vadd.f32 %v3999_v45, %v4087_v13  ;;  %v782_v45 = vmul.f32 %v3874_v33, %v780_v22  ;;  %v414_v13 = vadd.f32 %v4025_v6, %v4122_v35  ;;  %v4262_v33 = vadd.f32 %v5499_v36, %v398_v8 }
  0xee   : > { %1592 = vrot.lane.b32.xlu0 %v4016_v54, %s5492_s18  ;;  %v764_v54 = vrot.slane %v760_v50, 2  ;;  %v4267_v6 = vsel %vm718_vm2, %v1719_v58, %v1720_v20  ;;  %v1745_v9 = vrot.slane %v1741_v61, 2  ;;  %v1746_v35 = vrot.slane %v1742_v43, 2 }
  0xef   : > { %v4235_v3 = vpop.permute.xlu1 %656  ;;  %v786_v50 = vrot.slane %v782_v45, 2  ;;  %v4297_v49 = vadd.f32 %v5501_v42, %v414_v13  ;;  %v4300_v22 = vadd.f32 %v5502_v24, %v406_v48  ;;  %v4305_v8 = vsel %vm718_vm2, %v1758_v44, %v1759_v28 }
  0xf0   : > { %v4243_v25 = vpop.permute.xlu0 %643  ;;  %v4289_v20 = vsel %vm718_vm2, %v763_v32, %v764_v54  ;;  %v4314_v61 = vadd.f32 %v4062_v14, %v4166_v52  ;;  %v4318_v43 = vadd.f32 %v4068_v2, %v4180_v26  ;;  %v4332_v14 = vmul.f32 %v4270_v37, %v1810_v53 }
  0xf1   : > { %1631 = vrot.lane.b32.xlu1 %v4056_v11, %s5492_s18  ;;  %v5500_v11 = vld [vmem:[#allocation15_spill] sm:$0xff]  ;;  %v1818_v52 = vstv %s4231_s23  ;;  %v1842_v2 = vstv %s4239_s19  ;;  %v4343_v26 = vsel %vm718_vm2, %v785_v60, %v786_v50  ;;  %v4346_v47 = vmul.f32 %v4270_v37, %v1802_v41  ;;  %s4394_s23 = sld [smem:[#allocation4 + $0x406]]  ;;  %s4396_s19 = sld [smem:[#allocation4 + $0x87]] }
  0xf2   : > { %1618 = vrot.lane.b32.xlu0 %v4059_v15, %s5492_s18  ;;  %v4275_v0 = vadd.f32 %v5500_v11, %v390_v62  ;;  %v796_v15 = vrot.slane %v792_v4, 2  ;;  %v1826_v62 = vstv %s4229_s17  ;;  %v1834_v32 = vstv %s4247_s22  ;;  %s4382_s17 = sld [smem:[#allocation4 + $0x703]]  ;;  %s4437_s22 = sld [smem:[#allocation4 + $0x86]] }
  0xf3   : > { %v4277_v30 = vpop.permute.xlu1 %682  ;;  %v1858_v54 = vstv %s4249_s4  ;;  %v4361_v45 = vmul.f32 %v4270_v37, %v1826_v62  ;;  %v1850_v13 = vstv %s4257_s25  ;;  %v1874_v48 = vstv %s4259_s26  ;;  %s4449_s4 = sld [smem:[#allocation4 + $0x705]]  ;;  %s4466_s25 = sld [smem:[#allocation4 + $0x704]] }
  0xf4   : > { %v4286_v58 = vpop.permute.xlu0 %669  ;;  %v4329_v4 = vsel %vm718_vm2, %v796_v15, %v797_v55  ;;  %v4371_v44 = vadd.f32 %v4105_v56, %v4214_v31  ;;  %v4376_v5 = vmul.f32 %v4270_v37, %v1818_v52  ;;  %v4387_v56 = vmul.f32 %v4270_v37, %v1834_v32  ;;  %s4488_s26 = sld [smem:[#allocation4 + $0x707]] }
  0xf5   : > { %1657 = vrot.lane.b32.xlu1 %v4071_v12, %s5492_s18  ;;  %v4323_v12 = vsel %vm718_vm2, %v1745_v9, %v1746_v35  ;;  %v1018_v31 = vstv %s4241_s21  ;;  %v1014_v36 = vstv %s4282_s6  ;;  %v4401_v35 = vmul.f32 %v4270_v37, %v1850_v13  ;;  %s4416_s21 = sld [smem:[#allocation4 + $0x702]]  ;;  %s4537_s6 = sld [smem:[#allocation4 + $0x881]] }
  0xf6   : > { %1644 = vrot.lane.b32.xlu0 %v4074_v39, %s5492_s18  ;;  %v4404_v11 = vmul.f32 %v4270_v37, %v1874_v48  ;;  %v1890_v15 = vstv %s4292_s28  ;;  %v1882_v55 = vstv %s4294_s29  ;;  %v4411_v60 = vmul.f32 %v4270_v37, %v1866_v7  ;;  %v4463_v48 = vld [vmem:[%s3217_s13 + $0x38] sm:$0x3]  ;;  %s4564_s28 = sld [smem:[#allocation4 + $0x501]]  ;;  %s4566_s29 = sld [smem:[#allocation4 + $0x500]] }
  0xf7   : > { %v4326_v38 = vpop.permute.xlu1 %708  ;;  %v1026_v50 = vstv %s4284_s7  ;;  %v1022_v53 = vstv %s4308_s30  ;;  %v1906_v42 = vstv %s4310_s8  ;;  %v4420_v24 = vadd.f32 %v4130_v59, %v4262_v33  ;;  %s4556_s7 = sld [smem:[#allocation4 + $0x880]]  ;;  %s4590_s30 = sld [smem:[#allocation4 + $0x883]] }
  0xf8   : > { %v4340_v39 = vpop.permute.xlu0 %695  ;;  %v4424_v41 = vadd.f32 %v4138_v46, %v4275_v0  ;;  %v4442_v46 = vmul.f32 %v4270_v37, %v1890_v15  ;;  %v1898_v33 = vstv %s4336_s9  ;;  %v2031_v0 = vstv %s4338_s10  ;;  %s4607_s8 = sld [smem:[#allocation4 + $0x882]]  ;;  %s4609_s9 = sld [smem:[#allocation4 + $0x503]] }
  0xf9   : > { %1683 = vrot.lane.b32.xlu1 %v4096_v21, %s3124_s11  ;;  %v4379_v21 = vmul.f32 %v4270_v37, %v1842_v2  ;;  %v4460_v13 = vmul.f32 %v4270_v37, %v1906_v42  ;;  %v2018_v7 = vstv %s4352_s14  ;;  %v1030_v15 = vstv %s4365_s15  ;;  %s4618_s10 = sld [smem:[#allocation4 + $0x502]]  ;;  %s4681_s14 = sld [smem:[#allocation4 + $0x884]] }
  0xfa   : > { %1670 = vrot.lane.b32.xlu0 %v4099_v10, %s3124_s11  ;;  %v4390_v10 = vmul.f32 %v4270_v37, %v1858_v54  ;;  %v2032_v42 = vmul.f32 %v4270_v37, %v2031_v0  ;;  %s4687_s15 = sld [smem:[#allocation4 + $0x505]] }
  0xfb   : > { %v4384_v28 = vpop.permute.xlu1 %823 }
  0xfc   : > { %v4398_v9 = vpop.permute.xlu0 %810 }
  0xfd   : > { %1709 = vrot.lane.b32.xlu1 %v4171_v63, %s3124_s11  ;;  %v4429_v63 = vld [vmem:[%s3217_s13 + $0x18] sm:$0xff] }
  0xfe   : > { %1696 = vrot.lane.b32.xlu0 %v4174_v16, %s3124_s11  ;;  %v4432_v62 = vmul.f32 %v4429_v63, %v1018_v31  ;;  %v4435_v52 = vmul.f32 %v4429_v63, %v1014_v36  ;;  %v4445_v16 = vmul.f32 %v4270_v37, %v1882_v55  ;;  %v4454_v32 = vmul.f32 %v4429_v63, %v1026_v50 }
  0xff   : > { %v4439_v59 = vpop.permute.xlu1 %849  ;;  %v4457_v54 = vmul.f32 %v4429_v63, %v1022_v53  ;;  %v4470_v31 = vadd.f32 %v4162_v34, %v4297_v49  ;;  %v1034_v36 = vstv %s4350_s12  ;;  %v1922_v55 = vstv %s4367_s16  ;;  %s4665_s12 = sld [smem:[#allocation4 + $0x885]]  ;;  %s4697_s16 = sld [smem:[#allocation4 + $0x504]] }
 0x100   : > { %5503 = vst [vmem:[#allocation13_spill] sm:$0xff] %v4432_v62  ;;  %5504 = vst [vmem:[#allocation14_spill] sm:$0xff] %v4435_v52  ;;  %v4451_v2 = vpop.permute.xlu0 %836  ;;  %v4479_v50 = vadd.f32 %v4168_v19, %v4300_v22  ;;  %v4484_v53 = vmul.f32 %v4270_v37, %v1898_v33  ;;  %v2057_v34 = vstv %s4382_s17  ;;  %v1914_v49 = vstv %s4394_s23  ;;  %s4730_s17 = sld [smem:[#allocation4 + $0x887]]  ;;  %s4769_s23 = sld [smem:[#allocation4 + $0x886]] }
 0x101   : > { %5505 = vst [vmem:[#allocation15_spill] sm:$0xff] %v4454_v32  ;;  %5506 = vst [vmem:[#allocation16_spill] sm:$0xff] %v4457_v54  ;;  %1735 = vrot.lane.b32.xlu1 %v4202_v29, %s3124_s11  ;;  %v1042_v54 = vstv %s4396_s19  ;;  %v2033_v32 = vmul.f32 %v4463_v48, %v2031_v0  ;;  %v2019_v19 = vmul.f32 %v4270_v37, %v2018_v7  ;;  %s4784_s19 = sld [smem:[#allocation4 + $0x507]] }
 0x102   : > { %1722 = vrot.lane.b32.xlu0 %v4267_v6, %s3124_s11  ;;  %5507 = vst [vmem:[#allocation17_spill] sm:$0xff] %v4484_v53  ;;  %v4499_v6 = vmul.f32 %v4429_v63, %v1034_v36  ;;  %v4502_v33 = vmul.f32 %v4429_v63, %v1030_v15  ;;  %v4505_v52 = vmul.f32 %v4270_v37, %v1922_v55 }
 0x103   : > { %v4490_v29 = vpop.permute.xlu1 %875  ;;  %v2020_v62 = vmul.f32 %v4463_v48, %v2018_v7  ;;  %v633_v0 = vadd.f32 %v4199_v27, %v4314_v61  ;;  %v620_v53 = vadd.f32 %v4206_v17, %v4318_v43  ;;  %v2058_v36 = vmul.f32 %v4270_v37, %v2057_v34 }
 0x104   : > { %v4496_v22 = vpop.permute.xlu0 %862  ;;  %5508 = vst [vmem:[#allocation18_spill] sm:$0xff] %v4499_v6  ;;  %5509 = vst [vmem:[#allocation19_spill] sm:$0xff] %v4502_v33  ;;  %v2044_v6 = vstv %s4416_s21  ;;  %v4521_v7 = vmul.f32 %v4270_v37, %v1914_v49  ;;  %v4524_v27 = vmul.f32 %v4429_v63, %v1042_v54  ;;  %v1038_v61 = vstv %s4437_s22  ;;  %s4797_s21 = sld [smem:[#allocation4 + $0x506]]  ;;  %s4809_s22 = sld [smem:[#allocation4 + $0xb81]] }
 0x105   : > { %5510 = vst [vmem:[#allocation20_spill] sm:$0xff] %v4505_v52  ;;  %1761 = vrot.lane.b32.xlu1 %v4305_v8, %s3124_s11  ;;  %v2036_v17 = vrot.slane %v2032_v42, 1  ;;  %v2037_v8 = vrot.slane %v2033_v32, 1  ;;  %v2023_v15 = vrot.slane %v2019_v19, 1  ;;  %v2059_v55 = vmul.f32 %v4463_v48, %v2057_v34 }
 0x106   : > { %1748 = vrot.lane.b32.xlu0 %v4323_v12, %s3124_s11  ;;  %5511 = vst [vmem:[#allocation21_spill] sm:$0xff] %v4521_v7  ;;  %v2083_v33 = vstv %s4449_s4  ;;  %v659_v52 = vadd.f32 %v4235_v3, %v4356_v18  ;;  %v2024_v49 = vrot.slane %v2020_v62, 1  ;;  %v2045_v7 = vmul.f32 %v4270_v37, %v2044_v6  ;;  %s4831_s4 = sld [smem:[#allocation4 + $0xb80]] }
 0x107   : > { %v4527_v43 = vpop.permute.xlu1 %901  ;;  %v2070_v54 = vstv %s4466_s25  ;;  %v4540_v42 = vadd.f32 %v4114_v51, %v633_v0  ;;  %v4543_v32 = vadd.f32 %v4155_v23, %v620_v53  ;;  %v4548_v34 = vmul.f32 %v4429_v63, %v1038_v61  ;;  %s4846_s25 = sld [smem:[#allocation4 + $0xb83]] }
 0x108   : > { %v4533_v12 = vpop.permute.xlu0 %888  ;;  %v2062_v3 = vrot.slane %v2058_v36, 1  ;;  %v2046_v18 = vmul.f32 %v4463_v48, %v2044_v6  ;;  %v2084_v62 = vmul.f32 %v4270_v37, %v2083_v33  ;;  %v2085_v51 = vmul.f32 %v4463_v48, %v2083_v33 }
 0x109   : > { %1813 = vrot.lane.b32.xlu1 %v4332_v14, %s5492_s18  ;;  %v2109_v19 = vstv %s4488_s26  ;;  %v646_v23 = vadd.f32 %v4243_v25, %v4371_v44  ;;  %v2063_v53 = vrot.slane %v2059_v55, 1  ;;  %v2071_v0 = vmul.f32 %v4270_v37, %v2070_v54  ;;  %s4875_s26 = sld [smem:[#allocation4 + $0xb82]] }
 0x10a   : > { %1805 = vrot.lane.b32.xlu0 %v4346_v47, %s5492_s18  ;;  %v2072_v47 = vmul.f32 %v4463_v48, %v2070_v54  ;;  %v4569_v6 = vadd.f32 %v4185_v40, %v659_v52  ;;  %v4574_v36 = vsel %vm421_vm1, %v2036_v17, %v2037_v8  ;;  %v4577_v25 = vsel %vm421_vm1, %v2023_v15, %v2024_v49 }
 0x10b   : > { %v4560_v14 = vpop.permute.xlu1 %927  ;;  %v2049_v44 = vrot.slane %v2045_v7, 1  ;;  %v685_v61 = vadd.f32 %v4277_v30, %v4420_v24  ;;  %v2110_v55 = vmul.f32 %v4270_v37, %v2109_v19  ;;  %v2111_v40 = vmul.f32 %v4463_v48, %v2109_v19 }
 0x10c   : > { %v4571_v33 = vpop.permute.xlu0 %914  ;;  %v2096_v52 = vstv %s4516_s27  ;;  %v672_v17 = vadd.f32 %v4286_v58, %v4424_v41  ;;  %v2050_v8 = vrot.slane %v2046_v18, 1  ;;  %v2088_v7 = vrot.slane %v2084_v62, 1  ;;  %s4884_s27 = sld [smem:[#allocation4 + $0xb85]] }
 0x10d   : > { %1829 = vrot.lane.b32.xlu1 %v4361_v45, %s5492_s18  ;;  %v2089_v15 = vrot.slane %v2085_v51, 1  ;;  %v4593_v30 = vadd.f32 %v4191_v57, %v646_v23  ;;  %v4598_v24 = vsel %vm421_vm1, %v2062_v3, %v2063_v53  ;;  %v2075_v49 = vrot.slane %v2071_v0, 1 }
 0x10e   : > { %1821 = vrot.lane.b32.xlu0 %v4376_v5, %s5492_s18  ;;  %v2076_v54 = vrot.slane %v2072_v47, 1  ;;  %v711_v58 = vadd.f32 %v4326_v38, %v4470_v31  ;;  %v2097_v5 = vmul.f32 %v4270_v37, %v2096_v52  ;;  %v2098_v18 = vmul.f32 %v4463_v48, %v2096_v52 }
 0x10f   : > { %v4595_v45 = vpop.permute.xlu1 %953  ;;  %v2135_v62 = vstv %s4537_s6  ;;  %v698_v57 = vadd.f32 %v4340_v39, %v4479_v50  ;;  %v4614_v3 = vadd.f32 %v4280_v1, %v685_v61  ;;  %v2114_v38 = vrot.slane %v2110_v55, 1  ;;  %s4890_s6 = sld [smem:[#allocation4 + $0xb84]] }
 0x110   : > { %v4602_v41 = vpop.permute.xlu0 %940  ;;  %v2115_v31 = vrot.slane %v2111_v40, 1  ;;  %v4621_v51 = vadd.f32 %v4289_v20, %v672_v17  ;;  %v4626_v19 = vsel %vm421_vm1, %v2049_v44, %v2050_v8  ;;  %v4629_v39 = vsel %vm421_vm1, %v2088_v7, %v2089_v15  ;;  %v4660_v8 = vld [vmem:[%s3217_s13 + $0x20] sm:$0x3] }
 0x111   : > { %1845 = vrot.lane.b32.xlu1 %v4379_v21, %s5492_s18  ;;  %v2122_v1 = vstv %s4556_s7  ;;  %v4635_v21 = vsel %vm421_vm1, %v2075_v49, %v2076_v54  ;;  %v2136_v23 = vmul.f32 %v4270_v37, %v2135_v62  ;;  %v1185_v20 = vstv %s4564_s28  ;;  %s4894_s7 = sld [smem:[#allocation4 + $0xb87]]  ;;  %s4900_s28 = sld [smem:[#allocation4 + $0xb86]] }
 0x112   : > { %1837 = vrot.lane.b32.xlu0 %v4387_v56, %s5492_s18  ;;  %v1174_v53 = vstv %s4566_s29  ;;  %v4641_v56 = vadd.f32 %v4329_v4, %v711_v58  ;;  %v2101_v47 = vrot.slane %v2097_v5, 1  ;;  %v2102_v44 = vrot.slane %v2098_v18, 1  ;;  %s4950_s29 = sld [smem:[#allocation4 + $0xd01]] }
 0x113   : > { %v4632_v50 = vpop.permute.xlu1 %979  ;;  %v2137_v61 = vmul.f32 %v4463_v48, %v2135_v62  ;;  %v4647_v55 = vadd.f32 %v4343_v26, %v698_v57  ;;  %v4652_v40 = vsel %vm421_vm1, %v2114_v38, %v2115_v31  ;;  %v2123_v52 = vmul.f32 %v4270_v37, %v2122_v1 }
 0x114   : > { %v4643_v0 = vpop.permute.xlu0 %966  ;;  %v2124_v4 = vmul.f32 %v4463_v48, %v2122_v1  ;;  %v1186_v17 = vmul.f32 %v4429_v63, %v1185_v20  ;;  %v1187_v26 = vmul.f32 %v4660_v8, %v1185_v20  ;;  %v2161_v7 = vstv %s4590_s30  ;;  %s4971_s30 = sld [smem:[#allocation4 + $0xd00]] }
 0x115   : > { %1861 = vrot.lane.b32.xlu1 %v4390_v10, %s5492_s18  ;;  %v1175_v10 = vmul.f32 %v4429_v63, %v1174_v53  ;;  %v4669_v15 = vadd.f32 %v4384_v28, %v4540_v42  ;;  %v2140_v54 = vrot.slane %v2136_v23, 1  ;;  %v1176_v58 = vmul.f32 %v4660_v8, %v1174_v53 }
 0x116   : > { %1853 = vrot.lane.b32.xlu0 %v4401_v35, %s5492_s18  ;;  %v4673_v35 = vadd.f32 %v4398_v9, %v4543_v32  ;;  %v4677_v18 = vsel %vm421_vm1, %v2101_v47, %v2102_v44  ;;  %v2141_v62 = vrot.slane %v2137_v61, 1  ;;  %v2148_v57 = vstv %s4607_s8  ;;  %s4998_s8 = sld [smem:[#allocation4 + $0x981]] }
 0x117   : > { %v1006_v49 = vpop.permute.xlu1 %1005  ;;  %v1207_v38 = vstv %s4609_s9  ;;  %v2127_v28 = vrot.slane %v2123_v52, 1  ;;  %v2128_v42 = vrot.slane %v2124_v4, 1  ;;  %v2162_v9 = vmul.f32 %v4270_v37, %v2161_v7  ;;  %s5004_s9 = sld [smem:[#allocation4 + $0x980]] }
 0x118   : > { %v993_v5 = vpop.permute.xlu0 %992  ;;  %v1196_v32 = vstv %s4618_s10  ;;  %v1190_v31 = vrot.slane %v1186_v17, 1  ;;  %v1191_v1 = vrot.slane %v1187_v26, 1  ;;  %v1179_v23 = vrot.slane %v1175_v10, 1  ;;  %s5009_s10 = sld [smem:[#allocation4 + $0xd03]] }
 0x119   : > { %1877 = vrot.lane.b32.xlu1 %v4404_v11, %s3124_s11  ;;  %v2163_v20 = vmul.f32 %v4463_v48, %v2161_v7  ;;  %v1180_v47 = vrot.slane %v1176_v58, 1  ;;  %v2149_v11 = vmul.f32 %v4270_v37, %v2148_v57  ;;  %v2150_v44 = vmul.f32 %v4463_v48, %v2148_v57 }
 0x11a   : > { %1869 = vrot.lane.b32.xlu0 %v4411_v60, %s3124_s11  ;;  %v1208_v61 = vmul.f32 %v4429_v63, %v1207_v38  ;;  %v4701_v60 = vadd.f32 %v4439_v59, %v4569_v6  ;;  %v4706_v4 = vsel %vm421_vm1, %v2140_v54, %v2141_v62  ;;  %v1209_v17 = vmul.f32 %v4660_v8, %v1207_v38 }
 0x11b   : > { %v4692_v53 = vpop.permute.xlu1 %1057  ;;  %v1197_v26 = vmul.f32 %v4429_v63, %v1196_v32  ;;  %v4712_v10 = vadd.f32 %v4451_v2, %v4593_v30  ;;  %v4717_v7 = vsel %vm421_vm1, %v2127_v28, %v2128_v42  ;;  %v2166_v59 = vrot.slane %v2162_v9, 1 }
 0x11c   : > { %v4703_v52 = vpop.permute.xlu0 %1049  ;;  %v1198_v6 = vmul.f32 %v4660_v8, %v1196_v32  ;;  %v4722_v54 = vadd.f32 %v4490_v29, %v4614_v3  ;;  %v4727_v2 = vsel %vm421_vm1, %v1190_v31, %v1191_v1  ;;  %v2167_v30 = vrot.slane %v2163_v20, 1  ;;  %v5512_v20 = vld [vmem:[#allocation17_spill] sm:$0xff] }
 0x11d   : > { %1893 = vrot.lane.b32.xlu1 %v4442_v46, %s3124_s11  ;;  %v2187_v58 = vstv %s4665_s12  ;;  %v4735_v62 = vsel %vm421_vm1, %v1179_v23, %v1180_v47  ;;  %v2153_v57 = vrot.slane %v2149_v11, 1  ;;  %v2154_v38 = vrot.slane %v2150_v44, 1  ;;  %s5011_s12 = sld [smem:[#allocation4 + $0xd02]] }
 0x11e   : > { %1885 = vrot.lane.b32.xlu0 %v4445_v16, %s3124_s11  ;;  %v1212_v29 = vrot.slane %v1208_v61, 1  ;;  %v904_v3 = vadd.f32 %v4527_v43, %v4641_v56  ;;  %v1213_v28 = vrot.slane %v1209_v17, 1  ;;  %v1201_v42 = vrot.slane %v1197_v26, 1 }
 0x11f   : > { %v4732_v46 = vpop.permute.xlu1 %1073  ;;  %v2174_v9 = vstv %s4681_s14  ;;  %v891_v32 = vadd.f32 %v4533_v12, %v4647_v55  ;;  %v1202_v31 = vrot.slane %v1198_v6, 1  ;;  %v4747_v1 = vmul.f32 %v4270_v37, %v2187_v58  ;;  %s5016_s14 = sld [smem:[#allocation4 + $0x983]] }
 0x120   : > { %v4739_v16 = vpop.permute.xlu0 %1065  ;;  %v1229_v23 = vstv %s4687_s15  ;;  %v865_v43 = vadd.f32 %v4496_v22, %v4621_v51  ;;  %v1008_v56 = vadd.f32 %v1006_v49, %v904_v3  ;;  %v4755_v47 = vsel %vm421_vm1, %v2166_v59, %v2167_v30  ;;  %v5513_v59 = vld [vmem:[#allocation20_spill] sm:$0xff]  ;;  %v5514_v30 = vld [vmem:[#allocation21_spill] sm:$0xff]  ;;  %s5023_s15 = sld [smem:[#allocation4 + $0x982]] }
 0x121   : > { %1909 = vrot.lane.b32.xlu1 %v4460_v13, %s3124_s11  ;;  %v4758_v12 = vmul.f32 %v4463_v48, %v2187_v58  ;;  %v995_v55 = vadd.f32 %v993_v5, %v891_v32  ;;  %v4763_v11 = vmul.f32 %v4270_v37, %v2174_v9  ;;  %v4766_v44 = vmul.f32 %v4463_v48, %v2174_v9  ;;  %v5515_v9 = vld [vmem:[#allocation13_spill] sm:$0xff] }
 0x122   : > { %1901 = vrot.lane.b32.xlu0 %v5512_v20, %s3124_s11  ;;  %v1218_v22 = vstv %s4697_s16  ;;  %v930_v51 = vadd.f32 %v4560_v14, %v4669_v15  ;;  %v4776_v61 = vsel %vm421_vm1, %v2153_v57, %v2154_v38  ;;  %v4779_v5 = vsel %vm421_vm1, %v1212_v29, %v1213_v28  ;;  %v5516_v20 = vld [vmem:[#allocation14_spill] sm:$0xff]  ;;  %s5063_s16 = sld [smem:[#allocation4 + $0xd05]] }
 0x123   : > { %v4760_v13 = vpop.permute.xlu1 %1089  ;;  %v4782_v17 = vmul.f32 %v4429_v63, %v1229_v23  ;;  %v917_v26 = vadd.f32 %v4571_v33, %v4673_v35  ;;  %v4791_v14 = vsel %vm421_vm1, %v1201_v42, %v1202_v31  ;;  %v2192_v15 = vrot.slane %v4747_v1, 1 }
 0x124   : > { %v4773_v49 = vpop.permute.xlu0 %1081  ;;  %v4795_v6 = vmul.f32 %v4660_v8, %v1229_v23  ;;  %v1044_v58 = vadd.f32 %v4524_v27, %v1008_v56  ;;  %v4803_v33 = vmul.f32 %v4429_v63, %v1218_v22  ;;  %v4806_v35 = vmul.f32 %v4660_v8, %v1218_v22 }
 0x125   : > { %1925 = vrot.lane.b32.xlu1 %v5513_v59, %s3124_s11  ;;  %v2213_v57 = vstv %s4730_s17  ;;  %v1040_v29 = vadd.f32 %v4548_v34, %v995_v55  ;;  %v2193_v3 = vrot.slane %v4758_v12, 1  ;;  %v2179_v28 = vrot.slane %v4763_v11, 1  ;;  %s5069_s17 = sld [smem:[#allocation4 + $0xd04]] }
 0x126   : > { %1917 = vrot.lane.b32.xlu0 %v5514_v30, %s3124_s11  ;;  %v2180_v42 = vrot.slane %v4766_v44, 1  ;;  %v956_v27 = vadd.f32 %v4595_v45, %v4701_v60  ;;  %v1020_v32 = vadd.f32 %v5515_v9, %v930_v51  ;;  %v1234_v56 = vrot.slane %v4782_v17, 1 }
 0x127   : > { %v1106_v38 = vpop.permute.xlu1 %1105  ;;  %v943_v34 = vadd.f32 %v4602_v41, %v4712_v10  ;;  %v1016_v55 = vadd.f32 %v5516_v20, %v917_v26  ;;  %v4829_v45 = vmul.f32 %v4270_v37, %v2213_v57  ;;  %v1235_v41 = vrot.slane %v4795_v6, 1 }
 0x128   : > { %v4818_v31 = vadd.f32 %v1106_v38, %v1044_v58  ;;  %v1098_v23 = vpop.permute.xlu0 %1097  ;;  %v1060_v60 = vadd.f32 %v4692_v53, %v1020_v32  ;;  %v1223_v10 = vrot.slane %v4803_v33, 1  ;;  %v1224_v51 = vrot.slane %v4806_v35, 1  ;;  %v5517_v58 = vld [vmem:[#allocation15_spill] sm:$0xff] }
 0x129   : > { %v4824_v22 = vadd.f32 %v1098_v23, %v1040_v29  ;;  %2039 = vrot.lane.b32.xlu1 %v4574_v36, %s5492_s18  ;;  %v982_v36 = vadd.f32 %v4632_v50, %v4722_v54  ;;  %v1052_v26 = vadd.f32 %v4703_v52, %v1016_v55  ;;  %v4843_v30 = vmul.f32 %v4463_v48, %v2213_v57  ;;  %v5518_v23 = vld [vmem:[#allocation16_spill] sm:$0xff]  ;;  %v5519_v55 = vld [vmem:[#allocation18_spill] sm:$0xff] }
 0x12a   : > { %2026 = vrot.lane.b32.xlu0 %v4577_v25, %s5492_s18  ;;  %v2200_v53 = vstv %s4769_s23  ;;  %v969_v25 = vadd.f32 %v4643_v0, %v865_v43  ;;  %v1028_v38 = vadd.f32 %v5517_v58, %v956_v27  ;;  %v1251_v32 = vstv %s4784_s19  ;;  %s5078_s23 = sld [smem:[#allocation4 + $0x985]]  ;;  %s5086_s19 = sld [smem:[#allocation4 + $0x984]] }
 0x12b   : > { %v1122_v59 = vpop.permute.xlu1 %1121  ;;  %v1024_v50 = vadd.f32 %v5518_v23, %v943_v34  ;;  %v2218_v52 = vrot.slane %v4829_v45, 1  ;;  %v1240_v57 = vstv %s4797_s21  ;;  %v2201_v0 = vmul.f32 %v4270_v37, %v2200_v53  ;;  %s5108_s21 = sld [smem:[#allocation4 + $0xd07]] }
 0x12c   : > { %v4850_v29 = vadd.f32 %v1122_v59, %v1060_v60  ;;  %v1114_v9 = vpop.permute.xlu0 %1113  ;;  %v1076_v20 = vadd.f32 %v4732_v46, %v1028_v38  ;;  %v2202_v43 = vmul.f32 %v4463_v48, %v2200_v53  ;;  %v2327_v27 = vstv %s4809_s22  ;;  %v5520_v59 = vld [vmem:[#allocation19_spill] sm:$0xff]  ;;  %s5111_s22 = sld [smem:[#allocation4 + $0xd06]] }
 0x12d   : > { %v4854_v54 = vadd.f32 %v1114_v9, %v1052_v26  ;;  %2065 = vrot.lane.b32.xlu1 %v4598_v24, %s5492_s18  ;;  %v1068_v34 = vadd.f32 %v4739_v16, %v1024_v50  ;;  %v1036_v60 = vadd.f32 %v5519_v55, %v982_v36  ;;  %v1252_v24 = vmul.f32 %v4429_v63, %v1251_v32 }
 0x12e   : > { %2052 = vrot.lane.b32.xlu0 %v4626_v19, %s5492_s18  ;;  %v1253_v45 = vmul.f32 %v4660_v8, %v1251_v32  ;;  %v1032_v46 = vadd.f32 %v5520_v59, %v969_v25  ;;  %v1241_v38 = vmul.f32 %v4429_v63, %v1240_v57  ;;  %v1242_v53 = vmul.f32 %v4660_v8, %v1240_v57 }
 0x12f   : > { %v1138_v26 = vpop.permute.xlu1 %1137  ;;  %v2328_v16 = vmul.f32 %v4270_v37, %v2327_v27  ;;  %v2329_v36 = vmul.f32 %v4463_v48, %v2327_v27  ;;  %v2314_v25 = vstv %s4831_s4  ;;  %v1092_v32 = vadd.f32 %v4760_v13, %v1036_v60  ;;  %s5117_s4 = sld [smem:[#allocation4 + $0x987]] }
 0x130   : > { %v4871_v58 = vadd.f32 %v1138_v26, %v1076_v20  ;;  %v1130_v19 = vpop.permute.xlu0 %1129  ;;  %v2219_v23 = vrot.slane %v4843_v30, 1  ;;  %v2205_v50 = vrot.slane %v2201_v0, 1  ;;  %v2206_v57 = vrot.slane %v2202_v43, 1 }
 0x131   : > { %v4877_v9 = vadd.f32 %v1130_v19, %v1068_v34  ;;  %2091 = vrot.lane.b32.xlu1 %v4629_v39, %s5492_s18  ;;  %v1084_v39 = vadd.f32 %v4773_v49, %v1032_v46  ;;  %v1256_v34 = vrot.slane %v1252_v24, 1  ;;  %v1257_v55 = vrot.slane %v1253_v45, 1 }
 0x132   : > { %2078 = vrot.lane.b32.xlu0 %v4635_v21, %s5492_s18  ;;  %v2353_v27 = vstv %s4846_s25  ;;  %v1245_v60 = vrot.slane %v1241_v38, 1  ;;  %v2315_v21 = vmul.f32 %v4270_v37, %v2314_v25  ;;  %v2316_v30 = vmul.f32 %v4463_v48, %v2314_v25  ;;  %s5125_s25 = sld [smem:[#allocation4 + $0x986]] }
 0x133   : > { %v1154_v20 = vpop.permute.xlu1 %1153  ;;  %v1246_v49 = vrot.slane %v1242_v53, 1  ;;  %v2332_v43 = vrot.slane %v2328_v16, 2  ;;  %v2333_v24 = vrot.slane %v2329_v36, 2  ;;  %v2194_v45 = vsel %vm421_vm1, %v2192_v15, %v2193_v3 }
 0x134   : > { %v4896_v26 = vadd.f32 %v1154_v20, %v1092_v32  ;;  %v1146_v13 = vpop.permute.xlu0 %1145  ;;  %v4918_v59 = vsel %vm421_vm1, %v2179_v28, %v2180_v42  ;;  %v4935_v12 = vsel %vm421_vm1, %v1223_v10, %v1224_v51  ;;  %v4938_v11 = vsel %vm421_vm1, %v2218_v52, %v2219_v23 }
 0x135   : > { %v4902_v0 = vadd.f32 %v1146_v13, %v1084_v39  ;;  %2117 = vrot.lane.b32.xlu1 %v4652_v40, %s5492_s18  ;;  %v4925_v40 = vsel %vm421_vm1, %v1234_v56, %v1235_v41  ;;  %v4941_v44 = vsel %vm421_vm1, %v2205_v50, %v2206_v57  ;;  %v4944_v17 = vsel %vm421_vm1, %v1256_v34, %v1257_v55 }
 0x136   : > { %2104 = vrot.lane.b32.xlu0 %v4677_v18, %s5492_s18  ;;  %v4928_v18 = vmul.f32 %v4270_v37, %v2353_v27  ;;  %v2319_v35 = vrot.slane %v2315_v21, 2  ;;  %v2320_v3 = vrot.slane %v2316_v30, 2  ;;  %v2340_v33 = vstv %s4875_s26  ;;  %s2913_s26 = sld [smem:[#allocation4 + $0x100]] }
 0x137   : > { %v1170_v1 = vpop.permute.xlu1 %1169  ;;  %v4958_v42 = vsel %vm421_vm1, %v1245_v60, %v1246_v49  ;;  %v4961_v56 = vsel %vm718_vm2, %v2332_v43, %v2333_v24  ;;  %v1194_v41 = vadd.f32 %v4727_v2, %v4850_v29  ;;  %v2366_v51 = vstv %s4890_s6  ;;  %s2915_s6 = sld [smem:[#allocation4 + $0x102]] }
 0x138   : > { %v4947_v15 = vadd.f32 %v1170_v1, %v4818_v31  ;;  %v1162_v6 = vpop.permute.xlu0 %1161  ;;  %v2379_v31 = vstv %s4884_s27  ;;  %v2358_v10 = vrot.slane %v4928_v18, 2  ;;  %v1183_v52 = vadd.f32 %v4735_v62, %v4854_v54  ;;  %s2916_s27 = sld [smem:[#allocation4 + $0x103]] }
 0x139   : > { %v4953_v28 = vadd.f32 %v1162_v6, %v4824_v22  ;;  %2143 = vrot.lane.b32.xlu1 %v4706_v4, %s3124_s11  ;;  %v2355_v22 = vmul.f32 %v4463_v48, %v2353_v27  ;;  %v2341_v46 = vmul.f32 %v4270_v37, %v2340_v33  ;;  %v2342_v19 = vmul.f32 %v4463_v48, %v2340_v33 }
 0x13a   : > { %2130 = vrot.lane.b32.xlu0 %v4717_v7, %s3124_s11  ;;  %v2405_v38 = vstv %s4894_s7  ;;  %v4981_v2 = vsel %vm718_vm2, %v2319_v35, %v2320_v3  ;;  %v2380_v29 = vmul.f32 %v4270_v37, %v2379_v31  ;;  %v2392_v16 = vstv %s4900_s28  ;;  %s2917_s7 = sld [smem:[#allocation4 + $0x104]]  ;;  %s2920_s28 = sld [smem:[#allocation4 + $0x107]] }
 0x13b   : > { %v1284_v4 = vpop.permute.xlu1 %1283  ;;  %v2381_v62 = vmul.f32 %v4463_v48, %v2379_v31  ;;  %v2367_v54 = vmul.f32 %v4270_v37, %v2366_v51  ;;  %v2368_v25 = vmul.f32 %v4463_v48, %v2366_v51  ;;  %v1216_v32 = vadd.f32 %v4779_v5, %v4871_v58 }
 0x13c   : > { %v4978_v7 = vadd.f32 %v1284_v4, %v1194_v41  ;;  %v1271_v53 = vpop.permute.xlu0 %1270  ;;  %v2359_v23 = vrot.slane %v2355_v22, 2  ;;  %v2406_v50 = vmul.f32 %v4270_v37, %v2405_v38  ;;  %v2407_v57 = vmul.f32 %v4463_v48, %v2405_v38 }
 0x13d   : > { %v4985_v36 = vadd.f32 %v1271_v53, %v1183_v52  ;;  %2169 = vrot.lane.b32.xlu1 %v4755_v47, %s3124_s11  ;;  %v1205_v39 = vadd.f32 %v4791_v14, %v4877_v9  ;;  %v2345_v20 = vrot.slane %v2341_v46, 2  ;;  %v2393_v34 = vmul.f32 %v4270_v37, %v2392_v16 }
 0x13e   : > { %2156 = vrot.lane.b32.xlu0 %v4776_v61, %s3124_s11  ;;  %v2394_v61 = vmul.f32 %v4463_v48, %v2392_v16  ;;  %v2346_v58 = vrot.slane %v2342_v19, 2  ;;  %v2384_v27 = vrot.slane %v2380_v29, 2  ;;  %v2431_v13 = vstv %s4950_s29  ;;  %s2919_s29 = sld [smem:[#allocation4 + $0x106]] }
 0x13f   : > { %v1310_v47 = vpop.permute.xlu1 %1309  ;;  %v2385_v14 = vrot.slane %v2381_v62, 2  ;;  %v2371_v9 = vrot.slane %v2367_v54, 2  ;;  %v2372_v21 = vrot.slane %v2368_v25, 2  ;;  %v1238_v30 = vadd.f32 %v4925_v40, %v4896_v26 }
 0x140   : > { %v5006_v55 = vadd.f32 %v1310_v47, %v1216_v32  ;;  %v1297_v5 = vpop.permute.xlu0 %1296  ;;  %v2410_v49 = vrot.slane %v2406_v50, 2  ;;  %v2411_v43 = vrot.slane %v2407_v57, 2  ;;  %v2418_v24 = vstv %s4971_s30  ;;  %s2938_s30 = sld [smem:[#allocation4 + $0x581]] }
 0x141   : > { %v5013_v60 = vadd.f32 %v1297_v5, %v1205_v39  ;;  %2195 = vrot.lane.b32.xlu1 %v2194_v45, %s3124_s11  ;;  %v1227_v45 = vadd.f32 %v4935_v12, %v4902_v0  ;;  %v2397_v1 = vrot.slane %v2393_v34, 2  ;;  %v2398_v6 = vrot.slane %v2394_v61, 2 }
 0x142   : > { %2182 = vrot.lane.b32.xlu0 %v4918_v59, %s3124_s11  ;;  %v2432_v35 = vmul.f32 %v4270_v37, %v2431_v13  ;;  %v2360_v33 = vsel %vm718_vm2, %v2358_v10, %v2359_v23  ;;  %v2347_v26 = vsel %vm718_vm2, %v2345_v20, %v2346_v58  ;;  %v2433_v40 = vmul.f32 %v4463_v48, %v2431_v13 }
 0x143   : > { %v1336_v18 = vpop.permute.xlu1 %1335  ;;  %v5038_v0 = vsel %vm718_vm2, %v2384_v27, %v2385_v14  ;;  %v5041_v12 = vsel %vm718_vm2, %v2371_v9, %v2372_v21  ;;  %v5044_v41 = vmul.f32 %v4270_v37, %v2418_v24  ;;  %v1260_v22 = vadd.f32 %v4944_v17, %v4947_v15 }
 0x144   : > { %v5028_v3 = vadd.f32 %v1336_v18, %v1238_v30  ;;  %v1323_v59 = vpop.permute.xlu0 %1322  ;;  %v5051_v10 = vsel %vm718_vm2, %v2410_v49, %v2411_v43  ;;  %v1481_v51 = vstv %s4998_s8  ;;  %v1249_v52 = vadd.f32 %v4958_v42, %v4953_v28  ;;  %s2937_s8 = sld [smem:[#allocation4 + $0x580]] }
 0x145   : > { %v5033_v31 = vadd.f32 %v1323_v59, %v1227_v45  ;;  %2221 = vrot.lane.b32.xlu1 %v4938_v11, %s3124_s11  ;;  %v5054_v11 = vmul.f32 %v4463_v48, %v2418_v24  ;;  %v5060_v46 = vsel %vm718_vm2, %v2397_v1, %v2398_v6  ;;  %v2436_v19 = vrot.slane %v2432_v35, 2 }
 0x146   : > { %2208 = vrot.lane.b32.xlu0 %v4941_v44, %s3124_s11  ;;  %v1470_v44 = vstv %s5004_s9  ;;  %v2437_v38 = vrot.slane %v2433_v40, 2  ;;  %v2457_v53 = vstv %s5009_s10  ;;  %v2444_v29 = vstv %s5011_s12  ;;  %s2940_s9 = sld [smem:[#allocation4 + $0x583]]  ;;  %s5247_s10 = sld [smem:[#allocation4 + $0x582]] }
 0x147   : > { %v1362_v4 = vpop.permute.xlu1 %1361  ;;  %v2423_v28 = vrot.slane %v5044_v41, 2  ;;  %v1482_v42 = vmul.f32 %v4429_v63, %v1481_v51  ;;  %v1503_v62 = vstv %s5016_s14  ;;  %v1483_v54 = vmul.f32 %v4660_v8, %v1481_v51  ;;  %v5130_v41 = vld [vmem:[%s3217_s13 + $0x30] sm:$0xff]  ;;  %s5251_s12 = sld [smem:[#allocation4 + $0x585]]  ;;  %s5255_s14 = sld [smem:[#allocation4 + $0x584]] }
 0x148   : > { %v5065_v17 = vadd.f32 %v1362_v4, %v1260_v22  ;;  %v1349_v15 = vpop.permute.xlu0 %1348  ;;  %v1471_v25 = vmul.f32 %v4429_v63, %v1470_v44  ;;  %v1472_v32 = vmul.f32 %v4660_v8, %v1470_v44  ;;  %v1492_v23 = vstv %s5023_s15  ;;  %s5262_s15 = sld [smem:[#allocation4 + $0x587]] }
 0x149   : > { %v5071_v16 = vadd.f32 %v1349_v15, %v1249_v52  ;;  %2335 = vrot.lane.b32.xlu1 %v4961_v56, %s5492_s18  ;;  %v2424_v50 = vrot.slane %v5054_v11, 2  ;;  %v2458_v57 = vmul.f32 %v4270_v37, %v2457_v53  ;;  %v2459_v47 = vmul.f32 %v4463_v48, %v2457_v53 }
 0x14a   : > { %2322 = vrot.lane.b32.xlu0 %v4981_v2, %s5492_s18  ;;  %v2445_v39 = vmul.f32 %v4270_v37, %v2444_v29  ;;  %v5096_v34 = vsel %vm718_vm2, %v2436_v19, %v2437_v38  ;;  %v2446_v61 = vmul.f32 %v4463_v48, %v2444_v29  ;;  %v1504_v5 = vmul.f32 %v4429_v63, %v1503_v62 }
 0x14b   : > { %v1388_v56 = vpop.permute.xlu1 %1387  ;;  %v1486_v27 = vrot.slane %v1482_v42, 2  ;;  %v1505_v37 = vmul.f32 %v4660_v8, %v1503_v62  ;;  %v1487_v13 = vrot.slane %v1483_v54, 2  ;;  %v1475_v14 = vrot.slane %v1471_v25, 2 }
 0x14c   : > { %v5093_v2 = vadd.f32 %v1388_v56, %v4978_v7  ;;  %v1375_v20 = vpop.permute.xlu0 %1374  ;;  %v1493_v7 = vmul.f32 %v4429_v63, %v1492_v23  ;;  %v1476_v9 = vrot.slane %v1472_v32, 2  ;;  %v1494_v21 = vmul.f32 %v4660_v8, %v1492_v23 }
 0x14d   : > { %v5101_v58 = vadd.f32 %v1375_v20, %v4985_v36  ;;  %2361 = vrot.lane.b32.xlu1 %v2360_v33, %s5492_s18  ;;  %v2462_v36 = vrot.slane %v2458_v57, 2  ;;  %v2463_v49 = vrot.slane %v2459_v47, 2  ;;  %v2449_v43 = vrot.slane %v2445_v39, 2 }
 0x14e   : > { %2348 = vrot.lane.b32.xlu0 %v2347_v26, %s5492_s18  ;;  %v2483_v24 = vstv %s5063_s16  ;;  %v2450_v1 = vrot.slane %v2446_v61, 2  ;;  %v1508_v6 = vrot.slane %v1504_v5, 2  ;;  %v2470_v35 = vstv %s5069_s17  ;;  %s5264_s16 = sld [smem:[#allocation4 + $0x586]]  ;;  %s5270_s17 = sld [smem:[#allocation4 + $0xa01]] }
 0x14f   : > { %v1414_v30 = vpop.permute.xlu1 %1413  ;;  %v1509_v33 = vrot.slane %v1505_v37, 2  ;;  %v1497_v26 = vrot.slane %v1493_v7, 2  ;;  %v1525_v40 = vstv %s5078_s23  ;;  %v2484_v22 = vmul.f32 %v5130_v41, %v2483_v24  ;;  %s5284_s23 = sld [smem:[#allocation4 + $0xa03]] }
 0x150   : > { %v5114_v18 = vadd.f32 %v1414_v30, %v5006_v55  ;;  %v1401_v45 = vpop.permute.xlu0 %1400  ;;  %v1498_v55 = vrot.slane %v1494_v21, 2  ;;  %v2485_v11 = vmul.f32 %v4463_v48, %v2483_v24  ;;  %v2425_v4 = vsel %vm718_vm2, %v2423_v28, %v2424_v50  ;;  %v3036_v24 = vld [vmem:[%s3217_s13 + $0x18] sm:$0xff] }
 0x151   : > { %v5120_v59 = vadd.f32 %v1401_v45, %v5013_v60  ;;  %2387 = vrot.lane.b32.xlu1 %v5038_v0, %s5492_s18  ;;  %v1514_v60 = vstv %s5086_s19  ;;  %v1488_v0 = vsel %vm718_vm2, %v1486_v27, %v1487_v13  ;;  %v2471_v52 = vmul.f32 %v5130_v41, %v2470_v35  ;;  %s5287_s19 = sld [smem:[#allocation4 + $0xa02]] }
 0x152   : > { %2374 = vrot.lane.b32.xlu0 %v5041_v12, %s5492_s18  ;;  %v2472_v19 = vmul.f32 %v4463_v48, %v2470_v35  ;;  %v1477_v15 = vsel %vm718_vm2, %v1475_v14, %v1476_v9  ;;  %v2464_v38 = vsel %vm718_vm2, %v2462_v36, %v2463_v49  ;;  %v1526_v53 = vmul.f32 %v4429_v63, %v1525_v40 }
 0x153   : > { %v1440_v51 = vpop.permute.xlu1 %1439  ;;  %v2451_v28 = vsel %vm718_vm2, %v2449_v43, %v2450_v1  ;;  %v1515_v42 = vmul.f32 %v4429_v63, %v1514_v60  ;;  %v1510_v62 = vsel %vm718_vm2, %v1508_v6, %v1509_v33  ;;  %v1499_v54 = vsel %vm718_vm2, %v1497_v26, %v1498_v55 }
 0x154   : > { %v5140_v44 = vadd.f32 %v1440_v51, %v5028_v3  ;;  %v1427_v12 = vpop.permute.xlu0 %1426  ;;  %v1527_v3 = vmul.f32 %v4660_v8, %v1525_v40  ;;  %v2488_v25 = vrot.slane %v2484_v22, 2  ;;  %v2475_v23 = vrot.slane %v2471_v52, 2 }
 0x155   : > { %v5146_v29 = vadd.f32 %v1427_v12, %v5033_v31  ;;  %2413 = vrot.lane.b32.xlu1 %v5051_v10, %s5492_s18  ;;  %v2489_v31 = vrot.slane %v2485_v11, 2  ;;  %v2476_v10 = vrot.slane %v2472_v19, 2  ;;  %v2509_v56 = vstv %s5108_s21  ;;  %s5295_s21 = sld [smem:[#allocation4 + $0xa05]] }
 0x156   : > { %2400 = vrot.lane.b32.xlu0 %v5060_v46, %s5492_s18  ;;  %v2496_v50 = vstv %s5111_s22  ;;  %v1530_v39 = vrot.slane %v1526_v53, 2  ;;  %v1516_v20 = vmul.f32 %v4660_v8, %v1514_v60  ;;  %v1547_v61 = vstv %s5117_s4  ;;  %s2914_s18 = sld [smem:[#allocation4 + $0x101]]  ;;  %s5324_s22 = sld [smem:[#allocation4 + $0xa04]] }
 0x157   : > { %v1466_v32 = vpop.permute.xlu1 %1465  ;;  %v1531_v5 = vrot.slane %v1527_v3, 2  ;;  %v1519_v27 = vrot.slane %v1515_v42, 2  ;;  %v1536_v37 = vstv %s5125_s25  ;;  %v1490_v7 = vadd.f32 %v1488_v0, %v5093_v2  ;;  %s5329_s4 = sld [smem:[#allocation4 + $0xa07]]  ;;  %s5344_s25 = sld [smem:[#allocation4 + $0xa06]] }
 0x158   : > { %v1468_v57 = vadd.f32 %v1466_v32, %v5065_v17  ;;  %v1453_v47 = vpop.permute.xlu0 %1452  ;;  %v2510_v17 = vmul.f32 %v5130_v41, %v2509_v56  ;;  %v2511_v13 = vmul.f32 %v4463_v48, %v2509_v56  ;;  %v2497_v14 = vmul.f32 %v5130_v41, %v2496_v50 }
 0x159   : > { %v1455_v46 = vadd.f32 %v1453_v47, %v5071_v16  ;;  %2439 = vrot.lane.b32.xlu1 %v5096_v34, %s3124_s11  ;;  %v1479_v16 = vadd.f32 %v1477_v15, %v5101_v58  ;;  %v2498_v21 = vmul.f32 %v4463_v48, %v2496_v50  ;;  %v1548_v34 = vmul.f32 %v4429_v63, %v1547_v61 }
 0x15a   : > { %2426 = vrot.lane.b32.xlu0 %v2425_v4, %s3124_s11  ;;  %v1549_v30 = vmul.f32 %v4660_v8, %v1547_v61  ;;  %v1520_v43 = vrot.slane %v1516_v20, 2  ;;  %v1537_v2 = vmul.f32 %v3036_v24, %v1536_v37  ;;  %v1538_v45 = vmul.f32 %v4660_v8, %v1536_v37 }
 0x15b   : > { %v1580_v9 = vpop.permute.xlu1 %1579  ;;  %v2490_v6 = vsel %vm718_vm2, %v2488_v25, %v2489_v31  ;;  %v2477_v58 = vsel %vm718_vm2, %v2475_v23, %v2476_v10  ;;  %v1532_v48 = vsel %vm718_vm2, %v1530_v39, %v1531_v5  ;;  %v1512_v63 = vadd.f32 %v1510_v62, %v5114_v18 }
 0x15c   : > { %v1582_v36 = vadd.f32 %v1580_v9, %v1490_v7  ;;  %v1567_v49 = vpop.permute.xlu0 %1566  ;;  %v2514_v35 = vrot.slane %v2510_v17, 2  ;;  %v2515_v33 = vrot.slane %v2511_v13, 2  ;;  %v2501_v26 = vrot.slane %v2497_v14, 2 }
 0x15d   : > { %v1569_v1 = vadd.f32 %v1567_v49, %v1479_v16  ;;  %2465 = vrot.lane.b32.xlu1 %v2464_v38, %s3124_s11  ;;  %v1501_v55 = vadd.f32 %v1499_v54, %v5120_v59  ;;  %v2502_v8 = vrot.slane %v2498_v21, 2  ;;  %v1552_v22 = vrot.slane %v1548_v34, 2 }
 0x15e   : > { %2452 = vrot.lane.b32.xlu0 %v2451_v28, %s3124_s11  ;;  %v1553_v11 = vrot.slane %v1549_v30, 2  ;;  %v1521_v4 = vsel %vm718_vm2, %v1519_v27, %v1520_v43  ;;  %v1541_v0 = vrot.slane %v1537_v2, 2  ;;  %v1542_v52 = vrot.slane %v1538_v45, 2 }
 0x15f   : > { %v1606_v40 = vpop.permute.xlu1 %1605  ;;  %v1534_v18 = vadd.f32 %v1532_v48, %v5140_v44  ;;  %v2516_v12 = vsel %vm718_vm2, %v2514_v35, %v2515_v33  ;;  %v1523_v59 = vadd.f32 %v1521_v4, %v5146_v29  ;;  %v2503_v38 = vsel %vm718_vm2, %v2501_v26, %v2502_v8 }
 0x160   : > { %v1608_v60 = vadd.f32 %v1606_v40, %v1512_v63  ;;  %v1593_v51 = vpop.permute.xlu0 %1592  ;;  %v1554_v53 = vsel %vm718_vm2, %v1552_v22, %v1553_v11  ;;  %v1543_v42 = vsel %vm718_vm2, %v1541_v0, %v1542_v52  ;;  %v1774_v27 = vstv %s2914_s18 }
 0x161   : > { %v1595_v19 = vadd.f32 %v1593_v51, %v1501_v55  ;;  %2491 = vrot.lane.b32.xlu1 %v2490_v6, %s3124_s11  ;;  %v1556_v54 = vadd.f32 %v1554_v53, %v1468_v57  ;;  %v1545_v25 = vadd.f32 %v1543_v42, %v1455_v46  ;;  %v1770_v37 = vstv %s2913_s26 }
 0x162   : > { %2478 = vrot.lane.b32.xlu0 %v2477_v58, %s3124_s11  ;;  %v1775_v17 = vmul.f32 %v5130_v41, %v1774_v27  ;;  %v1771_v14 = vmul.f32 %v5130_v41, %v1770_v37  ;;  %v1782_v9 = vstv %s2916_s27  ;;  %v1778_v34 = vstv %s2915_s6  ;;  %v5259_v37 = vld [vmem:[%s3217_s13 + $0x38] sm:$0x3]  ;;  %s5274_s13 = sld [smem:[#allocation4 + $0xa00]] }
 0x163   : > { %v1632_v15 = vpop.permute.xlu1 %1631  ;;  %v1783_v49 = vmul.f32 %v5130_v41, %v1782_v9  ;;  %v1779_v2 = vmul.f32 %v5130_v41, %v1778_v34  ;;  %v1786_v58 = vstv %s2917_s7  ;;  %v1798_v55 = vstv %s2920_s28 }
 0x164   : > { %v1634_v28 = vadd.f32 %v1632_v15, %v1534_v18  ;;  %v1619_v3 = vpop.permute.xlu0 %1618  ;;  %v1787_v40 = vmul.f32 %v5130_v41, %v1786_v58  ;;  %v1794_v11 = vstv %s2919_s29  ;;  %v1799_v4 = vmul.f32 %v5130_v41, %v1798_v55 }
 0x165   : > { %v1621_v62 = vadd.f32 %v1619_v3, %v1523_v59  ;;  %2517 = vrot.lane.b32.xlu1 %v2516_v12, %s3124_s11  ;;  %v1930_v27 = vstv %s2937_s8  ;;  %v1996_v55 = vstv %s5264_s16 }
 0x166   : > { %2504 = vrot.lane.b32.xlu0 %v2503_v38, %s3124_s11  ;;  %s2918_s11 = sld [smem:[#allocation4 + $0x105]] }
 0x167   : > { %v1658_v44 = vpop.permute.xlu1 %1657 }
 0x168   : > { %v1660_v31 = vadd.f32 %v1658_v44, %v1556_v54  ;;  %v1645_v32 = vpop.permute.xlu0 %1644 }
 0x169   : > { %v1647_v23 = vadd.f32 %v1645_v32, %v1545_v25 }
 0x16b   : > { %v1684_v29 = vpop.permute.xlu1 %1683 }
 0x16c   : > { %v1686_v10 = vadd.f32 %v1684_v29, %v1582_v36  ;;  %v1671_v56 = vpop.permute.xlu0 %1670  ;;  %v1790_v45 = vstv %s2918_s11 }
 0x16d   : > { %v1673_v50 = vadd.f32 %v1671_v56, %v1569_v1  ;;  %v1791_v35 = vmul.f32 %v5130_v41, %v1790_v45  ;;  %v1985_v45 = vstv %s5251_s12 }
 0x16e   : > { %v1776_v36 = vadd.f32 %v1775_v17, %v1686_v10  ;;  %v1963_v17 = vstv %s2940_s9 }
 0x16f   : > { %v1710_v47 = vpop.permute.xlu1 %1709  ;;  %v1772_v24 = vadd.f32 %v1771_v14, %v1673_v50  ;;  %v1932_v14 = vmul.f32 %v5259_v37, %v1930_v27  ;;  %v1965_v34 = vmul.f32 %v5259_v37, %v1963_v17 }
 0x170   : > { %v1712_v39 = vadd.f32 %v1710_v47, %v1608_v60  ;;  %v1697_v20 = vpop.permute.xlu0 %1696 }
 0x171   : > { %v1699_v61 = vadd.f32 %v1697_v20, %v1595_v19  ;;  %v1795_v19 = vmul.f32 %v5130_v41, %v1794_v11 }
 0x172   : > { %v1784_v63 = vadd.f32 %v1783_v49, %v1712_v39 }
 0x173   : > { %v1736_v5 = vpop.permute.xlu1 %1735  ;;  %v1780_v26 = vadd.f32 %v1779_v2, %v1699_v61  ;;  %v1941_v61 = vstv %s2938_s30 }
 0x174   : > { %v1738_v57 = vadd.f32 %v1736_v5, %v1634_v28  ;;  %v1723_v46 = vpop.permute.xlu0 %1722 }
 0x175   : > { %v1725_v7 = vadd.f32 %v1723_v46, %v1621_v62  ;;  %v1942_v46 = vmul.f32 %v5130_v41, %v1941_v61 }
 0x176   : > { %v1792_v51 = vadd.f32 %v1791_v35, %v1738_v57  ;;  %v1974_v35 = vstv %s5255_s14 }
 0x177   : > { %v1762_v13 = vpop.permute.xlu1 %1761  ;;  %v1788_v52 = vadd.f32 %v1787_v40, %v1725_v7  ;;  %v1943_v7 = vmul.f32 %v5259_v37, %v1941_v61  ;;  %v2007_v40 = vstv %s5262_s15 }
 0x178   : > { %v1764_v16 = vadd.f32 %v1762_v13, %v1660_v31  ;;  %v1749_v21 = vpop.permute.xlu0 %1748  ;;  %v1931_v13 = vmul.f32 %v5130_v41, %v1930_v27  ;;  %v2009_v61 = vmul.f32 %v5259_v37, %v2007_v40  ;;  %v1997_v27 = vmul.f32 %v5130_v41, %v1996_v55 }
 0x179   : > { %v1751_v30 = vadd.f32 %v1749_v21, %v1647_v23  ;;  %v1964_v21 = vmul.f32 %v5130_v41, %v1963_v17 }
 0x17a   : > { %v1800_v59 = vadd.f32 %v1799_v4, %v1764_v16  ;;  %v1935_v49 = vrot.slane %v1931_v13, 1 }
 0x17b   : > { %v1814_v43 = vpop.permute.xlu1 %1813  ;;  %v1796_v53 = vadd.f32 %v1795_v19, %v1751_v30  ;;  %v1946_v30 = vrot.slane %v1942_v46, 1  ;;  %v1968_v58 = vrot.slane %v1964_v21, 1  ;;  %v1975_v19 = vmul.f32 %v5130_v41, %v1974_v35 }
 0x17c   : > { %v5199_v1 = vadd.f32 %v1814_v43, %v1776_v36  ;;  %v1806_v6 = vpop.permute.xlu0 %1805  ;;  %v1947_v36 = vrot.slane %v1943_v7, 1  ;;  %v1936_v43 = vrot.slane %v1932_v14, 1  ;;  %v1998_v7 = vmul.f32 %v5259_v37, %v1996_v55 }
 0x17d   : > { %v5201_v48 = vadd.f32 %v1806_v6, %v1772_v24  ;;  %v1952_v24 = vstv %s5247_s10 }
 0x17e   : > { %v1954_v11 = vmul.f32 %v5259_v37, %v1952_v24  ;;  %v2002_v55 = vrot.slane %v1998_v7, 1 }
 0x17f   : > { %v1830_v33 = vpop.permute.xlu1 %1829 }
 0x180   : > { %v5205_v8 = vadd.f32 %v1830_v33, %v1784_v63  ;;  %v1822_v22 = vpop.permute.xlu0 %1821  ;;  %v1969_v63 = vrot.slane %v1965_v34, 1  ;;  %v5290_v33 = vsel %vm421_vm1, %v1946_v30, %v1947_v36  ;;  %v1958_v14 = vrot.slane %v1954_v11, 1 }
 0x181   : > { %v5207_v60 = vadd.f32 %v1822_v22, %v1780_v26  ;;  %v1953_v26 = vmul.f32 %v5130_v41, %v1952_v24  ;;  %v5298_v22 = vsel %vm421_vm1, %v1935_v49, %v1936_v43  ;;  %v1979_v43 = vrot.slane %v1975_v19, 1 }
 0x183   : > { %v1846_v0 = vpop.permute.xlu1 %1845  ;;  %v1957_v46 = vrot.slane %v1953_v26, 1  ;;  %v2001_v26 = vrot.slane %v1997_v27, 1 }
 0x184   : > { %v5211_v18 = vadd.f32 %v1846_v0, %v1792_v51  ;;  %v1838_v12 = vpop.permute.xlu0 %1837  ;;  %v1986_v51 = vmul.f32 %v5130_v41, %v1985_v45  ;;  %v2237_v0 = vstv %s5270_s17 }
 0x185   : > { %v5213_v15 = vadd.f32 %v1838_v12, %v1788_v52  ;;  %v1987_v52 = vmul.f32 %v5259_v37, %v1985_v45  ;;  %v1976_v12 = vmul.f32 %v5259_v37, %v1974_v35  ;;  %v2238_v17 = vmul.f32 %v5130_v41, %v2237_v0 }
 0x186   : > { %v2239_v13 = vmul.f32 %v5259_v37, %v2237_v0  ;;  %v1990_v21 = vrot.slane %v1986_v51, 1  ;;  %v2013_v35 = vrot.slane %v2009_v61, 1  ;;  %v2281_v0 = vstv %s5295_s21 }
 0x187   : > { %v1862_v38 = vpop.permute.xlu1 %1861  ;;  %v1991_v49 = vrot.slane %v1987_v52, 1  ;;  %v1980_v24 = vrot.slane %v1976_v12, 1  ;;  %v2242_v11 = vrot.slane %v2238_v17, 2 }
 0x188   : > { %v5215_v28 = vadd.f32 %v1862_v38, %v1800_v59  ;;  %v1854_v3 = vpop.permute.xlu0 %1853  ;;  %v2226_v38 = vstv %s5274_s13  ;;  %v2243_v51 = vrot.slane %v2239_v13, 2 }
 0x189   : > { %v5217_v42 = vadd.f32 %v1854_v3, %v1796_v53  ;;  %v5312_v53 = vsel %vm421_vm1, %v1968_v58, %v1969_v63  ;;  %v2008_v3 = vmul.f32 %v5130_v41, %v2007_v40  ;;  %v2227_v30 = vmul.f32 %v5130_v41, %v2226_v38 }
 0x18a   : > { %v2228_v36 = vmul.f32 %v5259_v37, %v2226_v38  ;;  %v2259_v58 = vstv %s5284_s23  ;;  %v2248_v40 = vstv %s5287_s19  ;;  %v1992_v61 = vsel %vm421_vm1, %v1990_v21, %v1991_v49 }
 0x18b   : > { %v5219_v62 = vpop.permute.xlu1 %1877  ;;  %v2012_v63 = vrot.slane %v2008_v3, 1  ;;  %v2231_v38 = vrot.slane %v2227_v30, 2  ;;  %v2260_v52 = vmul.f32 %v5130_v41, %v2259_v58  ;;  %v2261_v19 = vmul.f32 %v5259_v37, %v2259_v58 }
 0x18c   : > { %v5221_v54 = vpop.permute.xlu0 %1869  ;;  %v1880_v12 = vadd.f32 %v5219_v62, %v5199_v1  ;;  %v1959_v3 = vsel %vm421_vm1, %v1957_v46, %v1958_v14  ;;  %v2249_v7 = vmul.f32 %v5130_v41, %v2248_v40  ;;  %v1981_v13 = vsel %vm421_vm1, %v1979_v43, %v1980_v24 }
 0x18d   : > { %v1872_v17 = vadd.f32 %v5221_v54, %v5201_v48  ;;  %v2250_v30 = vmul.f32 %v5259_v37, %v2248_v40  ;;  %v2282_v1 = vmul.f32 %v5130_v41, %v2281_v0  ;;  %v5352_v62 = vsel %vm421_vm1, %v2012_v63, %v2013_v35 }
 0x18e   : > { %v5355_v46 = vsel %vm421_vm1, %v2001_v26, %v2002_v55  ;;  %v2244_v14 = vsel %vm718_vm2, %v2242_v11, %v2243_v51  ;;  %v2283_v21 = vmul.f32 %v5259_v37, %v2281_v0  ;;  %v2264_v48 = vrot.slane %v2260_v52, 2 }
 0x18f   : > { %v5223_v44 = vpop.permute.xlu1 %1893  ;;  %v2265_v54 = vrot.slane %v2261_v19, 2  ;;  %v2270_v43 = vstv %s5324_s22  ;;  %v1950_v58 = vadd.f32 %v5290_v33, %v1880_v12  ;;  %v2253_v63 = vrot.slane %v2249_v7, 2 }
 0x190   : > { %v5225_v25 = vpop.permute.xlu0 %1885  ;;  %v1896_v24 = vadd.f32 %v5223_v44, %v5205_v8  ;;  %v2303_v26 = vstv %s5329_s4  ;;  %v1939_v55 = vadd.f32 %v5298_v22, %v1872_v17  ;;  %v2286_v11 = vrot.slane %v2282_v1, 2 }
 0x191   : > { %v1888_v40 = vadd.f32 %v5225_v25, %v5207_v60  ;;  %v2287_v0 = vrot.slane %v2283_v21, 2  ;;  %v2272_v8 = vmul.f32 %v5259_v37, %v2270_v43  ;;  %v2266_v33 = vsel %vm718_vm2, %v2264_v48, %v2265_v54 }
 0x192   : > { %v2304_v60 = vmul.f32 %v5130_v41, %v2303_v26  ;;  %v2305_v25 = vmul.f32 %v5259_v37, %v2303_v26  ;;  %v2292_v7 = vstv %s5344_s25 }
 0x193   : > { %v5227_v31 = vpop.permute.xlu1 %1909  ;;  %v1961_v17 = vadd.f32 %v1959_v3, %v1888_v40  ;;  %v2288_v48 = vsel %vm718_vm2, %v2286_v11, %v2287_v0 }
 0x194   : > { %v5229_v32 = vpop.permute.xlu0 %1901  ;;  %v1912_v22 = vadd.f32 %v5227_v31, %v5211_v18  ;;  %v2276_v31 = vrot.slane %v2272_v8, 2  ;;  %v2309_v54 = vrot.slane %v2305_v25, 2 }
 0x197   : > { %v5231_v23 = vpop.permute.xlu1 %1925 }
 0x198   : > { %v5233_v29 = vpop.permute.xlu0 %1917 }
 0x19b   : > { %v5235_v10 = vpop.permute.xlu1 %2039 }
 0x19c   : > { %v5237_v56 = vpop.permute.xlu0 %2026  ;;  %v2042_v51 = vadd.f32 %v5235_v10, %v1950_v58  ;;  %v1972_v10 = vadd.f32 %v5312_v53, %v1896_v24  ;;  %v2293_v24 = vmul.f32 %v5130_v41, %v2292_v7  ;;  %v1920_v58 = vadd.f32 %v5233_v29, %v5217_v42 }
 0x19d   : > { %v2029_v44 = vadd.f32 %v5237_v56, %v1939_v55  ;;  %v1904_v56 = vadd.f32 %v5229_v32, %v5213_v15  ;;  %v1928_v15 = vadd.f32 %v5231_v23, %v5215_v28  ;;  %v1994_v32 = vadd.f32 %v1992_v61, %v1912_v22 }
 0x19e   : > { %v2294_v28 = vmul.f32 %v5259_v37, %v2292_v7  ;;  %v2297_v61 = vrot.slane %v2293_v24, 2  ;;  %v2527_v37 = vld [vmem:[#allocation2 + $0x8] sm:$0xff] }
 0x19f   : > { %v5239_v50 = vpop.permute.xlu1 %2065  ;;  %v2016_v42 = vadd.f32 %v5352_v62, %v1928_v15 }
 0x1a0   : > { %v5241_v47 = vpop.permute.xlu0 %2052  ;;  %v2068_v21 = vadd.f32 %v5239_v50, %v1972_v10 }
 0x1a1   : > { %v2055_v53 = vadd.f32 %v5241_v47, %v1961_v17 }
 0x1a3   : > { %v5243_v39 = vpop.permute.xlu1 %2091 }
 0x1a4   : > { %v5245_v20 = vpop.permute.xlu0 %2078  ;;  %v2094_v40 = vadd.f32 %v5243_v39, %v1994_v32  ;;  %v2547_v32 = vld [vmem:[#allocation2 + $0x28] sm:$0xff] }
 0x1a7   : > { %v5249_v5 = vpop.permute.xlu1 %2117 }
 0x1a8   : > { %v5253_v57 = vpop.permute.xlu0 %2104 }
 0x1a9   : > { %5521 = vst [vmem:[#allocation17_spill] sm:$0xff] %v5253_v57  ;;  %v2232_v57 = vrot.slane %v2228_v36, 2 }
 0x1ab   : > { %v5268_v9 = vpop.permute.xlu1 %2143  ;;  %v2233_v36 = vsel %vm718_vm2, %v2231_v38, %v2232_v57  ;;  %v2254_v57 = vrot.slane %v2250_v30, 2  ;;  %v2271_v38 = vmul.f32 %v5130_v41, %v2270_v43 }
 0x1ac   : > { %v5272_v16 = vpop.permute.xlu0 %2130  ;;  %v2146_v19 = vadd.f32 %v5268_v9, %v2042_v51  ;;  %v2308_v9 = vrot.slane %v2304_v60, 2  ;;  %v2298_v51 = vrot.slane %v2294_v28, 2  ;;  %v2557_v28 = vld [vmem:[#allocation2 + $0x38] sm:$0xff] }
 0x1ad   : > { %v2133_v30 = vadd.f32 %v5272_v16, %v2029_v44  ;;  %v2255_v1 = vsel %vm718_vm2, %v2253_v63, %v2254_v57  ;;  %v2275_v18 = vrot.slane %v2271_v38, 2  ;;  %v1983_v63 = vadd.f32 %v1981_v13, %v1904_v56  ;;  %v2521_v38 = vld [vmem:[#allocation2] sm:$0xff]  ;;  %v2537_v56 = vld [vmem:[#allocation2 + $0x18] sm:$0xff] }
 0x1ae   : > { %v2246_v3 = vadd.f32 %v2244_v14, %v2146_v19  ;;  %v2310_v44 = vsel %vm718_vm2, %v2308_v9, %v2309_v54 }
 0x1af   : > { %v5279_v2 = vpop.permute.xlu1 %2169  ;;  %v2235_v26 = vadd.f32 %v2233_v36, %v2133_v30  ;;  %v2277_v55 = vsel %vm718_vm2, %v2275_v18, %v2276_v31  ;;  %v2081_v23 = vadd.f32 %v5245_v20, %v1983_v63  ;;  %v2120_v20 = vadd.f32 %v5249_v5, %v2016_v42 }
 0x1b0   : > { %v5282_v6 = vpop.permute.xlu0 %2156  ;;  %v2172_v16 = vadd.f32 %v5279_v2, %v2068_v21  ;;  %v5523_v62 = vld [vmem:[#allocation17_spill] sm:$0xff]  ;;  %v2532_v21 = vld [vmem:[#allocation2 + $0x10] sm:$0xff] }
 0x1b1   : > { %v2159_v47 = vadd.f32 %v5282_v6, %v2055_v53 }
 0x1b2   : > { %v2268_v6 = vadd.f32 %v2266_v33, %v2172_v16 }
 0x1b3   : > { %v5302_v4 = vpop.permute.xlu1 %2195  ;;  %v2257_v57 = vadd.f32 %v2255_v1, %v2159_v47 }
 0x1b4   : > { %v5308_v59 = vpop.permute.xlu0 %2182  ;;  %v2198_v29 = vadd.f32 %v5302_v4, %v2094_v40 }
 0x1b5   : > { %v2185_v36 = vadd.f32 %v5308_v59, %v2081_v23 }
 0x1b6   : > { %v2290_v25 = vadd.f32 %v2288_v48, %v2198_v29 }
 0x1b7   : > { %v5320_v34 = vpop.permute.xlu1 %2221 }
 0x1b8   : > { %5522 = vst [vmem:[#allocation20_spill] sm:$0xff] %v5320_v34  ;;  %v5326_v45 = vpop.permute.xlu0 %2208 }
 0x1bb   : > { %v5333_v34 = vpop.permute.xlu1 %2335 }
 0x1bc   : > { %v5341_v27 = vpop.permute.xlu0 %2322  ;;  %v2338_v41 = vadd.f32 %v5333_v34, %v2246_v3  ;;  %v2005_v34 = vadd.f32 %v5355_v46, %v1920_v58  ;;  %v2542_v58 = vld [vmem:[#allocation2 + $0x20] sm:$0xff] }
 0x1bd   : > { %v2325_v2 = vadd.f32 %v5341_v27, %v2235_v26 }
 0x1be   : > { %v2107_v8 = vadd.f32 %v5523_v62, %v2005_v34 }
 0x1bf   : > { %v5360_v49 = vpop.permute.xlu1 %2361  ;;  %v5524_v60 = vld [vmem:[#allocation20_spill] sm:$0xff] }
 0x1c0   : > { %v5366_v35 = vpop.permute.xlu0 %2348  ;;  %v2364_v27 = vadd.f32 %v5360_v49, %v2268_v6  ;;  %v2224_v59 = vadd.f32 %v5524_v60, %v2120_v20  ;;  %v2211_v5 = vadd.f32 %v5326_v45, %v2107_v8  ;;  %v2279_v49 = vadd.f32 %v2277_v55, %v2185_v36 }
 0x1c1   : > { %v2351_v4 = vadd.f32 %v5366_v35, %v2257_v57  ;;  %v2299_v35 = vsel %vm718_vm2, %v2297_v61, %v2298_v51  ;;  %v2605_v8 = vlaneseq (!%p2985_p3) }
 0x1c2   : > { %v2312_v53 = vadd.f32 %v2310_v44, %v2224_v59  ;;  %v2301_v24 = vadd.f32 %v2299_v35, %v2211_v5 }
 0x1c3   : > { %v5377_v52 = vpop.permute.xlu1 %2387  ;;  %v2608_v44 = vshrl.u32 (!%p2985_p3), %v2605_v8, 7 }
 0x1c4   : > { %v5385_v12 = vpop.permute.xlu0 %2374  ;;  %v2390_v30 = vadd.f32 %v5377_v52, %v2290_v25 }
 0x1c5   : > { %v2377_v18 = vadd.f32 %v5385_v12, %v2279_v49 }
 0x1c7   : > { %v5395_v43 = vpop.permute.xlu1 %2413 }
 0x1c8   : > { %v5401_v50 = vpop.permute.xlu0 %2400  ;;  %v2416_v16 = vadd.f32 %v5395_v43, %v2312_v53  ;;  %v2552_v43 = vld [vmem:[#allocation2 + $0x30] sm:$0xff] }
 0x1c9   : > { %v2403_v12 = vadd.f32 %v5401_v50, %v2301_v24 }
 0x1cb   : > { %v2440_v14 = vpop.permute.xlu1 %2439 }
 0x1cc   : > { %v2442_v13 = vadd.f32 %v2440_v14, %v2338_v41  ;;  %v2427_v39 = vpop.permute.xlu0 %2426 }
 0x1cd   : > { %v2429_v11 = vadd.f32 %v2427_v39, %v2325_v2 }
 0x1ce   : > { %v2528_v0 = vmax.f32 %v2442_v13, 0.0 }
 0x1cf   : > { %v2522_v33 = vmax.f32 %v2429_v11, 0.0  ;;  %v2466_v46 = vpop.permute.xlu1 %2465 }
 0x1d0   : > { %v2529_v22 = vadd.f32 %v2528_v0, %v2527_v37  ;;  %v2468_v10 = vadd.f32 %v2466_v46, %v2364_v27  ;;  %v2453_v19 = vpop.permute.xlu0 %2452 }
 0x1d1   : > { %v2523_v7 = vadd.f32 %v2522_v33, %v2521_v38  ;;  %v2455_v17 = vadd.f32 %v2453_v19, %v2351_v4  ;;  %v2606_v4 = vand.u32 (!%p2985_p3), 127, %v2605_v8 }
 0x1d2   : > { %2530 = vst.msk [vmem:[#allocation2 + $0x8] sm:$0xff] %vm2524_vm3, %v2529_v22  ;;  %v2538_v1 = vmax.f32 %v2468_v10, 0.0 }
 0x1d3   : > { %2525 = vst.msk [vmem:[#allocation2] sm:$0xff] %vm2524_vm3, %v2523_v7  ;;  %v2533_v48 = vmax.f32 %v2455_v17, 0.0  ;;  %v2492_v31 = vpop.permute.xlu1 %2491  ;;  %v2609_v60 = vsub.s32 (!%p2985_p3), %v2606_v4, %v2608_v44 }
 0x1d4   : > { %v2539_v45 = vadd.f32 %v2538_v1, %v2537_v56  ;;  %v2494_v9 = vadd.f32 %v2492_v31, %v2390_v30  ;;  %v2479_v54 = vpop.permute.xlu0 %2478 }
 0x1d5   : > { %v2534_v15 = vadd.f32 %v2533_v48, %v2532_v21  ;;  %v2481_v52 = vadd.f32 %v2479_v54, %v2377_v18 }
 0x1d6   : > { %2540 = vst.msk [vmem:[#allocation2 + $0x18] sm:$0xff] %vm2524_vm3, %v2539_v45  ;;  %v2548_v3 = vmax.f32 %v2494_v9, 0.0 }
 0x1d7   : > { %2535 = vst.msk [vmem:[#allocation2 + $0x10] sm:$0xff] %vm2524_vm3, %v2534_v15  ;;  %v2543_v63 = vmax.f32 %v2481_v52, 0.0  ;;  %v2518_v47 = vpop.permute.xlu1 %2517  ;;  %v2659_v15 = vld [vmem:[%s5477_s3] sm:$0xff] (!%p2985_p3) }
 0x1d8   : > { %v2549_v26 = vadd.f32 %v2548_v3, %v2547_v32  ;;  %v2520_v40 = vadd.f32 %v2518_v47, %v2416_v16  ;;  %v2505_v41 = vpop.permute.xlu0 %2504 }
 0x1d9   : > { %v2544_v55 = vadd.f32 %v2543_v63, %v2542_v58  ;;  %v2507_v23 = vadd.f32 %v2505_v41, %v2403_v12  ;;  %2564 = sbr.rel (%p2985_p3) target bundleno = 838 (0x346), region = 56  ;;  %v2566_v6 = vld [vmem:[#allocation2 + $0x8] sm:$0xff] (!%p2985_p3) }
 0x1da   : > { %2550 = vst.msk [vmem:[#allocation2 + $0x28] sm:$0xff] %vm2524_vm3, %v2549_v26  ;;  %v2558_v2 = vmax.f32 %v2520_v40, 0.0  ;;  %v2565_v50 = vld [vmem:[#allocation2] sm:$0xff] (!%p2985_p3)  ;;  %v2576_v36 = vsel (!%p2985_p3), %vm2524_vm3, %v2566_v6, 0.0 }
 0x1db   : > { %2545 = vst.msk [vmem:[#allocation2 + $0x20] sm:$0xff] %vm2524_vm3, %v2544_v55  ;;  %v2553_v61 = vmax.f32 %v2507_v23, 0.0  ;;  %v2573_v13 = vsel (!%p2985_p3), %vm2524_vm3, %v2565_v50, 0.0  ;;  %v2669_v40 = vld [vmem:[#allocation3] sm:$0x1] (!%p2985_p3) }
 0x1dc   : > { %v2559_v14 = vadd.f32 %v2558_v2, %v2557_v28  ;;  %2574 = vadd.xlane.f32.xlu0 (!%p2985_p3), %v2573_v13 }
 0x1dd   : > { %v2554_v42 = vadd.f32 %v2553_v61, %v2552_v43  ;;  %v2568_v34 = vld [vmem:[#allocation2 + $0x18] sm:$0xff] (!%p2985_p3) }
 0x1de   : > { %2560 = vst.msk [vmem:[#allocation2 + $0x38] sm:$0xff] %vm2524_vm3, %v2559_v14  ;;  %v2567_v29 = vld [vmem:[#allocation2 + $0x10] sm:$0xff] (!%p2985_p3)  ;;  %v2582_v57 = vsel (!%p2985_p3), %vm2524_vm3, %v2568_v34, 0.0 }
 0x1df   : > { %2555 = vst.msk [vmem:[#allocation2 + $0x30] sm:$0xff] %vm2524_vm3, %v2554_v42  ;;  %v2579_v39 = vsel (!%p2985_p3), %vm2524_vm3, %v2567_v29, 0.0 }
 0x1e0   : > { %2580 = vadd.xlane.f32.xlu1 %v2579_v39  ;;  %2577 = vadd.xlane.f32.xlu0 %v2576_v36 }
 0x1e1   : > { %v2570_v11 = vld [vmem:[#allocation2 + $0x28] sm:$0xff] }
 0x1e2   : > { %v2569_v37 = vld [vmem:[#allocation2 + $0x20] sm:$0xff]  ;;  %v2588_v27 = vsel %vm2524_vm3, %v2570_v11, 0.0 }
 0x1e3   : > { %v2585_v20 = vsel %vm2524_vm3, %v2569_v37, 0.0 }
 0x1e4   : > { %2583 = vadd.xlane.f32.xlu1 %v2582_v57  ;;  %2586 = vadd.xlane.f32.xlu0 %v2585_v20 }
 0x1e5   : > { %v2572_v0 = vld [vmem:[#allocation2 + $0x38] sm:$0xff] }
 0x1e6   : > { %v2571_v51 = vld [vmem:[#allocation2 + $0x30] sm:$0xff]  ;;  %v2594_v62 = vsel %vm2524_vm3, %v2572_v0, 0.0 }
 0x1e7   : > { %v2591_v38 = vsel %vm2524_vm3, %v2571_v51, 0.0 }
 0x1e8   : > { %2589 = vadd.xlane.f32.xlu1 %v2588_v27  ;;  %2592 = vadd.xlane.f32.xlu0 %v2591_v38 }
 0x1ec   : > { %2595 = vadd.xlane.f32.xlu1 %v2594_v62 }
 0x269   : > { %v2575_v33 = vpop.xlane.xlu0 %2574 }
 0x26a   : > { %v2610_v22 = vrot.slane %v2575_v33, %v2609_v60 }
 0x26d   : > { %v2581_v46 = vpop.xlane.xlu1 %2580  ;;  %v2578_v59 = vpop.xlane.xlu0 %2577 }
 0x26e   : > { %v2614_v10 = vrot.slane %v2578_v59, %v2609_v60  ;;  %v2618_v5 = vrot.slane %v2581_v46, %v2609_v60 }
 0x270   : > { %v2640_v49 = vsel %vm2639_vm4, %v2614_v10, %v2610_v22 }
 0x271   : > { %v2584_v25 = vpop.xlane.xlu1 %2583  ;;  %v2642_v7 = vsel %vm2641_vm5, %v2618_v5, %v2640_v49  ;;  %v2587_v56 = vpop.xlane.xlu0 %2586 }
 0x272   : > { %v2622_v19 = vrot.slane %v2584_v25, %v2609_v60  ;;  %v2626_v35 = vrot.slane %v2587_v56, %v2609_v60 }
 0x274   : > { %v2644_v30 = vsel %vm2643_vm6, %v2622_v19, %v2642_v7 }
 0x275   : > { %v2590_v17 = vpop.xlane.xlu1 %2589  ;;  %v2646_v21 = vsel %vm2645_vm7, %v2626_v35, %v2644_v30  ;;  %v2593_v18 = vpop.xlane.xlu0 %2592 }
 0x276   : > { %v2630_v1 = vrot.slane %v2590_v17, %v2609_v60  ;;  %v2634_v31 = vrot.slane %v2593_v18, %v2609_v60 }
 0x278   : > { %v2648_v45 = vsel %vm2647_vm8, %v2630_v1, %v2646_v21 }
 0x279   : > { %v2596_v48 = vpop.xlane.xlu1 %2595  ;;  %v2650_v9 = vsel %vm2649_vm9, %v2634_v31, %v2648_v45 }
 0x27a   : > { %v2638_v53 = vrot.slane %v2596_v48, %v2609_v60 }
 0x27c   : > { %v2652_v54 = vsel %vm2651_vm10, %v2638_v53, %v2650_v9 }
 0x27d   : > { %v2655_v24 = vsel %vm2654_vm11, %v2652_v54, 0.0 }
 0x27e   : > { %2656 = vadd.xlane.f32.xlu0 %v2655_v24 }
 0x30b   : > { %v2657_v32 = vpop.xlane.xlu0 %2656 }
 0x30c   : > { %v2658_v52 = vmul.f32 0.00390625, %v2657_v32 }
 0x30e   : > { %v2660_v16 = vmul.f32 %v2659_v15, %v2658_v52 }
 0x310   : > { %v2662_v3 = vsel %vm2661_vm12, %v2660_v16, 0.0 }
 0x311   : > { %v2663_v58 = vrot.slane %v2662_v3, 4 }
 0x313   : > { %v2664_v12 = vadd.f32 %v2663_v58, %v2662_v3 }
 0x315   : > { %v2665_v63 = vrot.slane %v2664_v12, 2 }
 0x317   : > { %v2666_v47 = vadd.f32 %v2665_v63, %v2664_v12 }
 0x319   : > { %v2667_v26 = vrot.slane %v2666_v47, 1 }
 0x31b   : > { %v2668_v41 = vadd.f32 %v2667_v26, %v2666_v47 }
 0x31d   : > { %v2670_v55 = vadd.f32 %v2669_v40, %v2668_v41 }
 0x31f   : > { %v2671_v28 = vsub.f32 0.0, %v2670_v55 }
 0x321   : > { %v2673_v23 = vand.u32 2147483647, %v2671_v28  ;;  %v2672_v50 = vmax.f32 %v2671_v28, 0.0 }
 0x323   : > { %v2674_v2 = vsub.f32 0.0, %v2673_v23 }
 0x325   : > { %v2675_v43 = vmul.f32 1.442695, %v2674_v2 }
 0x327   : > { %3038 = vpow2.f32 %v2675_v43 }
 0x331   : > { %v3039_v61 = vpop.eup %3038 }
 0x332   : > { %v2677_v14 = vadd.f32 1.0, %v3039_v61 }
 0x334   : > { %3040 = vlog2.f32 %v2677_v14 }
 0x33e   : > { %v3041_v42 = vpop.eup %3040 }
 0x33f   : > { %v2679_v29 = vmul.f32 0.6931472, %v3041_v42 }
 0x341   : > { %v2680_v6 = vadd.f32 %v2679_v29, %v2672_v50 }
 0x343   : > { %v2681_v13 = vmul.f32 0.14285715, %v2680_v6 }
 0x345   : > { %2683 = vst.msk [vmem:[#allocation9] sm:$0x1] %vm2682_vm13, %v2681_v13 }
 0x346 PF: > { %p3013_p4 = scmp.eq.s32.totalorder %s3168_s24, 1  ;;  %s3125_s27 = smov [#allocation9]  }
 0x347   : > { %s2691_s6 = sshll.u32 %s3125_s27, 4  ;;  %s2692_s6 = int_to_ptr.vmem [resolvable:$true] %s2691_s6 }
 0x348   : > { %s3072_s11 = scalar_lea.vmem %s2692_s6, 16  ;;  %s3078_s7 = scalar_lea.vmem %s2692_s6, 32 }
 0x349   : > { %p3073_p6 = scmp.ne.s32.totalorder %s2692_s6, %s3072_s11  ;;  %p3079_p5 = scmp.lt.s32.totalorder %s2692_s6, %s2692_s6 }
 0x34a   : > { %p3080_p7 = scmp.lt.s32.totalorder %s3078_s7, %s3072_s11 }
 0x34b   : > { %p3074_p0 = pnand %p3073_p6, %p3013_p4 }
 0x34c   : > { %p3081_p9 = por %p3080_p7, %p3079_p5 }
 0x34d   : > { %p3075_p1 = pneg %p3074_p0 }
 0x34f   : > { %p3082_p10 = pnand %p3081_p9, %p3075_p1 }
 0x351   : > { %3085 = shalt.err (!%p3082_p10)
}
 0x352   : > { %s3086_s30 = scalar_lea.hbm %s5479_s5, 16 }
 0x353   : > { %p3087_p11 = scmp.ne.s32.totalorder %s5479_s5, %s3086_s30  ;;  %p3092_p13 = scmp.lt.u32.totalorder %s3086_s30, %s5479_s5 }
 0x355   : > { %p3088_p12 = pnand %p3087_p11, %p3013_p4 }
 0x357   : > { %p3089_p8 = pneg %p3088_p12 }
 0x359   : > { %p3094_p2 = pnand %p3092_p13, %p3089_p8 }
 0x35b   : > { %3097 = shalt.err (!%p3094_p2)
}
 0x35c   : > { %2999 = dma.vmem_to_hbm [thread:$0]  (%p3013_p4), %s2692_s6, 16, %s5479_s5, [#allocation5]  }
 0x35d   : > { %3111 = dma.done.wait (%p3013_p4), [#allocation5], 16  }
 0x35e   : > { %3113 = vsyncadd (%p3013_p4), [#allocation5], 4294967280 }
 0x35f PF: > { %s20_s20 = sadd.s32 1, %s3116_s20  }
 0x360   : > { %p17_p3 = scmp.ge.s32.totalorder %s20_s20, 4  }
 0x362   :  { %19 = sbr.rel (!%p17_p3) target bundleno = 6 (0x6), region = 91 }
 0x369   :  { %2704 = vsyncpa [#allocation5], 1 }
 0x36a   :  { %2706 = vsyncpa [#allocation5 + $0x1], 1 }
 0x36b   :  { %2707 = vsyncpa [#allocation6], 1 }
 0x36c   :  { %2709 = vsyncpa [#allocation6 + $0x1], 1 }
 0x36d   :  { %2710 = vsyncpa [#allocation8], 1 }

</bundles_post_ra>
